<compile_context>
chip_gen: v5e
topology: v5e:2x2
jax: 0.10.0
libtpu: 0.0.40
codegen_flags: <defaults>
</compile_context>

<pallas_src>
import functools

import jax
import jax.numpy as jnp
from jax import lax
from jax.experimental import pallas as pl
from jax.experimental.pallas import tpu as pltpu

_VMEM_LIMIT = 48 * 1024 * 1024   # raised vs v5e's 16 MiB default, safe for v7x (64 MiB/TC)


def _round_up(x, m):
    return -(-x // m) * m


# ----------------------------- Pallas kernels -----------------------------

def _attention_kernel(patch_ref, cols_ref, mm_ref, valid_ref, attn_ref, *, scale):
    """One (batch, position-tile) step of the contextual-attention softmax.

    patch_ref: [1, L, K]  bf16 -- L = H2*W2 patches of x2 (the conv kernels).
    cols_ref:  [1, tP, K] bf16 -- im2col rows of x2 laid out in the PADDED
                                  (Hp, Wp) spatial order (zero rows at pads).
    mm_ref:    [1, L, 1]  f32  -- 1.0 where the mask-patch mean == 0 else 0.0.
    valid_ref: [1, tP]    f32  -- 1.0 at real spatial positions, 0.0 at pads.
    attn_ref:  [1, L, tP] bf16 -- attention, already in padded/flattened layout.
    """
    pt = patch_ref[0]                                       # [L, K] bf16
    ct = cols_ref[0]                                        # [tP, K] bf16
    mm = mm_ref[0]                                          # [L, 1] f32
    vd = valid_ref[...]                                     # [1, tP] f32
    pf = pt.astype(jnp.float32)
    sq = jnp.sum(pf * pf, axis=1, keepdims=True)            # [L, 1]
    # escape_NaN clamp; softmax_scale folded into the normalization factor.
    inv = scale / jnp.maximum(jnp.sqrt(sq), 1e-4)
    wn = (pf * inv).astype(jnp.bfloat16)                    # [L, K]
    # s[l, q] = <normalized patch_l, 3x3 window at padded position q>
    s = lax.dot_general(wn, ct, (((1,), (1,)), ((), ())),
                        preferred_element_type=jnp.float32)  # [L, tP] f32
    s = s * mm                                              # yi = yi * mi
    m = jnp.max(s, axis=0, keepdims=True)                   # softmax over patches
    e = jnp.exp(s - m)
    den = jnp.sum(e, axis=0, keepdims=True)
    p = e * pl.reciprocal(den, approx=True)
    p = jnp.maximum(p * mm, 1e-8) * vd                      # yi*mi, clamp, zero pads
    attn_ref[0] = p.astype(attn_ref.dtype)


# per output-row/col parity of the stride-2 conv_transpose:
# (input offset, 4x4 kernel tap index) pairs
_TAPS = {0: ((0, 1), (-1, 3)), 1: ((0, 2), (1, 0))}


def _paste_kernel(ap_ref, w_ref, out_ref, *, H2, Wp, C):
    """conv_transpose2d(attn, raw_patches, stride=2, padding=1) / 4 per batch.

    ONE MXU dot against the resident padded-attn slab (no shifted [L, .] input
    slices); the per-phase tap shifts are static slices of the small result.

    ap_ref:  [1, L, QLP] bf16 -- attn in padded/flattened layout (kernel-1 out).
    w_ref:   [1, 16*C, L] bf16 -- 4x4 taps of x1 stacked along M, scaled by 1/4.
    out_ref: [1, 4*C, QL] bf16 -- rows ordered (rh, rw, c); columns >= W2 of
                                  each image row are junk, dropped by wrapper.
    """
    QL = H2 * Wp
    full = jnp.dot(w_ref[0], ap_ref[0],
                   preferred_element_type=jnp.float32)      # [16C, QLP] f32
    phases = []
    for rh in range(2):
        for rw in range(2):
            acc = jnp.zeros((C, QL), jnp.float32)
            for dh, kh in _TAPS[rh]:
                for dw, kw in _TAPS[rw]:
                    t = kh * 4 + kw
                    off = (1 + dh) * Wp + (1 + dw)
                    acc = acc + full[t * C:(t + 1) * C, off:off + QL]
            phases.append(acc)
    out_ref[0] = jnp.concatenate(phases, axis=0).astype(out_ref.dtype)


def _fuse_kernel(y_ref, w_ref, b_ref, out_ref, *, dils, H1, Wp1, dmax, OCg):
    """All `groups` dilated 3x3 convs + bias + ReLU for one batch element.

    ONE MXU dot [G*9*OCg, C] x [C, QLP1]; the per-group dilated tap offsets are
    static slices of the result; one lane-dense [G*OCg, QL1] store.

    y_ref:   [1, C, QLP1] bf16 -- y padded by dmax and row-flattened.
    w_ref:   [G*9*OCg, C] bf16 -- rows ordered (g, kh, kw, oc).
    b_ref:   [G*OCg, 1]   f32
    out_ref: [1, G*OCg, QL1] f32 -- columns >= W1 of each row are junk.
    """
    QL1 = H1 * Wp1
    full = jnp.dot(w_ref[...], y_ref[0],
                   preferred_element_type=jnp.float32)      # [G*9*OCg, QLP1]
    groups_acc = []
    for g, d in enumerate(dils):
        a = jnp.zeros((OCg, QL1), jnp.float32)
        for kh in range(3):
            for kw in range(3):
                r = (g * 9 + kh * 3 + kw) * OCg
                off = (dmax + (kh - 1) * d) * Wp1 + dmax + (kw - 1) * d
                a = a + full[r:r + OCg, off:off + QL1]
        groups_acc.append(a)
    acc = jnp.concatenate(groups_acc, axis=0) + b_ref[...]  # [G*OCg, QL1]
    out_ref[0] = jnp.maximum(acc, 0.0)


# ------------------------------- JAX glue ---------------------------------

def resize_bilinear_align_corners(x, out_h, out_w):
    """F.interpolate(..., mode='bilinear', align_corners=True) equivalent."""
    B, C, H, W = x.shape
    if (H, W) == (out_h, out_w):
        return x
    ys = jnp.linspace(0.0, H - 1.0, out_h) if out_h > 1 else jnp.zeros((1,))
    xs = jnp.linspace(0.0, W - 1.0, out_w) if out_w > 1 else jnp.zeros((1,))
    y0 = jnp.clip(jnp.floor(ys), 0, H - 1).astype(jnp.int32)
    x0 = jnp.clip(jnp.floor(xs), 0, W - 1).astype(jnp.int32)
    y1 = jnp.minimum(y0 + 1, H - 1)
    x1 = jnp.minimum(x0 + 1, W - 1)
    wy = (ys - y0)[None, None, :, None]
    wx = (xs - x0)[None, None, None, :]
    g = lambda yy, xx: x[:, :, yy, :][:, :, :, xx]
    top = g(y0, x0) * (1 - wx) + g(y0, x1) * wx
    bot = g(y1, x0) * (1 - wx) + g(y1, x1) * wx
    return top * (1 - wy) + bot * wy


# ------------------------------ forward pass ------------------------------

def attention_conv_forward(x1, x2, mask, fuse_w, fuse_b, *,
                           ksize=3, stride=1, rate=2, softmax_scale=10.0,
                           groups=4, rates=(1, 2, 4, 8), fuse=True):
    B, C, H1, W1 = x1.shape
    _, C2, H2, W2 = x2.shape
    assert C == C2 and stride == 1 and rate == 2 and ksize == 3
    kernel = 2 * rate
    nH = (H1 + 2 - kernel) // rate + 1
    nW = (W1 + 2 - kernel) // rate + 1
    assert (nH, nW) == (H2, W2)
    L = H2 * W2
    K = C * ksize * ksize
    f32, bf16 = jnp.float32, jnp.bfloat16

    # padded spatial geometry shared by kernels 1 and 2 -----------------------
    Wp = W2 + 3
    while (H2 * Wp) % 128:                   # lane-dense paste output (QL % 128 == 0)
        Wp += 1
    QL = H2 * Wp
    QLP = _round_up((H2 + 3) * Wp, 128)      # flat padded-position count (128-multiple)
    tP = 128                                 # position tile; use 512-1024 at realistic P
    for cand in (512, 256):
        if QLP % cand == 0 and QLP // cand >= 2:
            tP = cand
            break

    # ---- im2col of x2 (3x3, pad 1) as 9 static shifted slices ---------------
    x2t = jnp.pad(x2, ((0, 0), (0, 0), (1, 1), (1, 1))).transpose(0, 2, 3, 1)
    col_img = jnp.stack([x2t[:, kh:kh + H2, kw:kw + W2, :]
                         for kh in range(3) for kw in range(3)],
                        axis=-1)                               # [B, H2, W2, C, 9]
    patches = col_img.reshape(B, L, K).astype(bf16)            # conv kernels
    colp = jnp.pad(col_img, ((0, 0), (1, 2), (1, Wp - W2 - 1), (0, 0), (0, 0)))
    cols_pad = colp.reshape(B, (H2 + 3) * Wp, K)
    cols_pad = jnp.pad(cols_pad,
                       ((0, 0), (0, QLP - (H2 + 3) * Wp), (0, 0))).astype(bf16)

    # per-position validity (1 at real positions, 0 at pad rows/cols)
    vimg = jnp.pad(jnp.ones((H2, W2), f32), ((1, 2), (1, Wp - W2 - 1)))
    valid = jnp.pad(vimg.reshape(1, (H2 + 3) * Wp),
                    ((0, 0), (0, QLP - (H2 + 3) * Wp)))

    # ---- per-patch mask validity: 3x3 zero-padded window mean == 0 ----------
    mask_r = resize_bilinear_align_corners(mask, H2, W2)
    mrp = jnp.pad(mask_r, ((0, 0), (0, 0), (1, 1), (1, 1)))
    msum = sum(mrp[:, :, kh:kh + H2, kw:kw + W2]
               for kh in range(3) for kw in range(3))          # [B,1,H2,W2]
    mm = (msum == 0.0).astype(f32).reshape(B, L, 1)

    # ---- kernel 1: normalize + score matmul + masked softmax + clamp --------
    attn = pl.pallas_call(
        functools.partial(_attention_kernel, scale=softmax_scale),
        out_shape=jax.ShapeDtypeStruct((B, L, QLP), bf16),
        grid=(B, QLP // tP),
        in_specs=[pl.BlockSpec((1, L, K), lambda b, j: (b, 0, 0)),
                  pl.BlockSpec((1, tP, K), lambda b, j: (b, j, 0)),
                  pl.BlockSpec((1, L, 1), lambda b, j: (b, 0, 0)),
                  pl.BlockSpec((1, tP), lambda b, j: (0, j))],
        out_specs=pl.BlockSpec((1, L, tP), lambda b, j: (b, 0, j)),
        compiler_params=pltpu.CompilerParams(
            dimension_semantics=("parallel", "parallel"),
            vmem_limit_bytes=_VMEM_LIMIT),
    )(patches, cols_pad, mm, valid)

    # ---- kernel 2: phase-decomposed conv_transpose2d "paste" ----------------
    # raw 4x4 / stride-2 patches of x1, all 16 taps stacked along M and scaled
    # by 0.25 (the /4 normalization folded into the host-built weights).
    x1p = jnp.pad(x1, ((0, 0), (0, 0), (1, 1), (1, 1)))
    taps = [x1p[:, :, kh:kh + rate * (nH - 1) + 1:rate,
                      kw:kw + rate * (nW - 1) + 1:rate].reshape(B, C, L)
            for kh in range(kernel) for kw in range(kernel)]
    wall = (0.25 * jnp.stack(taps, axis=1)
            ).reshape(B, kernel * kernel * C, L).astype(bf16)  # [B, 16C, L]

    yph = pl.pallas_call(
        functools.partial(_paste_kernel, H2=H2, Wp=Wp, C=C),
        out_shape=jax.ShapeDtypeStruct((B, 4 * C, QL), bf16),
        grid=(B,),
        in_specs=[pl.BlockSpec((1, L, QLP), lambda b: (b, 0, 0)),
                  pl.BlockSpec((1, kernel * kernel * C, L), lambda b: (b, 0, 0))],
        out_specs=pl.BlockSpec((1, 4 * C, QL), lambda b: (b, 0, 0)),
        compiler_params=pltpu.CompilerParams(
            dimension_semantics=("parallel",),
            vmem_limit_bytes=_VMEM_LIMIT),
    )(attn, wall)

    # interleave the 4 sub-pixel phases, drop junk columns -> [B, C, H1, W1]
    # TODO(synk): at realistic C this interleave could be consumed directly by
    # the fuse kernel (phase/offset mapping) to skip one XLA transpose.
    y = (yph.reshape(B, 2, 2, C, H2, Wp)[..., :W2]
            .transpose(0, 3, 4, 1, 5, 2).reshape(B, C, H1, W1))

    if not fuse:
        return y.astype(f32)

    # ---- kernel 3: all dilated 3x3 convs + bias + ReLU in one dot -----------
    Gn = groups
    OCg = fuse_w.shape[1]
    dils = tuple(int(r) for r in rates[:Gn])
    dmax = max(dils)
    Wp1 = W1 + 2 * dmax
    while (H1 * Wp1) % 128:                  # lane-dense fuse output
        Wp1 += 1
    Hp1 = H1 + 2 * dmax + 1
    QL1 = H1 * Wp1
    QLP1 = Hp1 * Wp1
    y_flat = jnp.pad(y, ((0, 0), (0, 0), (dmax, Hp1 - H1 - dmax),
                         (dmax, Wp1 - W1 - dmax))).reshape(B, C, QLP1)  # bf16
    # rows ordered (g, kh, kw, oc) -> one M-stacked weight, no masked stores
    wstack = (fuse_w.transpose(0, 3, 4, 1, 2)        # [G, 3, 3, OCg, C]
                    .reshape(Gn * 9 * OCg, C).astype(bf16))
    bfv = fuse_b.reshape(Gn * OCg, 1).astype(f32)

    out = pl.pallas_call(
        functools.partial(_fuse_kernel, dils=dils, H1=H1, Wp1=Wp1,
                          dmax=dmax, OCg=OCg),
        out_shape=jax.ShapeDtypeStruct((B, Gn * OCg, QL1), f32),
        grid=(B,),
        in_specs=[pl.BlockSpec((1, C, QLP1), lambda b: (b, 0, 0)),
                  pl.BlockSpec((Gn * 9 * OCg, C), lambda b: (0, 0)),
                  pl.BlockSpec((Gn * OCg, 1), lambda b: (0, 0))],
        out_specs=pl.BlockSpec((1, Gn * OCg, QL1), lambda b: (b, 0, 0)),
        compiler_params=pltpu.CompilerParams(
            dimension_semantics=("parallel",),
            vmem_limit_bytes=_VMEM_LIMIT),
    )(y_flat, wstack, bfv)

    # drop junk columns; torch.cat over groups => group-major channel order
    out = out.reshape(B, Gn * OCg, H1, Wp1)[..., :W1]
    return out


# --------------------------------- main ------------------------------------

if __name__ == "__main__":
    key = jax.random.PRNGKey(0)
    k1, k2, k3, k4, k5 = jax.random.split(key, 5)

    B, C = 2, 4                       # input_channels = 4
    H2 = W2 = 8                       # x2 spatial
    H1, W1 = 2 * H2, 2 * W2           # rate = 2 => x1 is 2x resolution of x2
    groups, out_channels = 4, 8       # output_channels = 8, 2 per group
    OCg = out_channels // groups

    x1 = jax.random.normal(k1, (B, C, H1, W1), jnp.float32)
    x2 = jax.random.normal(k2, (B, C, H2, W2), jnp.float32)
    mask = (jax.random.uniform(k3, (B, 1, H2, W2)) > 0.7).astype(jnp.float32)

    # fuse-conv parameters: Conv2d(C, OCg, 3, dilation=r, padding=r) per group
    fuse_w = 0.1 * jax.random.normal(k4, (groups, OCg, C, 3, 3), jnp.float32)
    fuse_b = 0.1 * jax.random.normal(k5, (groups, OCg), jnp.float32)

    fwd = jax.jit(functools.partial(
        attention_conv_forward, ksize=3, stride=1, rate=2, softmax_scale=10.0,
        groups=groups, rates=(1, 2, 4, 8), fuse=True))

    out = fwd(x1, x2, mask, fuse_w, fuse_b)
    jax.block_until_ready(out)
    assert out.shape == (B, out_channels, H1, W1), out.shape
    assert bool(jnp.all(jnp.isfinite(out)))
    print("KERNEL_OK")
</pallas_src>

<mosaic_0001>
module attributes {stable_mosaic.version = 11 : i64} {
  func.func @_attention_kernel(%arg0: i32, %arg1: i32, %arg2: memref<1x64x36xbf16, #tpu.memory_space<vmem>>, %arg3: memref<1x128x36xbf16, #tpu.memory_space<vmem>>, %arg4: memref<1x64x1xf32, #tpu.memory_space<vmem>>, %arg5: memref<1x128xf32, #tpu.memory_space<vmem>>, %arg6: memref<1x64x128xbf16, #tpu.memory_space<vmem>>) attributes {dimension_semantics = [#tpu.dimension_semantics<parallel>, #tpu.dimension_semantics<parallel>], iteration_bounds = array<i64: 2, 2>, scalar_prefetch = 0 : i64, scratch_operands = 0 : i64, tpu.core_type = #tpu.core_type<tc>, window_params = [{transform_indices = @transform_0, window_bounds = array<i64: 1, 64, 36>}, {transform_indices = @transform_1, window_bounds = array<i64: 1, 128, 36>}, {transform_indices = @transform_2, window_bounds = array<i64: 1, 64, 1>}, {transform_indices = @transform_3, window_bounds = array<i64: 1, 128>}, {transform_indices = @transform_4, window_bounds = array<i64: 1, 64, 128>}]} {
    %c0 = arith.constant 0 : index
    %c0_0 = arith.constant 0 : index
    %c0_1 = arith.constant 0 : index
    %0 = vector.load %arg2[%c0, %c0_0, %c0_1] : memref<1x64x36xbf16, #tpu.memory_space<vmem>>, vector<1x64x36xbf16>
    %1 = vector.shape_cast %0 : vector<1x64x36xbf16> to vector<64x36xbf16>
    %c0_2 = arith.constant 0 : index
    %c0_3 = arith.constant 0 : index
    %c0_4 = arith.constant 0 : index
    %2 = vector.load %arg3[%c0_2, %c0_3, %c0_4] : memref<1x128x36xbf16, #tpu.memory_space<vmem>>, vector<1x128x36xbf16>
    %3 = vector.shape_cast %2 : vector<1x128x36xbf16> to vector<128x36xbf16>
    %c0_5 = arith.constant 0 : index
    %c0_6 = arith.constant 0 : index
    %c0_7 = arith.constant 0 : index
    %4 = vector.load %arg4[%c0_5, %c0_6, %c0_7] : memref<1x64x1xf32, #tpu.memory_space<vmem>>, vector<1x64x1xf32>
    %5 = vector.shape_cast %4 : vector<1x64x1xf32> to vector<64x1xf32>
    %c0_8 = arith.constant 0 : index
    %c0_9 = arith.constant 0 : index
    %6 = vector.load %arg5[%c0_8, %c0_9] : memref<1x128xf32, #tpu.memory_space<vmem>>, vector<1x128xf32>
    %7 = arith.extf %1 : vector<64x36xbf16> to vector<64x36xf32>
    %8 = arith.mulf %7, %7 : vector<64x36xf32>
    %cst = arith.constant dense<0.000000e+00> : vector<64xf32>
    %9 = vector.multi_reduction <add>, %8, %cst [1] : vector<64x36xf32> to vector<64xf32>
    %10 = vector.shape_cast %9 : vector<64xf32> to vector<64x1xf32>
    %11 = math.sqrt %10 : vector<64x1xf32>
    %cst_10 = arith.constant 9.99999974E-5 : f32
    %12 = vector.broadcast %cst_10 : f32 to vector<64x1xf32>
    %13 = arith.maximumf %11, %12 : vector<64x1xf32>
    %cst_11 = arith.constant 1.000000e+01 : f32
    %14 = vector.broadcast %cst_11 : f32 to vector<64x1xf32>
    %15 = arith.divf %14, %13 : vector<64x1xf32>
    %16 = vector.broadcast %15 : vector<64x1xf32> to vector<64x36xf32>
    %17 = arith.mulf %7, %16 : vector<64x36xf32>
    %18 = arith.truncf %17 : vector<64x36xf32> to vector<64x36xbf16>
    %cst_12 = arith.constant dense<0.000000e+00> : vector<64x128xf32>
    %19 = tpu.matmul %18, %3, %cst_12 {dimension_numbers = #tpu.dot_dimension_numbers<[1], [1], [0], [0], [0, 0, 1, 0], [], []>} : vector<64x36xbf16>, vector<128x36xbf16>, vector<64x128xf32> -> vector<64x128xf32>
    %20 = vector.broadcast %5 : vector<64x1xf32> to vector<64x128xf32>
    %21 = arith.mulf %19, %20 : vector<64x128xf32>
    %cst_13 = arith.constant dense<0xFF800000> : vector<128xf32>
    %22 = vector.multi_reduction <maximumf>, %21, %cst_13 [0] : vector<64x128xf32> to vector<128xf32>
    %23 = vector.shape_cast %22 : vector<128xf32> to vector<1x128xf32>
    %24 = vector.broadcast %23 : vector<1x128xf32> to vector<64x128xf32>
    %25 = arith.subf %21, %24 : vector<64x128xf32>
    %26 = math.exp %25 : vector<64x128xf32>
    %cst_14 = arith.constant dense<0.000000e+00> : vector<128xf32>
    %27 = vector.multi_reduction <add>, %26, %cst_14 [0] : vector<64x128xf32> to vector<128xf32>
    %28 = vector.shape_cast %27 : vector<128xf32> to vector<1x128xf32>
    %29 = tpu.reciprocal %28 {approx = true} : vector<1x128xf32> -> vector<1x128xf32>
    %30 = vector.broadcast %29 : vector<1x128xf32> to vector<64x128xf32>
    %31 = arith.mulf %26, %30 : vector<64x128xf32>
    %32 = vector.broadcast %5 : vector<64x1xf32> to vector<64x128xf32>
    %33 = arith.mulf %31, %32 : vector<64x128xf32>
    %cst_15 = arith.constant 9.99999993E-9 : f32
    %34 = vector.broadcast %cst_15 : f32 to vector<64x128xf32>
    %35 = arith.maximumf %33, %34 : vector<64x128xf32>
    %36 = vector.broadcast %6 : vector<1x128xf32> to vector<64x128xf32>
    %37 = arith.mulf %35, %36 : vector<64x128xf32>
    %38 = arith.truncf %37 : vector<64x128xf32> to vector<64x128xbf16>
    %c0_16 = arith.constant 0 : index
    %c0_17 = arith.constant 0 : index
    %c0_18 = arith.constant 0 : index
    %39 = vector.load %arg6[%c0_16, %c0_17, %c0_18] : memref<1x64x128xbf16, #tpu.memory_space<vmem>>, vector<1x64x128xbf16>
    %40 = vector.shape_cast %39 : vector<1x64x128xbf16> to vector<64x128xbf16>
    %41 = vector.shape_cast %38 : vector<64x128xbf16> to vector<1x64x128xbf16>
    tpu.vector_store %arg6[%c0_16, %c0_17, %c0_18], %41 {strides = array<i32>} : memref<1x64x128xbf16, #tpu.memory_space<vmem>>, vector<1x64x128xbf16>,
    return
  }
  func.func @transform_0(%arg0: i32, %arg1: i32) -> (i32, i32, i32) {
    %c0_i32 = arith.constant 0 : i32
    %c0_i32_0 = arith.constant 0 : i32
    %c0_i32_1 = arith.constant 0 : i32
    return %arg0, %c0_i32, %c0_i32_0 : i32, i32, i32
  }
  func.func @transform_1(%arg0: i32, %arg1: i32) -> (i32, i32, i32) {
    %c0_i32 = arith.constant 0 : i32
    %c0_i32_0 = arith.constant 0 : i32
    return %arg0, %arg1, %c0_i32 : i32, i32, i32
  }
  func.func @transform_2(%arg0: i32, %arg1: i32) -> (i32, i32, i32) {
    %c0_i32 = arith.constant 0 : i32
    %c0_i32_0 = arith.constant 0 : i32
    %c0_i32_1 = arith.constant 0 : i32
    return %arg0, %c0_i32, %c0_i32_0 : i32, i32, i32
  }
  func.func @transform_3(%arg0: i32, %arg1: i32) -> (i32, i32) {
    %c0_i32 = arith.constant 0 : i32
    %c0_i32_0 = arith.constant 0 : i32
    return %c0_i32, %arg1 : i32, i32
  }
  func.func @transform_4(%arg0: i32, %arg1: i32) -> (i32, i32, i32) {
    %c0_i32 = arith.constant 0 : i32
    %c0_i32_0 = arith.constant 0 : i32
    return %arg0, %c0_i32, %arg1 : i32, i32, i32
  }
}

module attributes {stable_mosaic.version = 11 : i64} {
  func.func @_paste_kernel(%arg0: i32, %arg1: memref<1x64x256xbf16, #tpu.memory_space<vmem>>, %arg2: memref<1x64x64xbf16, #tpu.memory_space<vmem>>, %arg3: memref<1x16x128xbf16, #tpu.memory_space<vmem>>) attributes {dimension_semantics = [#tpu.dimension_semantics<parallel>], iteration_bounds = array<i64: 2>, scalar_prefetch = 0 : i64, scratch_operands = 0 : i64, tpu.core_type = #tpu.core_type<tc>, window_params = [{transform_indices = @transform_0, window_bounds = array<i64: 1, 64, 256>}, {transform_indices = @transform_1, window_bounds = array<i64: 1, 64, 64>}, {transform_indices = @transform_2, window_bounds = array<i64: 1, 16, 128>}]} {
    %c0 = arith.constant 0 : index
    %c0_0 = arith.constant 0 : index
    %c0_1 = arith.constant 0 : index
    %0 = vector.load %arg2[%c0, %c0_0, %c0_1] : memref<1x64x64xbf16, #tpu.memory_space<vmem>>, vector<1x64x64xbf16>
    %1 = vector.shape_cast %0 : vector<1x64x64xbf16> to vector<64x64xbf16>
    %c0_2 = arith.constant 0 : index
    %c0_3 = arith.constant 0 : index
    %c0_4 = arith.constant 0 : index
    %2 = vector.load %arg1[%c0_2, %c0_3, %c0_4] : memref<1x64x256xbf16, #tpu.memory_space<vmem>>, vector<1x64x256xbf16>
    %3 = vector.shape_cast %2 : vector<1x64x256xbf16> to vector<64x256xbf16>
    %cst = arith.constant dense<0.000000e+00> : vector<64x256xf32>
    %4 = tpu.matmul %1, %3, %cst {dimension_numbers = #tpu.dot_dimension_numbers<[1], [0], [0], [1], [0, 0, 1, 1], [], []>} : vector<64x64xbf16>, vector<64x256xbf16>, vector<64x256xf32> -> vector<64x256xf32>
    %cst_5 = arith.constant 0.000000e+00 : f32
    %5 = vector.broadcast %cst_5 : f32 to vector<4x128xf32>
    %6 = vector.extract_strided_slice %4 {offsets = [20, 17], sizes = [4, 128], strides = [1, 1]} : vector<64x256xf32> to vector<4x128xf32>
    %7 = arith.addf %5, %6 : vector<4x128xf32>
    %8 = vector.extract_strided_slice %4 {offsets = [28, 16], sizes = [4, 128], strides = [1, 1]} : vector<64x256xf32> to vector<4x128xf32>
    %9 = arith.addf %7, %8 : vector<4x128xf32>
    %10 = vector.extract_strided_slice %4 {offsets = [52, 1], sizes = [4, 128], strides = [1, 1]} : vector<64x256xf32> to vector<4x128xf32>
    %11 = arith.addf %9, %10 : vector<4x128xf32>
    %12 = vector.extract_strided_slice %4 {offsets = [60, 0], sizes = [4, 128], strides = [1, 1]} : vector<64x256xf32> to vector<4x128xf32>
    %13 = arith.addf %11, %12 : vector<4x128xf32>
    %cst_6 = arith.constant 0.000000e+00 : f32
    %14 = vector.broadcast %cst_6 : f32 to vector<4x128xf32>
    %15 = vector.extract_strided_slice %4 {offsets = [24, 17], sizes = [4, 128], strides = [1, 1]} : vector<64x256xf32> to vector<4x128xf32>
    %16 = arith.addf %14, %15 : vector<4x128xf32>
    %17 = vector.extract_strided_slice %4 {offsets = [16, 18], sizes = [4, 128], strides = [1, 1]} : vector<64x256xf32> to vector<4x128xf32>
    %18 = arith.addf %16, %17 : vector<4x128xf32>
    %19 = vector.extract_strided_slice %4 {offsets = [56, 1], sizes = [4, 128], strides = [1, 1]} : vector<64x256xf32> to vector<4x128xf32>
    %20 = arith.addf %18, %19 : vector<4x128xf32>
    %21 = vector.extract_strided_slice %4 {offsets = [48, 2], sizes = [4, 128], strides = [1, 1]} : vector<64x256xf32> to vector<4x128xf32>
    %22 = arith.addf %20, %21 : vector<4x128xf32>
    %cst_7 = arith.constant 0.000000e+00 : f32
    %23 = vector.broadcast %cst_7 : f32 to vector<4x128xf32>
    %24 = vector.extract_strided_slice %4 {offsets = [36, 17], sizes = [4, 128], strides = [1, 1]} : vector<64x256xf32> to vector<4x128xf32>
    %25 = arith.addf %23, %24 : vector<4x128xf32>
    %26 = vector.extract_strided_slice %4 {offsets = [44, 16], sizes = [4, 128], strides = [1, 1]} : vector<64x256xf32> to vector<4x128xf32>
    %27 = arith.addf %25, %26 : vector<4x128xf32>
    %28 = vector.extract_strided_slice %4 {offsets = [4, 33], sizes = [4, 128], strides = [1, 1]} : vector<64x256xf32> to vector<4x128xf32>
    %29 = arith.addf %27, %28 : vector<4x128xf32>
    %30 = vector.extract_strided_slice %4 {offsets = [12, 32], sizes = [4, 128], strides = [1, 1]} : vector<64x256xf32> to vector<4x128xf32>
    %31 = arith.addf %29, %30 : vector<4x128xf32>
    %cst_8 = arith.constant 0.000000e+00 : f32
    %32 = vector.broadcast %cst_8 : f32 to vector<4x128xf32>
    %33 = vector.extract_strided_slice %4 {offsets = [40, 17], sizes = [4, 128], strides = [1, 1]} : vector<64x256xf32> to vector<4x128xf32>
    %34 = arith.addf %32, %33 : vector<4x128xf32>
    %35 = vector.extract_strided_slice %4 {offsets = [32, 18], sizes = [4, 128], strides = [1, 1]} : vector<64x256xf32> to vector<4x128xf32>
    %36 = arith.addf %34, %35 : vector<4x128xf32>
    %37 = vector.extract_strided_slice %4 {offsets = [8, 33], sizes = [4, 128], strides = [1, 1]} : vector<64x256xf32> to vector<4x128xf32>
    %38 = arith.addf %36, %37 : vector<4x128xf32>
    %39 = vector.extract_strided_slice %4 {offsets = [0, 34], sizes = [4, 128], strides = [1, 1]} : vector<64x256xf32> to vector<4x128xf32>
    %40 = arith.addf %38, %39 : vector<4x128xf32>
    %41 = tpu.concatenate %13, %22, %31, %40 in 0 : vector<4x128xf32>, vector<4x128xf32>, vector<4x128xf32>, vector<4x128xf32> -> vector<16x128xf32>
    %42 = arith.truncf %41 : vector<16x128xf32> to vector<16x128xbf16>
    %c0_9 = arith.constant 0 : index
    %c0_10 = arith.constant 0 : index
    %c0_11 = arith.constant 0 : index
    %43 = vector.load %arg3[%c0_9, %c0_10, %c0_11] : memref<1x16x128xbf16, #tpu.memory_space<vmem>>, vector<1x16x128xbf16>
    %44 = vector.shape_cast %43 : vector<1x16x128xbf16> to vector<16x128xbf16>
    %45 = vector.shape_cast %42 : vector<16x128xbf16> to vector<1x16x128xbf16>
    tpu.vector_store %arg3[%c0_9, %c0_10, %c0_11], %45 {strides = array<i32>} : memref<1x16x128xbf16, #tpu.memory_space<vmem>>, vector<1x16x128xbf16>,
    return
  }
  func.func @transform_0(%arg0: i32) -> (i32, i32, i32) {
    %c0_i32 = arith.constant 0 : i32
    %c0_i32_0 = arith.constant 0 : i32
    %c0_i32_1 = arith.constant 0 : i32
    return %arg0, %c0_i32, %c0_i32_0 : i32, i32, i32
  }
  func.func @transform_1(%arg0: i32) -> (i32, i32, i32) {
    %c0_i32 = arith.constant 0 : i32
    %c0_i32_0 = arith.constant 0 : i32
    %c0_i32_1 = arith.constant 0 : i32
    return %arg0, %c0_i32, %c0_i32_0 : i32, i32, i32
  }
  func.func @transform_2(%arg0: i32) -> (i32, i32, i32) {
    %c0_i32 = arith.constant 0 : i32
    %c0_i32_0 = arith.constant 0 : i32
    %c0_i32_1 = arith.constant 0 : i32
    return %arg0, %c0_i32, %c0_i32_0 : i32, i32, i32
  }
}

module attributes {stable_mosaic.version = 11 : i64} {
  func.func @_fuse_kernel(%arg0: i32, %arg1: memref<1x4x1056xbf16, #tpu.memory_space<vmem>>, %arg2: memref<72x4xbf16, #tpu.memory_space<vmem>>, %arg3: memref<8x1xf32, #tpu.memory_space<vmem>>, %arg4: memref<1x8x512xf32, #tpu.memory_space<vmem>>) attributes {dimension_semantics = [#tpu.dimension_semantics<parallel>], iteration_bounds = array<i64: 2>, scalar_prefetch = 0 : i64, scratch_operands = 0 : i64, tpu.core_type = #tpu.core_type<tc>, window_params = [{transform_indices = @transform_0, window_bounds = array<i64: 1, 4, 1056>}, {pipeline_mode = #tpu.pipeline_mode<synchronous>, transform_indices = @transform_1, window_bounds = array<i64: 72, 4>}, {pipeline_mode = #tpu.pipeline_mode<synchronous>, transform_indices = @transform_2, window_bounds = array<i64: 8, 1>}, {transform_indices = @transform_3, window_bounds = array<i64: 1, 8, 512>}]} {
    %c0 = arith.constant 0 : index
    %c0_0 = arith.constant 0 : index
    %0 = vector.load %arg2[%c0, %c0_0] : memref<72x4xbf16, #tpu.memory_space<vmem>>, vector<72x4xbf16>
    %c0_1 = arith.constant 0 : index
    %c0_2 = arith.constant 0 : index
    %c0_3 = arith.constant 0 : index
    %1 = vector.load %arg1[%c0_1, %c0_2, %c0_3] : memref<1x4x1056xbf16, #tpu.memory_space<vmem>>, vector<1x4x1056xbf16>
    %2 = vector.shape_cast %1 : vector<1x4x1056xbf16> to vector<4x1056xbf16>
    %cst = arith.constant dense<0.000000e+00> : vector<72x1056xf32>
    %3 = tpu.matmul %0, %2, %cst {dimension_numbers = #tpu.dot_dimension_numbers<[1], [0], [0], [1], [0, 0, 1, 1], [], []>} : vector<72x4xbf16>, vector<4x1056xbf16>, vector<72x1056xf32> -> vector<72x1056xf32>
    %cst_4 = arith.constant 0.000000e+00 : f32
    %4 = vector.broadcast %cst_4 : f32 to vector<2x512xf32>
    %5 = vector.extract_strided_slice %3 {offsets = [0, 231], sizes = [2, 512], strides = [1, 1]} : vector<72x1056xf32> to vector<2x512xf32>
    %6 = arith.addf %4, %5 : vector<2x512xf32>
    %7 = vector.extract_strided_slice %3 {offsets = [2, 232], sizes = [2, 512], strides = [1, 1]} : vector<72x1056xf32> to vector<2x512xf32>
    %8 = arith.addf %6, %7 : vector<2x512xf32>
    %9 = vector.extract_strided_slice %3 {offsets = [4, 233], sizes = [2, 512], strides = [1, 1]} : vector<72x1056xf32> to vector<2x512xf32>
    %10 = arith.addf %8, %9 : vector<2x512xf32>
    %11 = vector.extract_strided_slice %3 {offsets = [6, 263], sizes = [2, 512], strides = [1, 1]} : vector<72x1056xf32> to vector<2x512xf32>
    %12 = arith.addf %10, %11 : vector<2x512xf32>
    %13 = vector.extract_strided_slice %3 {offsets = [8, 264], sizes = [2, 512], strides = [1, 1]} : vector<72x1056xf32> to vector<2x512xf32>
    %14 = arith.addf %12, %13 : vector<2x512xf32>
    %15 = vector.extract_strided_slice %3 {offsets = [10, 265], sizes = [2, 512], strides = [1, 1]} : vector<72x1056xf32> to vector<2x512xf32>
    %16 = arith.addf %14, %15 : vector<2x512xf32>
    %17 = vector.extract_strided_slice %3 {offsets = [12, 295], sizes = [2, 512], strides = [1, 1]} : vector<72x1056xf32> to vector<2x512xf32>
    %18 = arith.addf %16, %17 : vector<2x512xf32>
    %19 = vector.extract_strided_slice %3 {offsets = [14, 296], sizes = [2, 512], strides = [1, 1]} : vector<72x1056xf32> to vector<2x512xf32>
    %20 = arith.addf %18, %19 : vector<2x512xf32>
    %21 = vector.extract_strided_slice %3 {offsets = [16, 297], sizes = [2, 512], strides = [1, 1]} : vector<72x1056xf32> to vector<2x512xf32>
    %22 = arith.addf %20, %21 : vector<2x512xf32>
    %cst_5 = arith.constant 0.000000e+00 : f32
    %23 = vector.broadcast %cst_5 : f32 to vector<2x512xf32>
    %24 = vector.extract_strided_slice %3 {offsets = [18, 198], sizes = [2, 512], strides = [1, 1]} : vector<72x1056xf32> to vector<2x512xf32>
    %25 = arith.addf %23, %24 : vector<2x512xf32>
    %26 = vector.extract_strided_slice %3 {offsets = [20, 200], sizes = [2, 512], strides = [1, 1]} : vector<72x1056xf32> to vector<2x512xf32>
    %27 = arith.addf %25, %26 : vector<2x512xf32>
    %28 = vector.extract_strided_slice %3 {offsets = [22, 202], sizes = [2, 512], strides = [1, 1]} : vector<72x1056xf32> to vector<2x512xf32>
    %29 = arith.addf %27, %28 : vector<2x512xf32>
    %30 = vector.extract_strided_slice %3 {offsets = [24, 262], sizes = [2, 512], strides = [1, 1]} : vector<72x1056xf32> to vector<2x512xf32>
    %31 = arith.addf %29, %30 : vector<2x512xf32>
    %32 = vector.extract_strided_slice %3 {offsets = [26, 264], sizes = [2, 512], strides = [1, 1]} : vector<72x1056xf32> to vector<2x512xf32>
    %33 = arith.addf %31, %32 : vector<2x512xf32>
    %34 = vector.extract_strided_slice %3 {offsets = [28, 266], sizes = [2, 512], strides = [1, 1]} : vector<72x1056xf32> to vector<2x512xf32>
    %35 = arith.addf %33, %34 : vector<2x512xf32>
    %36 = vector.extract_strided_slice %3 {offsets = [30, 326], sizes = [2, 512], strides = [1, 1]} : vector<72x1056xf32> to vector<2x512xf32>
    %37 = arith.addf %35, %36 : vector<2x512xf32>
    %38 = vector.extract_strided_slice %3 {offsets = [32, 328], sizes = [2, 512], strides = [1, 1]} : vector<72x1056xf32> to vector<2x512xf32>
    %39 = arith.addf %37, %38 : vector<2x512xf32>
    %40 = vector.extract_strided_slice %3 {offsets = [34, 330], sizes = [2, 512], strides = [1, 1]} : vector<72x1056xf32> to vector<2x512xf32>
    %41 = arith.addf %39, %40 : vector<2x512xf32>
    %cst_6 = arith.constant 0.000000e+00 : f32
    %42 = vector.broadcast %cst_6 : f32 to vector<2x512xf32>
    %43 = vector.extract_strided_slice %3 {offsets = [36, 132], sizes = [2, 512], strides = [1, 1]} : vector<72x1056xf32> to vector<2x512xf32>
    %44 = arith.addf %42, %43 : vector<2x512xf32>
    %45 = vector.extract_strided_slice %3 {offsets = [38, 136], sizes = [2, 512], strides = [1, 1]} : vector<72x1056xf32> to vector<2x512xf32>
    %46 = arith.addf %44, %45 : vector<2x512xf32>
    %47 = vector.extract_strided_slice %3 {offsets = [40, 140], sizes = [2, 512], strides = [1, 1]} : vector<72x1056xf32> to vector<2x512xf32>
    %48 = arith.addf %46, %47 : vector<2x512xf32>
    %49 = vector.extract_strided_slice %3 {offsets = [42, 260], sizes = [2, 512], strides = [1, 1]} : vector<72x1056xf32> to vector<2x512xf32>
    %50 = arith.addf %48, %49 : vector<2x512xf32>
    %51 = vector.extract_strided_slice %3 {offsets = [44, 264], sizes = [2, 512], strides = [1, 1]} : vector<72x1056xf32> to vector<2x512xf32>
    %52 = arith.addf %50, %51 : vector<2x512xf32>
    %53 = vector.extract_strided_slice %3 {offsets = [46, 268], sizes = [2, 512], strides = [1, 1]} : vector<72x1056xf32> to vector<2x512xf32>
    %54 = arith.addf %52, %53 : vector<2x512xf32>
    %55 = vector.extract_strided_slice %3 {offsets = [48, 388], sizes = [2, 512], strides = [1, 1]} : vector<72x1056xf32> to vector<2x512xf32>
    %56 = arith.addf %54, %55 : vector<2x512xf32>
    %57 = vector.extract_strided_slice %3 {offsets = [50, 392], sizes = [2, 512], strides = [1, 1]} : vector<72x1056xf32> to vector<2x512xf32>
    %58 = arith.addf %56, %57 : vector<2x512xf32>
    %59 = vector.extract_strided_slice %3 {offsets = [52, 396], sizes = [2, 512], strides = [1, 1]} : vector<72x1056xf32> to vector<2x512xf32>
    %60 = arith.addf %58, %59 : vector<2x512xf32>
    %cst_7 = arith.constant 0.000000e+00 : f32
    %61 = vector.broadcast %cst_7 : f32 to vector<2x512xf32>
    %62 = vector.extract_strided_slice %3 {offsets = [54, 0], sizes = [2, 512], strides = [1, 1]} : vector<72x1056xf32> to vector<2x512xf32>
    %63 = arith.addf %61, %62 : vector<2x512xf32>
    %64 = vector.extract_strided_slice %3 {offsets = [56, 8], sizes = [2, 512], strides = [1, 1]} : vector<72x1056xf32> to vector<2x512xf32>
    %65 = arith.addf %63, %64 : vector<2x512xf32>
    %66 = vector.extract_strided_slice %3 {offsets = [58, 16], sizes = [2, 512], strides = [1, 1]} : vector<72x1056xf32> to vector<2x512xf32>
    %67 = arith.addf %65, %66 : vector<2x512xf32>
    %68 = vector.extract_strided_slice %3 {offsets = [60, 256], sizes = [2, 512], strides = [1, 1]} : vector<72x1056xf32> to vector<2x512xf32>
    %69 = arith.addf %67, %68 : vector<2x512xf32>
    %70 = vector.extract_strided_slice %3 {offsets = [62, 264], sizes = [2, 512], strides = [1, 1]} : vector<72x1056xf32> to vector<2x512xf32>
    %71 = arith.addf %69, %70 : vector<2x512xf32>
    %72 = vector.extract_strided_slice %3 {offsets = [64, 272], sizes = [2, 512], strides = [1, 1]} : vector<72x1056xf32> to vector<2x512xf32>
    %73 = arith.addf %71, %72 : vector<2x512xf32>
    %74 = vector.extract_strided_slice %3 {offsets = [66, 512], sizes = [2, 512], strides = [1, 1]} : vector<72x1056xf32> to vector<2x512xf32>
    %75 = arith.addf %73, %74 : vector<2x512xf32>
    %76 = vector.extract_strided_slice %3 {offsets = [68, 520], sizes = [2, 512], strides = [1, 1]} : vector<72x1056xf32> to vector<2x512xf32>
    %77 = arith.addf %75, %76 : vector<2x512xf32>
    %78 = vector.extract_strided_slice %3 {offsets = [70, 528], sizes = [2, 512], strides = [1, 1]} : vector<72x1056xf32> to vector<2x512xf32>
    %79 = arith.addf %77, %78 : vector<2x512xf32>
    %80 = tpu.concatenate %22, %41, %60, %79 in 0 : vector<2x512xf32>, vector<2x512xf32>, vector<2x512xf32>, vector<2x512xf32> -> vector<8x512xf32>
    %c0_8 = arith.constant 0 : index
    %c0_9 = arith.constant 0 : index
    %81 = vector.load %arg3[%c0_8, %c0_9] : memref<8x1xf32, #tpu.memory_space<vmem>>, vector<8x1xf32>
    %82 = vector.broadcast %81 : vector<8x1xf32> to vector<8x512xf32>
    %83 = arith.addf %80, %82 : vector<8x512xf32>
    %cst_10 = arith.constant 0.000000e+00 : f32
    %84 = vector.broadcast %cst_10 : f32 to vector<8x512xf32>
    %85 = arith.maximumf %83, %84 : vector<8x512xf32>
    %c0_11 = arith.constant 0 : index
    %c0_12 = arith.constant 0 : index
    %c0_13 = arith.constant 0 : index
    %86 = vector.load %arg4[%c0_11, %c0_12, %c0_13] : memref<1x8x512xf32, #tpu.memory_space<vmem>>, vector<1x8x512xf32>
    %87 = vector.shape_cast %86 : vector<1x8x512xf32> to vector<8x512xf32>
    %88 = vector.shape_cast %85 : vector<8x512xf32> to vector<1x8x512xf32>
    tpu.vector_store %arg4[%c0_11, %c0_12, %c0_13], %88 {strides = array<i32>} : memref<1x8x512xf32, #tpu.memory_space<vmem>>, vector<1x8x512xf32>,
    return
  }
  func.func @transform_0(%arg0: i32) -> (i32, i32, i32) {
    %c0_i32 = arith.constant 0 : i32
    %c0_i32_0 = arith.constant 0 : i32
    %c0_i32_1 = arith.constant 0 : i32
    return %arg0, %c0_i32, %c0_i32_0 : i32, i32, i32
  }
  func.func @transform_1(%arg0: i32) -> (i32, i32) {
    %c0_i32 = arith.constant 0 : i32
    %c0_i32_0 = arith.constant 0 : i32
    %c0_i32_1 = arith.constant 0 : i32
    return %c0_i32, %c0_i32_0 : i32, i32
  }
  func.func @transform_2(%arg0: i32) -> (i32, i32) {
    %c0_i32 = arith.constant 0 : i32
    %c0_i32_0 = arith.constant 0 : i32
    %c0_i32_1 = arith.constant 0 : i32
    return %c0_i32, %c0_i32_0 : i32, i32
  }
  func.func @transform_3(%arg0: i32) -> (i32, i32, i32) {
    %c0_i32 = arith.constant 0 : i32
    %c0_i32_0 = arith.constant 0 : i32
    %c0_i32_1 = arith.constant 0 : i32
    return %arg0, %c0_i32, %c0_i32_0 : i32, i32, i32
  }
}

</mosaic_0001>

<bundles_post_ra>
// kernel: attention_conv_forward.4
= control target key start
LH: loop header
LB: loop body
LE: loop exit
PB: predicated region body
PF: predicated region fallthrough
CT: control target
= control target key end

     0   :  { %s699_s9 = smov 0   ;;  %s775_s0 = inlined_call_operand.vmem [shape: bf16[2,64,256], index: 0, kind: input, shape index: {}]   ;;  %s776_s1 = inlined_call_operand.vmem [shape: bf16[2,64,64], index: 1, kind: input, shape index: {}]   ;;  %s777_s2 = inlined_call_operand.vmem [shape: bf16[2,16,128], index: 2, kind: output, shape index: {}]  }
   0x1 LB: > { %s560_s10 = sadd.s32 4294967295, %s674_s9   ;;  %p564_p0 = scmp.ge.s32.totalorder %s674_s9, 1  ;;  %s674_s9 = sphi %s699_s9, %s12_s9  }
   0x2   : > { %p122_p1 = scmp.lt.s32.totalorder %s674_s9, 3 }
   0x4   : > { %p123_p2 = pnand %p564_p0, %p122_p1 }
   0x5   : > { %p149_p3 = scmp.lt.s32.totalorder (!%p123_p2), %s560_s10, 1  ;;  %s676_s19 = smov (!%p123_p2), 112  }
   0x6   : > { %126 = sbr.rel (%p123_p2) target bundleno = 456 (0x1c8), region = 28  ;;  %s677_s20 = smov (!%p123_p2), 127  }
   0x7   : > { %s678_s21 = smov (!%p123_p2), 1   ;;  %s679_s22 = smov (!%p123_p2), 113  }
   0x8   : > { %s680_s23 = smov (!%p123_p2), 16   ;;  %s681_s24 = smov (!%p123_p2), 15  }
   0x9   : > { %s682_s25 = smov (!%p123_p2), 111   ;;  %s683_s26 = smov (!%p123_p2), 17  }
   0xb   : > { %s779_s10 = smov (!%p149_p3, %s560_s10), 1  ;;  %vm241_vm0 = vcmask 523264   ;;  %vm320_vm1 = vcmask 7168   ;;  %vm352_vm2 = vcmask 1039360   ;;  %vm397_vm3 = vcmask 916480  }
   0xc   : > { %s629_s11 = sshll.u32 %s779_s10, 6  ;;  %s630_s15 = sshll.u32 %s779_s10, 5  ;;  %vm409_vm4 = vcmask 924672   ;;  %vm332_vm5 = vcmask 130048   ;;  %vm372_vm6 = vcmask 121856   ;;  %vm441_vm7 = vcmask 908288  }
   0xd   : > { %s713_s14 = scalar_lea.vmem %s775_s0, %s629_s11  ;;  %s158_s18 = scalar_lea.vmem %s776_s1, %s630_s15  ;;  %vm471_vm8 = vcmask 1043456  }
   0xe   : > { %v613_v0 = vld [vmem:[%s713_s14 + $0x30] sm:$0xf]  ;;  %v643_v1 = vld [vmem:[%s713_s14 + $0x34] sm:$0xf0]  ;;  %v642_v2 = vld [vmem:[%s713_s14 + $0x34] sm:$0xf] }
   0xf   : > { %v614_v3 = vor.u32 %v643_v1, %v613_v0  ;;  %v615_v4 = vld [vmem:[%s713_s14 + $0x38] sm:$0xf0]  ;;  %v605_v5 = vld [vmem:[%s713_s14 + $0x20] sm:$0xf]  ;;  %v641_v6 = vld [vmem:[%s713_s14 + $0x24] sm:$0xf0] }
  0x10   : > { %v618_v7 = vor.u32 %v642_v2, %v615_v4  ;;  %v640_v8 = vld [vmem:[%s713_s14 + $0x24] sm:$0xf]  ;;  %v607_v9 = vld [vmem:[%s713_s14 + $0x28] sm:$0xf0]  ;;  %v606_v10 = vor.u32 %v641_v6, %v605_v5  ;;  %v597_v12 = vld [vmem:[%s713_s14 + $0x10] sm:$0xf] }
  0x11   : > { %258 = vmatpush.bf16.msra.mxu0 %v614_v3  ;;  %644 = vmatpush.bf16.msra.mxu2 %v614_v3  ;;  %v610_v11 = vor.u32 %v640_v8, %v607_v9  ;;  %v639_v13 = vld [vmem:[%s713_s14 + $0x14] sm:$0xf0]  ;;  %v638_v14 = vld [vmem:[%s713_s14 + $0x14] sm:$0xf]  ;;  %v599_v15 = vld [vmem:[%s713_s14 + $0x18] sm:$0xf0] }
  0x12   : > { %287 = vmatpush.bf16.msra.mxu1 %v618_v7  ;;  %648 = vmatpush.bf16.msra.mxu3 %v618_v7  ;;  %v598_v16 = vor.u32 %v639_v13, %v597_v12  ;;  %v602_v17 = vor.u32 %v638_v14, %v599_v15  ;;  %v589_v18 = vld [vmem:[%s713_s14] sm:$0xf]  ;;  %v637_v19 = vld [vmem:[%s713_s14 + $0x4] sm:$0xf0]  ;;  %v636_v20 = vld [vmem:[%s713_s14 + $0x4] sm:$0xf] }
  0x13   : > { %v591_v21 = vld [vmem:[%s713_s14 + $0x8] sm:$0xf0]  ;;  %v590_v22 = vor.u32 %v637_v19, %v589_v18  ;;  %v632_v24 = vld [vmem:[%s158_s18] sm:$0xff]  ;;  %v634_v25 = vld [vmem:[%s158_s18 + $0x10] sm:$0xff]  ;;  %s631_s27 = sshll.u32 %s779_s10, 3 }
  0x14   : > { %v594_v23 = vor.u32 %v636_v20, %v591_v21  ;;  %v633_v26 = vld [vmem:[%s158_s18 + $0x8] sm:$0xff]  ;;  %v635_v27 = vld [vmem:[%s158_s18 + $0x18] sm:$0xff]  ;;  %s163_s30 = scalar_lea.vmem %s777_s2, %s631_s27 }
  0x15   : > { %259 = vmatpush.bf16.msra.mxu0 %v606_v10  ;;  %645 = vmatpush.bf16.msra.mxu2 %v606_v10 }
  0x16   : > { %288 = vmatpush.bf16.msra.mxu1 %v610_v11  ;;  %649 = vmatpush.bf16.msra.mxu3 %v610_v11 }
  0x19   : > { %260 = vmatpush.bf16.msra.mxu0 %v598_v16  ;;  %646 = vmatpush.bf16.msra.mxu2 %v598_v16 }
  0x1a   : > { %289 = vmatpush.bf16.msra.mxu1 %v602_v17  ;;  %650 = vmatpush.bf16.msra.mxu3 %v602_v17 }
  0x1d   : > { %261 = vmatpush.bf16.msra.mxu0 %v590_v22  ;;  %647 = vmatpush.bf16.msra.mxu2 %v590_v22 }
  0x1e   : > { %290 = vmatpush.bf16.msra.mxu1 %v594_v23  ;;  %651 = vmatpush.bf16.msra.mxu3 %v594_v23 }
  0x20   : > { %619 = vmatmul.msk.bf16.vlgmr.msra.gmra.mxu0 %vm241_vm0, %v632_v24  ;;  %621 = vmatmul.msk.bf16.vlgmr.msra.gmra.mxu2 %vm241_vm0, %v634_v25 }
  0x21   : > { %623 = vmatmul.msk.bf16.vlgmr.msra.gmra.mxu1 %vm241_vm0, %v632_v24  ;;  %625 = vmatmul.msk.bf16.vlgmr.msra.gmra.mxu3 %vm241_vm0, %v634_v25 }
  0x30   : > { %620 = vmatmul.msk.bf16.gmra.mxu0 %vm241_vm0, %v633_v26  ;;  %622 = vmatmul.msk.bf16.gmra.mxu2 %vm241_vm0, %v635_v27 }
  0x31   : > { %626 = vmatmul.msk.bf16.gmra.mxu3 %vm241_vm0, %v635_v27  ;;  %624 = vmatmul.msk.bf16.gmra.mxu1 %vm241_vm0, %v633_v26 }
  0x9d   : > { %v263_v28 = vpop.f32.mrf.mxu0 }
  0x9e   : > { %v292_v29 = vpop.f32.mrf.mxu1  ;;  %393 = vrot.lane.b32.xlu0 %v263_v28, %s676_s19 }
  0x9f   : > { %395 = vrot.lane.b32.xlu1 %v292_v29, %s676_s19 }
  0xa3   : > { %v735_v30 = vpop.f32.mrf.mxu2 }
  0xa4   : > { %v302_v31 = vpop.f32.mrf.mxu3 }
  0xa5   : > { %v265_v32 = vpop.f32.mrf.mxu0 }
  0xa6   : > { %419 = vrot.lane.b32.xlu0 %v735_v30, %s677_s20  ;;  %428 = vrot.lane.b32.xlu2 %v265_v32, %s676_s19  ;;  %v294_v33 = vpop.f32.mrf.mxu1 }
  0xa7   : > { %421 = vrot.lane.b32.xlu1 %v302_v31, %s677_s20 }
  0xab   : > { %v738_v34 = vpop.f32.mrf.mxu2 }
  0xac   : > { %v741_v35 = vpop.f32.mrf.mxu3 }
  0xad   : > { %v743_v36 = vpop.f32.mrf.mxu0 }
  0xae   : > { %382 = vrot.lane.b32.xlu2 %v738_v34, %s678_s21  ;;  %430 = vrot.lane.b32.xlu0 %v294_v33, %s676_s19  ;;  %v747_v38 = vpop.f32.mrf.mxu1 }
  0xaf   : > { %407 = vrot.lane.b32.xlu1 %v294_v33, %s679_s22 }
  0xb3   : > { %v278_v37 = vpop.f32.mrf.mxu2 }
  0xb4   : > { %v307_v39 = vpop.f32.mrf.mxu3 }
  0xb5   : > { %v270_v40 = vpop.f32.mrf.mxu0 }
  0xb6   : > { %384 = vrot.lane.b32.xlu2 %v741_v35, %s678_s21  ;;  %405 = vrot.lane.b32.xlu0 %v265_v32, %s679_s22  ;;  %v299_v43 = vpop.f32.mrf.mxu1 }
  0xb7   : > { %348 = vrot.lane.b32.xlu1 %v743_v36, %s677_s20 }
  0xbb   : > { %v280_v41 = vpop.f32.mrf.mxu2 }
  0xbc   : > { %v309_v42 = vpop.f32.mrf.mxu3 }
  0xbe   : > { %328 = vrot.lane.b32.xlu2 %v278_v37, %s680_s23  ;;  %330 = vrot.lane.b32.xlu0 %v307_v39, %s680_s23 }
  0xbf   : > { %350 = vrot.lane.b32.xlu1 %v747_v38, %s677_s20 }
  0xc6   : > { %370 = vrot.lane.b32.xlu2 %v307_v39, %s681_s24  ;;  %316 = vrot.lane.b32.xlu0 %v270_v40, %s678_s21 }
  0xc7   : > { %368 = vrot.lane.b32.xlu1 %v278_v37, %s681_s24 }
  0xce   : > { %361 = vrot.lane.b32.xlu2 %v309_v42, %s680_s23  ;;  %318 = vrot.lane.b32.xlu0 %v299_v43, %s678_s21 }
  0xcf   : > { %359 = vrot.lane.b32.xlu1 %v280_v41, %s680_s23 }
  0xd6   : > { %437 = vrot.lane.b32.xlu2 %v263_v28, %s682_s25  ;;  %439 = vrot.lane.b32.xlu0 %v292_v29, %s682_s25 }
  0xd7   : > { %339 = vrot.lane.b32.xlu1 %v280_v41, %s683_s26 }
 0x100   : > { %v429_v44 = vpop.permute.xlu2 %428 }
 0x108   : > { %v383_v47 = vpop.permute.xlu2 %382 }
 0x109   : > { %v389_v1 = vadd.f32 %v383_v47, %v735_v30 }
 0x110   : > { %v394_v45 = vpop.permute.xlu0 %393  ;;  %v385_v50 = vpop.permute.xlu2 %384 }
 0x111   : > { %v396_v46 = vpop.permute.xlu1 %395  ;;  %v386_v61 = vsel %vm320_vm1, %v383_v47, %v385_v50 }
 0x112   : > { %v390_v62 = vadd.f32 %v386_v61, %v302_v31  ;;  %v398_v6 = vsel %vm397_vm3, %v394_v45, %v396_v46 }
 0x113   : > { %v401_v17 = vadd.f32 %v398_v6, %v389_v1 }
 0x114   : > { %v402_v7 = vadd.f32 %v396_v46, %v390_v62 }
 0x118   : > { %v420_v48 = vpop.permute.xlu0 %419  ;;  %v329_v55 = vpop.permute.xlu2 %328 }
 0x119   : > { %v422_v49 = vpop.permute.xlu1 %421 }
 0x11a   : > { %v423_v10 = vsel %vm352_vm2, %v420_v48, %v422_v49  ;;  %v427_v11 = vadd.f32 %v422_v49, %v741_v35 }
 0x11b   : > { %v426_v19 = vadd.f32 %v423_v10, %v738_v34 }
 0x120   : > { %v431_v51 = vpop.permute.xlu0 %430  ;;  %v371_v58 = vpop.permute.xlu2 %370 }
 0x121   : > { %v408_v52 = vpop.permute.xlu1 %407  ;;  %v432_v18 = vsel %vm397_vm3, %v429_v44, %v431_v51  ;;  %v436_v21 = vadd.f32 %v431_v51, %v427_v11 }
 0x122   : > { %v414_v20 = vadd.f32 %v408_v52, %v402_v7  ;;  %v435_v26 = vadd.f32 %v432_v18, %v426_v19 }
 0x128   : > { %v406_v53 = vpop.permute.xlu0 %405  ;;  %v362_v63 = vpop.permute.xlu2 %361 }
 0x129   : > { %v349_v54 = vpop.permute.xlu1 %348  ;;  %v410_v13 = vsel %vm409_vm4, %v406_v53, %v408_v52 }
 0x12a   : > { %v413_v22 = vadd.f32 %v410_v13, %v401_v17 }
 0x12c   : > { %v461_v39 = vrot.slane %v413_v22, 4 }
 0x130   : > { %v331_v56 = vpop.permute.xlu0 %330  ;;  %v438_v27 = vpop.permute.xlu2 %437 }
 0x131   : > { %v351_v57 = vpop.permute.xlu1 %350  ;;  %v333_v23 = vsel %vm332_vm5, %v329_v55, %v331_v56 }
 0x132   : > { %v353_v0 = vsel %vm352_vm2, %v349_v54, %v351_v57  ;;  %v357_v8 = vadd.f32 %v351_v57, %v299_v43 }
 0x133   : > { %v356_v3 = vadd.f32 %v353_v0, %v270_v40 }
 0x138   : > { %v317_v59 = vpop.permute.xlu0 %316 }
 0x139   : > { %v369_v60 = vpop.permute.xlu1 %368  ;;  %v324_v14 = vadd.f32 %v317_v59, %v743_v36 }
 0x13a   : > { %v373_v24 = vsel %vm372_vm6, %v369_v60, %v371_v58 }
 0x13b   : > { %v336_v29 = vadd.f32 %v329_v55, %v324_v14 }
 0x140   : > { %v319_v2 = vpop.permute.xlu0 %318 }
 0x141   : > { %v360_v4 = vpop.permute.xlu1 %359  ;;  %v321_v5 = vsel %vm320_vm1, %v317_v59, %v319_v2 }
 0x142   : > { %v363_v9 = vsel %vm332_vm5, %v360_v4, %v362_v63  ;;  %v366_v12 = vadd.f32 %v360_v4, %v356_v3  ;;  %v325_v16 = vadd.f32 %v321_v5, %v747_v38  ;;  %v462_v38 = vrot.slane %v414_v20, 4 }
 0x143   : > { %v367_v15 = vadd.f32 %v363_v9, %v357_v8 }
 0x144   : > { %v376_v25 = vadd.f32 %v369_v60, %v366_v12  ;;  %v337_v30 = vadd.f32 %v333_v23, %v325_v16 }
 0x145   : > { %v377_v28 = vadd.f32 %v373_v24, %v367_v15 }
 0x146   : > { %v455_v40 = vrot.slane %v376_v25, 4 }
 0x147   : > { %v456_v42 = vrot.slane %v377_v28, 4 }
 0x148   : > { %v440_v31 = vpop.permute.xlu0 %439 }
 0x149   : > { %v340_v32 = vpop.permute.xlu1 %339  ;;  %v442_v33 = vsel %vm441_vm7, %v438_v27, %v440_v31  ;;  %v446_v35 = vadd.f32 %v440_v31, %v436_v21 }
 0x14a   : > { %v342_v36 = vadd.f32 %v340_v32, %v336_v29  ;;  %v343_v34 = vadd.f32 %v340_v32, %v337_v30  ;;  %v445_v37 = vadd.f32 %v442_v33, %v435_v26 }
 0x14b   : > { %v468_v41 = vrot.slane %v446_v35, 4 }
 0x14c   : > { %v449_v43 = vrot.slane %v342_v36, 4  ;;  %v450_v44 = vrot.slane %v343_v34, 4  ;;  %v467_v45 = vrot.slane %v445_v37, 4 }
 0x14d   : > { %v475_v46 = vsel %vm471_vm8, %v462_v38, %v468_v41 }
 0x14e   : > { %v472_v47 = vsel %vm471_vm8, %v449_v43, %v455_v40  ;;  %v473_v48 = vsel %vm471_vm8, %v450_v44, %v456_v42  ;;  %v474_v49 = vsel %vm471_vm8, %v461_v39, %v467_v45 }
 0x14f   : > { %v476_v50 = vpack.c.bf16 %v473_v48, %v472_v47  ;;  %v477_v51 = vpack.c.bf16 %v475_v46, %v474_v49 }
 0x151   : > { %480 = vrot.lane.b32.xlu2 %v476_v50, %s682_s25  ;;  %482 = vrot.lane.b32.xlu0 %v477_v51, %s682_s25 }
 0x1ab   : > { %v481_v52 = vpop.permute.xlu2 %480 }
 0x1ac   : > { %v484_v53 = vrot.slane %v481_v52, 4 }
 0x1ae   : > { %v487_v54 = vsel %vm441_vm7, %v481_v52, %v484_v53 }
 0x1af   : > { %491 = vst [vmem:[%s163_s30] sm:$0xf] %v487_v54 }
 0x1c3   : > { %v483_v55 = vpop.permute.xlu0 %482 }
 0x1c4   : > { %v485_v56 = vrot.slane %v483_v55, 4 }
 0x1c6   : > { %v488_v57 = vsel %vm441_vm7, %v483_v55, %v485_v56 }
 0x1c7   : > { %492 = vst [vmem:[%s163_s30 + $0x4] sm:$0xf] %v488_v57 }
 0x1c8 PF: > { %s12_s9 = sadd.s32 1, %s674_s9  }
 0x1c9   : > { %p9_p4 = scmp.ge.s32.totalorder %s12_s9, 4  }
 0x1cb   :  { %11 = sbr.rel (!%p9_p4) target bundleno = 1 (0x1), region = 61 }

// kernel: attention_conv_forward.3
= control target key start
LH: loop header
LB: loop body
LE: loop exit
PB: predicated region body
PF: predicated region fallthrough
CT: control target
= control target key end

     0   :  { %s1347_s15 = smov 0   ;;  %s1349_s16 = smov 0   ;;  %s1831_s0 = inlined_call_operand.vmem [shape: bf16[2,64,36], index: 0, kind: input, shape index: {}]   ;;  %s1832_s1 = inlined_call_operand.vmem [shape: bf16[2,256,36], index: 1, kind: input, shape index: {}]   ;;  %s1833_s2 = inlined_call_operand.vmem [shape: f32[2,64,1], index: 2, kind: input, shape index: {}]   ;;  %s1834_s3 = inlined_call_operand.vmem [shape: f32[1,256], index: 3, kind: input, shape index: {}]   ;;  %s1835_s4 = inlined_call_operand.vmem [shape: bf16[2,64,256], index: 4, kind: output, shape index: {}]  }
   0x1   :  { %s1351_s17 = smov 0   ;;  %s1353_s18 = smov 0  }
   0x2   :  { %s1355_s19 = smov 0   ;;  %s1357_s20 = smov 0  }
   0x3   :  { %s1359_s21 = smov 0  }
   0x4 LB: > { %s23_s22 = sadd.s32 1, %s1311_s19  ;;  %s26_s23 = sadd.s32 1, %s1315_s20  ;;  %s1319_s21 = sphi %s1359_s21, %s14_s21   ;;  %s1315_s20 = sphi %s1357_s20, %s1856_s20   ;;  %s1311_s19 = sphi %s1355_s19, %s1855_s19   ;;  %s1307_s18 = sphi %s1353_s18, %s1854_s18   ;;  %s1303_s17 = sphi %s1351_s17, %s1853_s17   ;;  %s1299_s16 = sphi %s1349_s16, %s1852_s16   ;;  %s1295_s15 = sphi %s1347_s15, %s1851_s15  }
   0x5   : > { %p24_p0 = scmp.ge.s32.totalorder %s23_s22, 2  ;;  %s1024_s24 = sadd.s32 4294967295, %s1319_s21  }
   0x6   : > { %p151_p1 = scmp.ne.s32.totalorder %s1299_s16, %s1295_s15  ;;  %p152_p2 = scmp.eq.s32.totalorder %s1024_s24, 3 }
   0x7   : > { %s1858_s22 = smov (%p24_p0, %s23_s22), 0  ;;  %s1860_s23 = smov (!%p24_p0, %s26_s23), %s1315_s20 }
   0x8   : > { %s137_s25 = ssub.s32 %s1311_s19, %s1858_s22  ;;  %p28_p3 = scmp.ge.s32.totalorder %s1860_s23, 2 }
   0x9   : > { %p1028_p4 = scmp.ge.s32.totalorder %s1319_s21, 1  ;;  %p1393_p5 = por %p152_p2, %p151_p1 }
   0xa   : > { %p211_p6 = scmp.lt.s32.totalorder %s1319_s21, 5  ;;  %s1862_s23 = smov (%p28_p3, %s1860_s23), 0 }
   0xb   : > { %s136_s27 = ssub.s32 %s1315_s20, %s1862_s23  ;;  %s141_s29 = sadd.s32 1, %s1299_s16 }
   0xc   : > { %p212_p7 = pnand %p1028_p4, %p211_p6  ;;  %s138_s28 = sor.u32 %s137_s25, %s136_s27 }
   0xd   : > { %p139_p8 = scmp.eq.s32.totalorder %s138_s28, 0  ;;  %p253_p9 = scmp.lt.s32.totalorder (!%p212_p7), %s1307_s18, 1 }
   0xe   : > { %215 = sbr.rel (%p212_p7) target bundleno = 443 (0x1bb), region = 36  ;;  %s1032_s5 = sshll.u32 (!%p212_p7), %s1303_s17, 4 }
   0xf   : > { %s1404_s30 = scalar_select %p139_p8, %s1299_s16, %s141_s29  }
  0x10   : > { %p261_p10 = scmp.lt.s32.totalorder (!%p212_p7), %s1032_s5, 31  ;;  %p273_p11 = scmp.lt.s32.totalorder (!%p212_p7), %s1303_s17, 1 }
  0x11   : > { %s250_s9 = sand.u32 (!%p212_p7), 1, %s1295_s15  }
  0x12   : > { %s1029_s15 = sshll.u32 (!%p212_p7), %s250_s9, 5 }
  0x13   : > { %s1409_s6 = scalar_select %p253_p9, %s1307_s18, 1  ;;  %vm325_vm0 = vcmask 293888  }
  0x14   : > { %s1864_s5 = smov (!%p261_p10, %s1032_s5), 31  ;;  %s1074_s13 = sshll.u32 (%p1393_p5), %s1307_s18, 4 }
  0x15   : > { %s1078_s7 = sshll.u32 %s1409_s6, 5  ;;  %s1079_s25 = sshll.u32 %s1409_s6, 6 }
  0x16   : > { %s257_s10 = scalar_lea.vmem %s1831_s0, %s1078_s7  ;;  %s264_s11 = sadd.s32 %s1078_s7, %s1864_s5 }
  0x17   : > { %s1034_s12 = sshll.u32 %s264_s11, 2  ;;  %v1126_v0 = vld [vmem:[%s257_s10 + $0x18] sm:$0xff]   ;;  %v1125_v1 = vld [vmem:[%s257_s10 + $0x10] sm:$0xff]   ;;  %v1089_v2 = vld [vmem:[%s257_s10] sm:$0xff]   ;;  %s1495_s29 = scalar_lea.vmem %s1833_s2, %s1079_s25 }
  0x18   : > { %s1418_s24 = scalar_lea.vmem %s1832_s1, %s1034_s12  ;;  %v1420_v3 = vunpack.c.l.bf16 %v1126_v0  ;;  %v1422_v4 = vunpack.c.l.bf16 %v1125_v1  ;;  %v1424_v5 = vunpack.c.l.bf16 %v1089_v2  ;;  %v1426_v6 = vunpack.c.h.bf16 %v1126_v0  ;;  %v1124_v20 = vld [vmem:[%s257_s10 + $0x8] sm:$0xff]   ;;  %v302_v61 = vld [vmem:[%s1495_s29 + $0x10] sm:$0xff]  ;;  %s252_s12 = scalar_lea.vmem [#allocation2], %s1029_s15 }
  0x19   : > { %v1434_v10 = vunpack.c.h.bf16 %v1125_v1  ;;  %v1087_v11 = vld [vmem:[%s1418_s24 + $0x38] sm:$0xff]  ;;  %v1437_v12 = vunpack.c.h.bf16 %v1089_v2  ;;  %v1086_v21 = vld [vmem:[%s1418_s24 + $0x30] sm:$0xff]  ;;  %v1452_v24 = vunpack.c.h.bf16 %v1124_v20  ;;  %v1454_v25 = vunpack.c.l.bf16 %v1124_v20  ;;  %v1085_v32 = vld [vmem:[%s1418_s24 + $0x28] sm:$0xff]  ;;  %s1759_s5 = scalar_select %p273_p11, %s1303_s17, 1 }
  0x1a   : > { %v323_v7 = vmul.f32 %v1420_v3, %v1420_v3  ;;  %v321_v8 = vmul.f32 %v1422_v4, %v1422_v4  ;;  %v317_v9 = vmul.f32 %v1424_v5, %v1424_v5  ;;  %v324_v16 = vmul.f32 %v1426_v6, %v1426_v6  ;;  %v1084_v34 = vld [vmem:[%s1418_s24 + $0x20] sm:$0xff]  ;;  %v1083_v38 = vld [vmem:[%s1418_s24 + $0x18] sm:$0xff]  ;;  %v1082_v49 = vld [vmem:[%s1418_s24 + $0x10] sm:$0xff]  ;;  %s849_s14 = sadd.s32 (%p1393_p5), %s1303_s17, %s1074_s13 }
  0x1b   : > { %v322_v17 = vmul.f32 %v1434_v10, %v1434_v10  ;;  %v660_v18 = vsel %vm325_vm0, %v1087_v11, 0  ;;  %v318_v19 = vmul.f32 %v1437_v12, %v1437_v12  ;;  %v657_v27 = vsel %vm325_vm0, %v1086_v21, 0  ;;  %v1081_v0 = vld [vmem:[%s1418_s24 + $0x8] sm:$0xff]  ;;  %s275_s8 = scalar_lea.vmem %s1834_s3, %s1759_s5 }
  0x1c   : > { %v344_v13 = vsel %vm325_vm0, %v323_v7, 0.0  ;;  %v338_v14 = vsel %vm325_vm0, %v321_v8, 0.0  ;;  %v326_v15 = vsel %vm325_vm0, %v317_v9, 0.0  ;;  %662 = vmatpush.bf16.xpose.msra.mxu0 %v660_v18  ;;  %1131 = vmatpush.bf16.xpose.msra.mxu2 %v660_v18  ;;  %v347_v22 = vsel %vm325_vm0, %v324_v16, 0.0 }
  0x1d   : > { %345 = vadd.xlane.f32.xlu1 %v344_v13  ;;  %339 = vadd.xlane.f32.xlu0 %v338_v14  ;;  %v341_v23 = vsel %vm325_vm0, %v322_v17, 0.0  ;;  %v329_v26 = vsel %vm325_vm0, %v318_v19, 0.0  ;;  %v320_v28 = vmul.f32 %v1452_v24, %v1452_v24  ;;  %v319_v29 = vmul.f32 %v1454_v25, %v1454_v25 }
  0x1e   : > { %327 = vadd.xlane.f32.xlu2 %v326_v15  ;;  %1132 = vmatpush.bf16.xpose.msra.mxu3 %v660_v18  ;;  %v654_v33 = vsel %vm325_vm0, %v1085_v32, 0  ;;  %v651_v35 = vsel %vm325_vm0, %v1084_v34, 0  ;;  %v648_v40 = vsel %vm325_vm0, %v1083_v38, 0  ;;  %v645_v57 = vsel %vm325_vm0, %v1082_v49, 0 }
  0x1f   : > { %1130 = vmatpush.bf16.xpose.msra.mxu1 %v660_v18  ;;  %v335_v30 = vsel %vm325_vm0, %v320_v28, 0.0  ;;  %v332_v31 = vsel %vm325_vm0, %v319_v29, 0.0  ;;  %v1321_v13 = vmov 0   ;;  %v642_v28 = vsel %vm325_vm0, %v1081_v0, 0 }
  0x20   : > { %1213 = vset.pattern.permute.xlu1 %v1321_v13  ;;  %1211 = vset.pattern.permute.xlu2 %v1321_v13 }
  0x21   : > { %1212 = vset.pattern.permute.xlu0 %v1321_v13 }
  0x24   : > { %663 = vmatpush.bf16.xpose.msra.mxu0 %v657_v27  ;;  %1134 = vmatpush.bf16.xpose.msra.mxu2 %v657_v27 }
  0x25   : > { %348 = vadd.xlane.f32.xlu1 %v347_v22  ;;  %342 = vadd.xlane.f32.xlu0 %v341_v23 }
  0x26   : > { %330 = vadd.xlane.f32.xlu2 %v329_v26  ;;  %1135 = vmatpush.bf16.xpose.msra.mxu3 %v657_v27 }
  0x27   : > { %1133 = vmatpush.bf16.xpose.msra.mxu1 %v657_v27 }
  0x2c   : > { %664 = vmatpush.bf16.xpose.msra.mxu0 %v654_v33  ;;  %1137 = vmatpush.bf16.xpose.msra.mxu2 %v654_v33 }
  0x2d   : > { %336 = vadd.xlane.f32.xlu1 %v335_v30  ;;  %333 = vadd.xlane.f32.xlu0 %v332_v31 }
  0x2e   : > { %1138 = vmatpush.bf16.xpose.msra.mxu3 %v654_v33 }
  0x2f   : > { %1136 = vmatpush.bf16.xpose.msra.mxu1 %v654_v33 }
  0x34   : > { %665 = vmatpush.bf16.xpose.msra.mxu0 %v651_v35  ;;  %1140 = vmatpush.bf16.xpose.msra.mxu2 %v651_v35 }
  0x36   : > { %1141 = vmatpush.bf16.xpose.msra.mxu3 %v651_v35 }
  0x37   : > { %1139 = vmatpush.bf16.xpose.msra.mxu1 %v651_v35 }
  0x3c   : > { %666 = vmatpush.bf16.xpose.msra.mxu0 %v648_v40  ;;  %1143 = vmatpush.bf16.xpose.msra.mxu2 %v648_v40 }
  0x3e   : > { %1144 = vmatpush.bf16.xpose.msra.mxu3 %v648_v40 }
  0x3f   : > { %1142 = vmatpush.bf16.xpose.msra.mxu1 %v648_v40 }
  0x44   : > { %667 = vmatpush.bf16.xpose.msra.mxu0 %v645_v57  ;;  %1146 = vmatpush.bf16.xpose.msra.mxu2 %v645_v57 }
  0x46   : > { %1147 = vmatpush.bf16.xpose.msra.mxu3 %v645_v57  ;;  %703 = vperm.xlu1 %1213, %v302_v61  }
  0x47   : > { %1145 = vmatpush.bf16.xpose.msra.mxu1 %v645_v57 }
  0x4c   : > { %668 = vmatpush.bf16.xpose.msra.mxu0 %v642_v28  ;;  %1149 = vmatpush.bf16.xpose.msra.mxu2 %v642_v28 }
  0x4e   : > { %1150 = vmatpush.bf16.xpose.msra.mxu3 %v642_v28 }
  0x4f   : > { %1148 = vmatpush.bf16.xpose.msra.mxu1 %v642_v28 }
  0x90   : > { %v1468_v36 = vpop.xlane.xlu1 %345  ;;  %v1470_v37 = vpop.xlane.xlu0 %339 }
  0x91   : > { %1215 = vrsqrt.f32 %v1468_v36  ;;  %v1474_v39 = vpop.xlane.xlu2 %327  ;;  %vm429_vm1 = vcmp.eq.f32.partialorder %v1468_v36, inf  ;;  %vm431_vm2 = vcmp.eq.f32.partialorder %v1468_v36, 0.0  ;;  %v432_v55 = vand.u32 2147483648, %v1468_v36 }
  0x92   : > { %1217 = vrsqrt.f32 %v1470_v37  ;;  %vm405_vm3 = vcmp.eq.f32.partialorder %v1470_v37, inf  ;;  %vm407_vm4 = vcmp.eq.f32.partialorder %v1470_v37, 0.0  ;;  %v408_v59 = vand.u32 2147483648, %v1470_v37 }
  0x93   : > { %1219 = vrsqrt.f32 %v1474_v39  ;;  %vm357_vm5 = vcmp.eq.f32.partialorder %v1474_v39, inf  ;;  %vm359_vm6 = vcmp.eq.f32.partialorder %v1474_v39, 0.0  ;;  %v360_v8 = vand.u32 2147483648, %v1474_v39 }
  0x97   : > { %v1216_v41 = vpop.eup %1215 }
  0x98   : > { %v1218_v42 = vpop.eup %1217  ;;  %v423_v43 = vmul.f32 %v1216_v41, %v1468_v36  ;;  %v1481_v44 = vpop.xlane.xlu1 %348 }
  0x99   : > { %v1483_v45 = vpop.xlane.xlu0 %342  ;;  %v1220_v46 = vpop.eup %1219  ;;  %v399_v47 = vmul.f32 %v1218_v42, %v1470_v37  ;;  %1221 = vrsqrt.f32 %v1481_v44  ;;  %v444_v15 = vand.u32 2147483648, %v1481_v44  ;;  %vm441_vm7 = vcmp.eq.f32.partialorder %v1481_v44, inf }
  0x9a   : > { %v1487_v48 = vpop.xlane.xlu2 %330  ;;  %v424_v50 = vmul.f32 %v1216_v41, %v423_v43  ;;  %v351_v51 = vmul.f32 %v1220_v46, %v1474_v39  ;;  %1223 = vrsqrt.f32 %v1483_v45  ;;  %v420_v22 = vand.u32 2147483648, %v1483_v45 }
  0x9b   : > { %v400_v52 = vmul.f32 %v1218_v42, %v399_v47  ;;  %1225 = vrsqrt.f32 %v1487_v48  ;;  %vm443_vm8 = vcmp.eq.f32.partialorder %v1481_v44, 0.0  ;;  %vm417_vm9 = vcmp.eq.f32.partialorder %v1483_v45, inf }
  0x9c   : > { %v425_v53 = vmul.f32 0.5, %v424_v50  ;;  %v352_v54 = vmul.f32 %v1220_v46, %v351_v51  ;;  %vm419_vm10 = vcmp.eq.f32.partialorder %v1483_v45, 0.0  ;;  %vm369_vm11 = vcmp.eq.f32.partialorder %v1487_v48, inf }
  0x9d   : > { %v401_v56 = vmul.f32 0.5, %v400_v52  ;;  %vm371_vm12 = vcmp.eq.f32.partialorder %v1487_v48, 0.0 }
  0x9e   : > { %v426_v58 = vsub.f32 1.5, %v425_v53  ;;  %v353_v60 = vmul.f32 0.5, %v352_v54 }
  0x9f   : > { %v1222_v62 = vpop.eup %1221  ;;  %v402_v63 = vsub.f32 1.5, %v401_v56 }
  0xa0   : > { %v1224_v1 = vpop.eup %1223  ;;  %v427_v2 = vmul.f32 %v1216_v41, %v426_v58  ;;  %v354_v7 = vsub.f32 1.5, %v353_v60  ;;  %v435_v9 = vmul.f32 %v1222_v62, %v1481_v44  ;;  %v1511_v11 = vpop.xlane.xlu1 %336 }
  0xa1   : > { %v403_v14 = vmul.f32 %v1218_v42, %v402_v63  ;;  %v411_v16 = vmul.f32 %v1224_v1, %v1483_v45  ;;  %1227 = vrsqrt.f32 %v1511_v11  ;;  %v1516_v17 = vpop.xlane.xlu0 %333  ;;  %v1226_v18 = vpop.eup %1225  ;;  %vm393_vm13 = vcmp.eq.f32.partialorder %v1511_v11, inf }
  0xa2   : > { %v428_v19 = vmul.f32 %v427_v2, %v1468_v36  ;;  %v355_v20 = vmul.f32 %v1220_v46, %v354_v7  ;;  %v436_v21 = vmul.f32 %v1222_v62, %v435_v9  ;;  %v363_v27 = vmul.f32 %v1226_v18, %v1487_v48 }
  0xa3   : > { %v404_v23 = vmul.f32 %v403_v14, %v1470_v37  ;;  %v412_v26 = vmul.f32 %v1224_v1, %v411_v16  ;;  %1229 = vrsqrt.f32 %v1516_v17  ;;  %vm395_vm14 = vcmp.eq.f32.partialorder %v1511_v11, 0.0 }
  0xa4   : > { %v430_v29 = vsel %vm429_vm1, %v1468_v36, %v428_v19  ;;  %v356_v30 = vmul.f32 %v355_v20, %v1474_v39  ;;  %v437_v31 = vmul.f32 0.5, %v436_v21  ;;  %v364_v35 = vmul.f32 %v1226_v18, %v363_v27  ;;  %v1080_v36 = vld [vmem:[%s1418_s24] sm:$0xff]  ;;  %s1075_s24 = sshll.u32 (%p1393_p5), %s849_s14, 2 }
  0xa5   : > { %v433_v32 = vsel %vm431_vm2, %v432_v55, %v430_v29  ;;  %v406_v33 = vsel %vm405_vm3, %v1470_v37, %v404_v23  ;;  %v413_v34 = vmul.f32 0.5, %v412_v26  ;;  %v639_v58 = vsel %vm325_vm0, %v1080_v36, 0  ;;  %s851_s28 = scalar_lea.vmem (%p1393_p5), %s1835_s4, %s1075_s24 }
  0xa6   : > { %v409_v38 = vsel %vm407_vm4, %v408_v59, %v406_v33  ;;  %v358_v40 = vsel %vm357_vm5, %v1474_v39, %v356_v30  ;;  %v438_v41 = vsub.f32 1.5, %v437_v31  ;;  %v365_v49 = vmul.f32 0.5, %v364_v35  ;;  %669 = vmatpush.bf16.xpose.msra.mxu0 %v639_v58  ;;  %1152 = vmatpush.bf16.xpose.msra.mxu2 %v639_v58  ;;  %v305_v30 = vld [vmem:[%s1495_s29 + $0x28] sm:$0xff]  ;;  %v300_v31 = vld [vmem:[%s1495_s29] sm:$0xff] }
  0xa7   : > { %v1228_v42 = vpop.eup %1227  ;;  %v1544_v43 = vmax.f32 %v409_v38, 0.0001  ;;  %v361_v46 = vsel %vm359_vm6, %v360_v8, %v358_v40  ;;  %v414_v47 = vsub.f32 1.5, %v413_v34  ;;  %v1549_v37 = vmax.f32 %v433_v32, 0.0001  ;;  %1153 = vmatpush.bf16.xpose.msra.mxu3 %v639_v58  ;;  %1151 = vmatpush.bf16.xpose.msra.mxu1 %v639_v58 }
  0xa8   : > { %v1551_v50 = vmax.f32 %v361_v46, 0.0001  ;;  %v439_v51 = vmul.f32 %v1222_v62, %v438_v41  ;;  %v387_v52 = vmul.f32 %v1228_v42, %v1511_v11  ;;  %v366_v54 = vsub.f32 1.5, %v365_v49  ;;  %718 = vperm.xlu1 %1213, %v305_v30   ;;  %693 = vperm.xlu2 %1211, %v300_v31  }
  0xa9   : > { %1231 = vrcp.f32 %v1544_v43  ;;  %v415_v53 = vmul.f32 %v1224_v1, %v414_v47  ;;  %v372_v39 = vand.u32 2147483648, %v1487_v48  ;;  %v1230_v55 = vpop.eup %1229  ;;  %v396_v0 = vand.u32 2147483648, %v1511_v11 }
  0xaa   : > { %1233 = vrcp.f32 %v1551_v50  ;;  %v440_v56 = vmul.f32 %v439_v51, %v1481_v44  ;;  %v388_v57 = vmul.f32 %v1228_v42, %v387_v52  ;;  %v367_v60 = vmul.f32 %v1226_v18, %v366_v54 }
  0xab   : > { %v416_v59 = vmul.f32 %v415_v53, %v1483_v45  ;;  %v375_v61 = vmul.f32 %v1230_v55, %v1516_v17  ;;  %1235 = vrcp.f32 %v1549_v37  ;;  %vm381_vm15 = vcmp.eq.f32.partialorder %v1516_v17, inf }
  0xac   : > { %v442_v62 = vsel %vm441_vm7, %v1481_v44, %v440_v56  ;;  %v389_v63 = vmul.f32 0.5, %v388_v57  ;;  %v368_v7 = vmul.f32 %v367_v60, %v1487_v48  ;;  %v384_v16 = vand.u32 2147483648, %v1516_v17 }
  0xad   : > { %v445_v1 = vsel %vm443_vm8, %v444_v15, %v442_v62  ;;  %v418_v2 = vsel %vm417_vm9, %v1483_v45, %v416_v59  ;;  %v376_v8 = vmul.f32 %v1230_v55, %v375_v61  ;;  %vm383_vm1 = vcmp.eq.f32.partialorder %v1516_v17, 0.0 }
  0xae   : > { %v1576_v9 = vmax.f32 %v445_v1, 0.0001  ;;  %v421_v13 = vsel %vm419_vm10, %v420_v22, %v418_v2  ;;  %v390_v14 = vsub.f32 1.5, %v389_v63  ;;  %v370_v18 = vsel %vm369_vm11, %v1487_v48, %v368_v7  ;;  %v307_v1 = vld [vmem:[%s1495_s29 + $0x38] sm:$0xff]  ;;  %v301_v7 = vld [vmem:[%s1495_s29 + $0x8] sm:$0xff] }
  0xaf   : > { %v1582_v44 = vpop.eup %1231  ;;  %v1584_v15 = vmax.f32 %v421_v13, 0.0001  ;;  %v377_v19 = vmul.f32 0.5, %v376_v8  ;;  %v463_v45 = vand.u32 2147483647, %v1551_v50  ;;  %v373_v21 = vsel %vm371_vm12, %v372_v39, %v370_v18  ;;  %v303_v2 = vld [vmem:[%s1495_s29 + $0x18] sm:$0xff]  ;;  %698 = vperm.xlu0 %1212, %v301_v7  }
  0xb0   : > { %v1234_v20 = vpop.eup %1233  ;;  %v391_v22 = vmul.f32 %v1228_v42, %v390_v14  ;;  %v465_v23 = vand.u32 2147483648, %v1551_v50  ;;  %v515_v26 = vmul.f32 %v1582_v44, %v1544_v43  ;;  %v1597_v27 = vmax.f32 %v373_v21, 0.0001  ;;  %728 = vperm.xlu1 %1213, %v307_v1   ;;  %708 = vperm.xlu2 %1211, %v303_v2   ;;  %v306_v1 = vld [vmem:[%s1495_s29 + $0x30] sm:$0xff] }
  0xb1   : > { %1237 = vrcp.f32 %v1584_v15  ;;  %v378_v28 = vsub.f32 1.5, %v377_v19  ;;  %v455_v29 = vmul.f32 %v1234_v20, %v1551_v50  ;;  %v1602_v32 = vpop.eup %1235  ;;  %vm459_vm2 = vweird.f32 %v1551_v50 }
  0xb2   : > { %1239 = vrcp.f32 %v1576_v9  ;;  %v392_v48 = vmul.f32 %v391_v22, %v1511_v11  ;;  %v516_v33 = vsub.f32 1.0, %v515_v26  ;;  %vm1608_vm3 = vcmp.eq.f32.partialorder %v463_v45, 8.507059e+37 }
  0xb3   : > { %1241 = vrcp.f32 %v1597_v27  ;;  %v379_v34 = vmul.f32 %v1230_v55, %v378_v28  ;;  %v456_v35 = vsub.f32 1.0, %v455_v29  ;;  %vm460_vm4 = vweird.f32 %v1234_v20 }
  0xb4   : > { %v394_v40 = vsel %vm393_vm13, %v1511_v11, %v392_v48  ;;  %v480_v41 = vand.u32 2147483648, %v1597_v27  ;;  %v517_v36 = vmul.f32 %v1582_v44, %v516_v33  ;;  %v466_v49 = vor.u32 1.1754944e-38, %v465_v23  ;;  %vm1632_vm6 = vmor %vm459_vm2, %vm460_vm4 }
  0xb5   : > { %v397_v42 = vsel %vm395_vm14, %v396_v0, %v394_v40  ;;  %v380_v46 = vmul.f32 %v379_v34, %v1516_v17  ;;  %v457_v47 = vmul.f32 %v1234_v20, %v456_v35  ;;  %v478_v52 = vand.u32 2147483647, %v1597_v27  ;;  %v304_v34 = vld [vmem:[%s1495_s29 + $0x20] sm:$0xff] }
  0xb6   : > { %v1620_v51 = vmax.f32 %v397_v42, 0.0001  ;;  %v518_v53 = vadd.f32 %v1582_v44, %v517_v36  ;;  %vm519_vm5 = vweird.f32 %v1544_v43  ;;  %vm520_vm7 = vweird.f32 %v1582_v44 }
  0xb7   : > { %v1625_v54 = vpop.eup %1237  ;;  %v382_v39 = vsel %vm381_vm15, %v1516_v17, %v380_v46  ;;  %v458_v11 = vadd.f32 %v1234_v20, %v457_v47  ;;  %v523_v56 = vand.u32 2147483647, %v1544_v43  ;;  %vm474_vm8 = vweird.f32 %v1597_v27  ;;  %vm1643_vm9 = vmor %vm519_vm5, %vm520_vm7 }
  0xb8   : > { %v1638_v57 = vpop.eup %1239  ;;  %v385_v58 = vsel %vm383_vm1, %v384_v16, %v382_v39  ;;  %v481_v59 = vor.u32 1.1754944e-38, %v480_v41  ;;  %v525_v60 = vand.u32 2147483648, %v1544_v43  ;;  %v530_v61 = vmul.f32 %v1625_v54, %v1584_v15  ;;  %713 = vperm.xlu2 %1211, %v304_v34  }
  0xb9   : > { %v1242_v62 = vpop.eup %1241  ;;  %1243 = vrcp.f32 %v1620_v51  ;;  %v1651_v63 = vmax.f32 %v385_v58, 0.0001  ;;  %v462_v17 = vsel %vm1632_vm6, %v1234_v20, %v458_v11  ;;  %v522_v0 = vsel %vm1643_vm9, %v1582_v44, %v518_v53 }
  0xba   : > { %v467_v43 = vsel %vm1608_vm3, %v466_v49, %v462_v17  ;;  %v470_v8 = vmul.f32 %v1242_v62, %v1597_v27  ;;  %vm1664_vm10 = vcmp.eq.f32.partialorder %v478_v52, 8.507059e+37  ;;  %vm524_vm11 = vcmp.eq.f32.partialorder %v523_v56, 8.507059e+37 }
  0xbb   : > { %v526_v14 = vor.u32 1.1754944e-38, %v525_v60  ;;  %1245 = vrcp.f32 %v1651_v63  ;;  %v468_v16 = vmul.f32 10.0, %v467_v43  ;;  %vm475_vm12 = vweird.f32 %v1242_v62 }
  0xbc   : > { %v531_v44 = vsub.f32 1.0, %v530_v61  ;;  %v471_v18 = vsub.f32 1.0, %v470_v8  ;;  %vm534_vm13 = vweird.f32 %v1584_v15  ;;  %v538_v45 = vand.u32 2147483647, %v1584_v15  ;;  %vm476_vm4 = vmor %vm474_vm8, %vm475_vm12 }
  0xbd   : > { %v527_v19 = vsel %vm524_vm11, %v526_v14, %v522_v0  ;;  %vm535_vm14 = vweird.f32 %v1625_v54  ;;  %v540_v22 = vand.u32 2147483648, %v1584_v15  ;;  %v574_v26 = vmul.f32 %v1424_v5, %v468_v16 }
  0xbe   : > { %v528_v20 = vmul.f32 10.0, %v527_v19  ;;  %v532_v21 = vmul.f32 %v1625_v54, %v531_v44  ;;  %v472_v23 = vmul.f32 %v1242_v62, %v471_v18  ;;  %vm1675_vm15 = vcmp.eq.f32.partialorder %v538_v45, 8.507059e+37  ;;  %vm536_vm2 = vmor %vm534_vm13, %vm535_vm14 }
  0xbf   : > { %v545_v29 = vmul.f32 %v1602_v32, %v1549_v37  ;;  %v1681_v30 = vpop.eup %1243  ;;  %v541_v48 = vor.u32 1.1754944e-38, %v540_v22  ;;  %vm549_vm1 = vweird.f32 %v1549_v37  ;;  %vm550_vm3 = vweird.f32 %v1602_v32 }
  0xc0   : > { %v533_v31 = vadd.f32 %v1625_v54, %v532_v21  ;;  %v578_v33 = vmul.f32 %v1422_v4, %v528_v20  ;;  %v473_v35 = vadd.f32 %v1242_v62, %v472_v23  ;;  %v553_v38 = vand.u32 2147483647, %v1549_v37  ;;  %vm551_vm8 = vmor %vm549_vm1, %vm550_vm3  ;;  %723 = vperm.xlu2 %1211, %v306_v1  }
  0xc1   : > { %v546_v5 = vsub.f32 1.0, %v545_v29  ;;  %v1246_v40 = vpop.eup %1245  ;;  %v555_v4 = vand.u32 2147483648, %v1549_v37  ;;  %v560_v36 = vmul.f32 %v1638_v57, %v1576_v9  ;;  %vm564_vm5 = vweird.f32 %v1576_v9 }
  0xc2   : > { %v537_v41 = vsel %vm536_vm2, %v1625_v54, %v533_v31  ;;  %v477_v15 = vsel %vm476_vm4, %v1242_v62, %v473_v35  ;;  %vm565_vm6 = vweird.f32 %v1638_v57  ;;  %vm1705_vm7 = vcmp.eq.f32.partialorder %v553_v38, 8.507059e+37  ;;  %v1769_v35 = vpop.permute.xlu1 %703 }
  0xc3   : > { %v542_v42 = vsel %vm1675_vm15, %v541_v48, %v537_v41  ;;  %v547_v46 = vmul.f32 %v1602_v32, %v546_v5  ;;  %v482_v27 = vsel %vm1664_vm10, %v481_v59, %v477_v15  ;;  %v561_v52 = vsub.f32 1.0, %v560_v36  ;;  %vm566_vm10 = vmor %vm564_vm5, %vm565_vm6 }
  0xc4   : > { %v543_v47 = vmul.f32 10.0, %v542_v42  ;;  %v483_v53 = vmul.f32 10.0, %v482_v27  ;;  %v568_v39 = vand.u32 2147483647, %v1576_v9  ;;  %v570_v11 = vand.u32 2147483648, %v1576_v9 }
  0xc5   : > { %v548_v54 = vadd.f32 %v1602_v32, %v547_v46  ;;  %v556_v56 = vor.u32 1.1754944e-38, %v555_v4  ;;  %v562_v58 = vmul.f32 %v1638_v57, %v561_v52  ;;  %v485_v59 = vmul.f32 %v1246_v40, %v1651_v63 }
  0xc6   : > { %v579_v55 = vmul.f32 %v1434_v10, %v543_v47  ;;  %v575_v50 = vmul.f32 %v1437_v12, %v483_v53  ;;  %vm1721_vm9 = vcmp.eq.f32.partialorder %v568_v39, 8.507059e+37  ;;  %v571_v62 = vor.u32 1.1754944e-38, %v570_v11 }
  0xc7   : > { %v552_v60 = vsel %vm551_vm8, %v1602_v32, %v548_v54  ;;  %v563_v37 = vadd.f32 %v1638_v57, %v562_v58  ;;  %v486_v0 = vsub.f32 1.0, %v485_v59  ;;  %vm490_vm11 = vweird.f32 %v1246_v40 }
  0xc8   : > { %v584_v10 = vpack.c.bf16 %v579_v55, %v578_v33  ;;  %v557_v17 = vsel %vm1705_vm7, %v556_v56, %v552_v60  ;;  %v582_v2 = vpack.c.bf16 %v575_v50, %v574_v26  ;;  %v493_v12 = vand.u32 2147483647, %v1651_v63 }
  0xc9   : > { %v558_v7 = vmul.f32 10.0, %v557_v17  ;;  %v567_v32 = vsel %vm566_vm10, %v1638_v57, %v563_v37  ;;  %v487_v43 = vmul.f32 %v1246_v40, %v486_v0  ;;  %v495_v8 = vand.u32 2147483648, %v1651_v63 }
  0xca   : > { %1071 = vmatmul.msk.bf16.vlgmr.msra.gmra.mxu2 %vm325_vm0, %v584_v10  ;;  %v500_v13 = vmul.f32 %v1681_v30, %v1620_v51  ;;  %1069 = vmatmul.msk.bf16.vlgmr.msra.gmra.mxu0 %vm325_vm0, %v582_v2  ;;  %v572_v14 = vsel %vm1721_vm9, %v571_v62, %v567_v32  ;;  %vm489_vm12 = vweird.f32 %v1651_v63  ;;  %vm494_vm14 = vcmp.eq.f32.partialorder %v493_v12, 8.507059e+37 }
  0xcb   : > { %v573_v9 = vmul.f32 10.0, %v572_v14  ;;  %v580_v16 = vmul.f32 %v1420_v3, %v558_v7  ;;  %v488_v44 = vadd.f32 %v1246_v40, %v487_v43  ;;  %vm491_vm13 = vmor %vm489_vm12, %vm490_vm11  ;;  %v496_v57 = vor.u32 1.1754944e-38, %v495_v8 }
  0xcc   : > { %v501_v18 = vsub.f32 1.0, %v500_v13  ;;  %vm505_vm15 = vweird.f32 %v1681_v30  ;;  %v510_v19 = vand.u32 2147483648, %v1620_v51  ;;  %v508_v63 = vand.u32 2147483647, %v1620_v51 }
  0xcd   : > { %v581_v45 = vmul.f32 %v1426_v6, %v573_v9  ;;  %v492_v20 = vsel %vm491_vm13, %v1246_v40, %v488_v44  ;;  %vm504_vm1 = vweird.f32 %v1620_v51 }
  0xce   : > { %v502_v21 = vmul.f32 %v1681_v30, %v501_v18  ;;  %v497_v22 = vsel %vm494_vm14, %v496_v57, %v492_v20  ;;  %vm506_vm2 = vmor %vm504_vm1, %vm505_vm15  ;;  %v511_v28 = vor.u32 1.1754944e-38, %v510_v19  ;;  %vm509_vm3 = vcmp.eq.f32.partialorder %v508_v63, 8.507059e+37 }
  0xcf   : > { %v585_v3 = vpack.c.bf16 %v581_v45, %v580_v16  ;;  %v498_v23 = vmul.f32 10.0, %v497_v22 }
  0xd0   : > { %v503_v26 = vadd.f32 %v1681_v30, %v502_v21 }
  0xd1   : > { %1072 = vmatmul.msk.bf16.vlgmr.msra.gmra.mxu3 %vm325_vm0, %v585_v3  ;;  %v576_v48 = vmul.f32 %v1454_v25, %v498_v23 }
  0xd2   : > { %v507_v6 = vsel %vm506_vm2, %v1681_v30, %v503_v26 }
  0xd3   : > { %v512_v29 = vsel %vm509_vm3, %v511_v28, %v507_v6 }
  0xd4   : > { %v513_v31 = vmul.f32 10.0, %v512_v29 }
  0xd6   : > { %v577_v33 = vmul.f32 %v1452_v24, %v513_v31 }
  0xd8   : > { %v583_v34 = vpack.c.bf16 %v577_v33, %v576_v48 }
  0xda   : > { %1070 = vmatmul.msk.bf16.vlgmr.msra.gmra.mxu1 %vm325_vm0, %v583_v34 }
 0x102   : > { %v1765_v51 = vpop.permute.xlu2 %693 }
 0x10a   : > { %v1767_v30 = vpop.permute.xlu2 %708 }
 0x112   : > { %v1771_v24 = vpop.permute.xlu2 %713 }
 0x11a   : > { %v1773_v38 = vpop.permute.xlu1 %718  ;;  %v1778_v27 = vpop.permute.xlu2 %723 }
 0x121   : > { %v1775_v36 = vpop.permute.xlu0 %698 }
 0x122   : > { %v1783_v53 = vpop.permute.xlu1 %728 }
 0x147   : > { %v671_v5 = vpop.f32.mrf.mxu0 }
 0x148   : > { %v731_v54 = vmul.f32 %v1765_v51, %v671_v5 }
 0x14d   : > { %v681_v25 = vpop.f32.mrf.mxu2 }
 0x14e   : > { %v735_v47 = vmul.f32 %v1771_v24, %v681_v25 }
 0x14f   : > { %v673_v15 = vpop.f32.mrf.mxu0 }
 0x150   : > { %v732_v52 = vmul.f32 %v1775_v36, %v673_v15  ;;  %v739_v59 = vmax.f32 %v731_v54, %v735_v47 }
 0x154   : > { %v686_v40 = vpop.f32.mrf.mxu3 }
 0x155   : > { %v683_v4 = vpop.f32.mrf.mxu2  ;;  %v737_v11 = vmul.f32 %v1778_v27, %v686_v40 }
 0x156   : > { %v736_v42 = vmul.f32 %v1773_v38, %v683_v4 }
 0x157   : > { %v676_v41 = vpop.f32.mrf.mxu1 }
 0x158   : > { %v733_v49 = vmul.f32 %v1769_v35, %v676_v41  ;;  %v740_v55 = vmax.f32 %v732_v52, %v736_v42 }
 0x15a   : > { %v741_v50 = vmax.f32 %v733_v49, %v737_v11  ;;  %v743_v61 = vmax.f32 %v739_v59, %v740_v55 }
 0x15c   : > { %v688_v46 = vpop.f32.mrf.mxu3 }
 0x15d   : > { %v738_v56 = vmul.f32 %v1783_v53, %v688_v46 }
 0x15f   : > { %v678_v39 = vpop.f32.mrf.mxu1 }
 0x160   : > { %v734_v58 = vmul.f32 %v1767_v30, %v678_v39 }
 0x162   : > { %v742_v60 = vmax.f32 %v734_v58, %v738_v56 }
 0x164   : > { %v744_v62 = vmax.f32 %v741_v50, %v742_v60 }
 0x166   : > { %v745_v10 = vmax.f32 %v743_v61, %v744_v62 }
 0x168   : > { %v746_v17 = vrot.slane %v745_v10, 4 }
 0x16a   : > { %v747_v37 = vmax.f32 %v745_v10, %v746_v17  ;;  %v1214_v17 = vld [vmem:[%s275_s8] ss:$0 sm:$0xff] }
 0x16c   : > { %v748_v0 = vrot.slane %v747_v37, 2 }
 0x16e   : > { %v749_v1 = vmax.f32 %v747_v37, %v748_v0 }
 0x170   : > { %v750_v2 = vrot.slane %v749_v1, 1 }
 0x172   : > { %v751_v7 = vmax.f32 %v749_v1, %v750_v2 }
 0x174   : > { %v752_v12 = vsub.f32 %v731_v54, %v751_v7  ;;  %v753_v32 = vsub.f32 %v732_v52, %v751_v7  ;;  %v754_v43 = vsub.f32 %v733_v49, %v751_v7  ;;  %v755_v8 = vsub.f32 %v734_v58, %v751_v7 }
 0x175   : > { %v756_v9 = vsub.f32 %v735_v47, %v751_v7  ;;  %v757_v44 = vsub.f32 %v736_v42, %v751_v7  ;;  %v758_v57 = vsub.f32 %v737_v11, %v751_v7  ;;  %v759_v45 = vsub.f32 %v738_v56, %v751_v7 }
 0x176   : > { %v760_v13 = vmul.f32 1.442695, %v752_v12  ;;  %v762_v14 = vmul.f32 1.442695, %v753_v32  ;;  %v764_v16 = vmul.f32 1.442695, %v754_v43 }
 0x177   : > { %v766_v18 = vmul.f32 1.442695, %v755_v8  ;;  %v768_v19 = vmul.f32 1.442695, %v756_v9  ;;  %v770_v20 = vmul.f32 1.442695, %v757_v44 }
 0x178   : > { %1247 = vpow2.f32 %v760_v13  ;;  %v772_v22 = vmul.f32 1.442695, %v758_v57  ;;  %v774_v26 = vmul.f32 1.442695, %v759_v45 }
 0x179   : > { %1249 = vpow2.f32 %v762_v14 }
 0x17a   : > { %1251 = vpow2.f32 %v764_v16 }
 0x17b   : > { %1253 = vpow2.f32 %v766_v18 }
 0x17c   : > { %1255 = vpow2.f32 %v768_v19 }
 0x17d   : > { %1257 = vpow2.f32 %v770_v20 }
 0x17e   : > { %v1248_v21 = vpop.eup %1247  ;;  %1259 = vpow2.f32 %v772_v22 }
 0x17f   : > { %v1250_v63 = vpop.eup %1249  ;;  %1261 = vpow2.f32 %v774_v26 }
 0x180   : > { %v776_v3 = vadd.f32 %v1250_v63, %v1248_v21  ;;  %v1252_v23 = vpop.eup %1251 }
 0x181   : > { %v1254_v6 = vpop.eup %1253 }
 0x182   : > { %v777_v28 = vadd.f32 %v1252_v23, %v776_v3  ;;  %v1256_v31 = vpop.eup %1255 }
 0x183   : > { %v1258_v33 = vpop.eup %1257 }
 0x184   : > { %v778_v29 = vadd.f32 %v1254_v6, %v777_v28  ;;  %v1260_v25 = vpop.eup %1259 }
 0x185   : > { %v1262_v40 = vpop.eup %1261 }
 0x186   : > { %v779_v48 = vadd.f32 %v1256_v31, %v778_v29 }
 0x188   : > { %v780_v34 = vadd.f32 %v1258_v33, %v779_v48 }
 0x18a   : > { %v781_v5 = vadd.f32 %v1260_v25, %v780_v34 }
 0x18c   : > { %v782_v41 = vadd.f32 %v1262_v40, %v781_v5 }
 0x18e   : > { %v783_v4 = vrot.slane %v782_v41, 4 }
 0x190   : > { %v784_v15 = vadd.f32 %v783_v4, %v782_v41 }
 0x192   : > { %v785_v42 = vrot.slane %v784_v15, 2 }
 0x194   : > { %v786_v46 = vadd.f32 %v785_v42, %v784_v15 }
 0x196   : > { %v787_v47 = vrot.slane %v786_v46, 1 }
 0x198   : > { %v788_v49 = vadd.f32 %v787_v47, %v786_v46 }
 0x19a   : > { %1263 = vrcp.f32 %v788_v49 }
 0x1a0   : > { %v1264_v52 = vpop.eup %1263 }
 0x1a1   : > { %v790_v54 = vmul.f32 %v1264_v52, %v1248_v21  ;;  %v791_v39 = vmul.f32 %v1264_v52, %v1250_v63  ;;  %v792_v11 = vmul.f32 %v1264_v52, %v1252_v23  ;;  %v793_v55 = vmul.f32 %v1264_v52, %v1254_v6 }
 0x1a2   : > { %v794_v56 = vmul.f32 %v1264_v52, %v1256_v31  ;;  %v795_v58 = vmul.f32 %v1264_v52, %v1258_v33  ;;  %v796_v59 = vmul.f32 %v1264_v52, %v1260_v25  ;;  %v797_v50 = vmul.f32 %v1264_v52, %v1262_v40 }
 0x1a3   : > { %v798_v60 = vmul.f32 %v790_v54, %v1765_v51  ;;  %v799_v61 = vmul.f32 %v791_v39, %v1775_v36  ;;  %v800_v62 = vmul.f32 %v792_v11, %v1769_v35  ;;  %v801_v10 = vmul.f32 %v793_v55, %v1767_v30 }
 0x1a4   : > { %v802_v37 = vmul.f32 %v794_v56, %v1771_v24  ;;  %v803_v0 = vmul.f32 %v795_v58, %v1773_v38  ;;  %v804_v1 = vmul.f32 %v796_v59, %v1778_v27  ;;  %v805_v51 = vmul.f32 %v797_v50, %v1783_v53 }
 0x1a5   : > { %v806_v2 = vmax.f32 %v798_v60, 1e-08  ;;  %v807_v36 = vmax.f32 %v799_v61, 1e-08  ;;  %v808_v7 = vmax.f32 %v800_v62, 1e-08 }
 0x1a6   : > { %v809_v35 = vmax.f32 %v801_v10, 1e-08  ;;  %v810_v12 = vmax.f32 %v802_v37, 1e-08  ;;  %v811_v30 = vmax.f32 %v803_v0, 1e-08 }
 0x1a7   : > { %v812_v32 = vmax.f32 %v804_v1, 1e-08  ;;  %v813_v43 = vmax.f32 %v805_v51, 1e-08  ;;  %v817_v8 = vmul.f32 %v1214_v17, %v806_v2  ;;  %v818_v13 = vmul.f32 %v1214_v17, %v807_v36 }
 0x1a8   : > { %v819_v14 = vmul.f32 %v1214_v17, %v808_v7  ;;  %v820_v9 = vmul.f32 %v1214_v17, %v809_v35  ;;  %v821_v16 = vmul.f32 %v1214_v17, %v810_v12  ;;  %v822_v24 = vmul.f32 %v1214_v17, %v811_v30 }
 0x1a9   : > { %v823_v44 = vmul.f32 %v1214_v17, %v812_v32  ;;  %v824_v38 = vmul.f32 %v1214_v17, %v813_v43  ;;  %v1107_v18 = vpack.c.bf16 %v818_v13, %v817_v8 }
 0x1aa   : > { %v1112_v27 = vpack.c.bf16 %v820_v9, %v819_v14  ;;  %v1117_v57 = vpack.c.bf16 %v822_v24, %v821_v16  ;;  %847 = sbr.rel (!%p1393_p5) target bundleno = 443 (0x1bb), region = 40 }
 0x1ab   : > { %1108 = vst [vmem:[%s252_s12] sm:$0xff] %v1107_v18   ;;  %v1122_v53 = vpack.c.bf16 %v824_v38, %v823_v44 }
 0x1ac   : > { %1127 = vst [vmem:[%s252_s12 + $0x8] sm:$0xff] %v1112_v27  }
 0x1ad   : > { %1128 = vst [vmem:[%s252_s12 + $0x10] sm:$0xff] %v1117_v57  }
 0x1ae   : > { %1129 = vst [vmem:[%s252_s12 + $0x18] sm:$0xff] %v1122_v53  }
 0x1b2   : > { %v868_v19 = vld [vmem:[%s252_s12] sm:$0xf]  ;;  %v870_v45 = vld [vmem:[%s252_s12 + $0x4] sm:$0xf] }
 0x1b3   : > { %v872_v20 = vld [vmem:[%s252_s12 + $0x8] sm:$0xf]  ;;  %869 = vst [vmem:[%s851_s28] sm:$0xf] %v868_v19  ;;  %v874_v21 = vld [vmem:[%s252_s12 + $0xc] sm:$0xf] }
 0x1b4   : > { %871 = vst [vmem:[%s851_s28 + $0x8] sm:$0xf] %v870_v45  ;;  %v876_v63 = vld [vmem:[%s252_s12 + $0x10] sm:$0xf]  ;;  %v878_v22 = vld [vmem:[%s252_s12 + $0x14] sm:$0xf] }
 0x1b5   : > { %873 = vst [vmem:[%s851_s28 + $0x10] sm:$0xf] %v872_v20  ;;  %v880_v3 = vld [vmem:[%s252_s12 + $0x18] sm:$0xf]  ;;  %v882_v23 = vld [vmem:[%s252_s12 + $0x1c] sm:$0xf] }
 0x1b6   : > { %875 = vst [vmem:[%s851_s28 + $0x18] sm:$0xf] %v874_v21 }
 0x1b7   : > { %877 = vst [vmem:[%s851_s28 + $0x20] sm:$0xf] %v876_v63 }
 0x1b8   : > { %879 = vst [vmem:[%s851_s28 + $0x28] sm:$0xf] %v878_v22 }
 0x1b9   : > { %881 = vst [vmem:[%s851_s28 + $0x30] sm:$0xf] %v880_v3 }
 0x1ba   : > { %883 = vst [vmem:[%s851_s28 + $0x38] sm:$0xf] %v882_v23 }
 0x1bb PF: > { %s14_s21 = sadd.s32 1, %s1319_s21   ;;  %s1851_s15 = smov %s1299_s16 }
 0x1bc   : > { %p11_p12 = scmp.ge.s32.totalorder %s14_s21, 6   ;;  %s1852_s16 = smov %s1404_s30 }
 0x1bd   : > { %s1853_s17 = smov %s1311_s19  ;;  %s1854_s18 = smov %s1315_s20 }
 0x1be   : > { %s1855_s19 = smov %s1858_s22  ;;  %s1856_s20 = smov %s1862_s23 }
 0x1bf   :  { %13 = sbr.rel (!%p11_p12) target bundleno = 4 (0x4), region = 116 }

// kernel: attention_conv_forward.5
= control target key start
LH: loop header
LB: loop body
LE: loop exit
PB: predicated region body
PF: predicated region fallthrough
CT: control target
= control target key end

     0   :  { %s1753_s12 = smov 0   ;;  %s2735_s0 = inlined_call_operand.vmem [shape: bf16[2,4,1056], index: 0, kind: input, shape index: {}]   ;;  %s2736_s1 = inlined_call_operand.vmem [shape: bf16[72,4], index: 1, kind: input, shape index: {}]   ;;  %s2737_s2 = inlined_call_operand.vmem [shape: f32[8,1], index: 2, kind: input, shape index: {}]   ;;  %s2738_s3 = inlined_call_operand.vmem [shape: f32[2,8,512], index: 3, kind: output, shape index: {}]  }
   0x1 LB: > { %s1601_s13 = sadd.s32 4294967295, %s1714_s12   ;;  %p1605_p0 = scmp.ge.s32.totalorder %s1714_s12, 1  ;;  %s1714_s12 = sphi %s1753_s12, %s13_s12  }
   0x2   : > { %p137_p1 = scmp.lt.s32.totalorder %s1714_s12, 3 }
   0x4   : > { %p138_p2 = pnand %p1605_p0, %p137_p1 }
   0x6   : > { %141 = sbr.rel (%p138_p2) target bundleno = 892 (0x37c), region = 32 }
   0xb   : > { %p161_p3 = scmp.lt.s32.totalorder %s1601_s13, 1  ;;  %v180_v2 = vld [vmem:[%s2736_s1 + $0x20] sm:$0xf]  ;;  %vm239_vm0 = vcmask 1041408   ;;  %v1779_v9 = vld [vmem:[%s2736_s1 + $0x8] sm:$0xff]  ;;  %vm223_vm1 = vcmask 31744  }
   0xc   : > { %v201_v3 = vunpack.c.l.b16 %v180_v2  ;;  %v1773_v4 = vld [vmem:[%s2736_s1] sm:$0xff]  ;;  %v1794_v18 = vld [vmem:[%s2736_s1 + $0x10] sm:$0xff]  ;;  %v1807_v19 = vld [vmem:[%s2736_s1 + $0x18] sm:$0xff]  ;;  %s1716_s28 = smov 126   ;;  %s1717_s29 = smov 127   ;;  %vm555_vm2 = vcmask 1039360  }
   0xd   : > { %s2819_s13 = smov (!%p161_p3, %s1601_s13), 1  ;;  %s1718_s30 = smov 96   ;;  %vm585_vm3 = vcmask 1031168   ;;  %vm616_vm4 = vcmask 785408   ;;  %vm646_vm5 = vcmask 777216   ;;  %vm676_vm6 = vcmask 769024  }
   0xe   : > { %s1680_s14 = smul.u32 18, %s2819_s13  ;;  %v1782_v12 = vpack.c.b16 %v201_v3, %v201_v3  ;;  %s1719_s4 = smov 64   ;;  %vm706_vm7 = vcmask 523264   ;;  %vm736_vm8 = vcmask 515072   ;;  %vm766_vm9 = vcmask 506880  }
   0xf   : > { %s1720_s5 = smov 95   ;;  %s1721_s6 = smov 94   ;;  %vm831_vm10 = vcmask 1014784   ;;  %vm919_vm11 = vcmask 490496   ;;  %vm1062_vm12 = vcmask 982016   ;;  %vm1270_vm13 = vcmask 916480  }
  0x10   : > { %s165_s17 = scalar_lea.vmem %s2735_s0, %s1680_s14  ;;  %s1722_s7 = smov 63   ;;  %vm1429_vm14 = vcmask 269312   ;;  %vm1454_vm15 = vcmask 809984  }
  0x11   : > { %v181_v0 = vld [vmem:[%s165_s17] sm:$0xff]  ;;  %v182_v1 = vld [vmem:[%s165_s17 + $0x8] sm:$0xff]  ;;  %v183_v5 = vld [vmem:[%s165_s17 + $0x10] sm:$0x3]  ;;  %s1723_s8 = smov 120   ;;  %s1724_s9 = smov 124  }
  0x12   : > { %208 = vst [vmem:[#allocation1] ss:$4 sm:$0xff] %v181_v0  ;;  %s1725_s10 = smov 112   ;;  %s1726_s11 = smov 62  }
  0x13   : > { %211 = vst [vmem:[#allocation1 + $0x20] ss:$4 sm:$0xff] %v182_v1  ;;  %s1727_s14 = smov 60   ;;  %s1728_s15 = smov 99  }
  0x14   : > { %s1729_s16 = smov 33   ;;  %s1731_s17 = smov 103  }
  0x15   : > { %s1732_s20 = smov 25   ;;  %s1672_s21 = sshll.u32 %s2819_s13, 5 }
  0x16   : > { %s170_s24 = scalar_lea.vmem %s2738_s3, %s1672_s21 }
  0x19   : > { %v212_v6 = vld.sshfl [vmem:[#allocation1] sm:$0xff pattern:$0x73625140]  ;;  %v215_v7 = vld.sshfl [vmem:[#allocation1 + $0x18] sm:$0xff pattern:$0x73625140] }
  0x1a   : > { %v240_v8 = vsel %vm239_vm0, %v212_v6, 0  ;;  %v216_v10 = vld.sshfl [vmem:[#allocation1 + $0x20] sm:$0xff pattern:$0x73625140]  ;;  %v246_v11 = vsel %vm239_vm0, %v215_v7, 0 }
  0x1b   : > { %265 = vmatpush.bf16.msra.mxu0 %v240_v8  ;;  %1677 = vmatpush.bf16.msra.mxu1 %v240_v8  ;;  %v248_v13 = vsel %vm239_vm0, %v216_v10, 0  ;;  %v213_v14 = vld.sshfl [vmem:[#allocation1 + $0x8] sm:$0xff pattern:$0x73625140] }
  0x1c   : > { %1679 = vmatpush.bf16.msra.mxu3 %v240_v8  ;;  %v242_v15 = vsel %vm239_vm0, %v213_v14, 0  ;;  %v214_v16 = vld.sshfl [vmem:[#allocation1 + $0x10] sm:$0xff pattern:$0x73625140]  ;;  %1678 = vmatpush.bf16.msra.mxu2 %v240_v8 }
  0x1d   : > { %221 = vst [vmem:[#allocation1] ss:$4 sm:$0xff] %v183_v5  ;;  %v244_v17 = vsel %vm239_vm0, %v214_v16, 0  ;;  %v217_v20 = vld.sshfl [vmem:[#allocation1 + $0x28] sm:$0xff pattern:$0x73625140] }
  0x1e   : > { %1625 = vmatmul.msk.bf16.vlgmr.msra.gmra.mxu0 %vm223_vm1, %v1773_v4  ;;  %1626 = vmatmul.msk.bf16.vlgmr.msra.gmra.mxu1 %vm223_vm1, %v1779_v9  ;;  %v250_v21 = vsel %vm239_vm0, %v217_v20, 0  ;;  %v218_v22 = vld.sshfl [vmem:[#allocation1 + $0x30] sm:$0xff pattern:$0x73625140] }
  0x1f   : > { %387 = vmatpush.bf16.msrb.mxu0 %v248_v13  ;;  %291 = vmatpush.bf16.msrb.mxu1 %v242_v15  ;;  %v252_v25 = vsel %vm239_vm0, %v218_v22, 0  ;;  %v219_v37 = vld.sshfl [vmem:[#allocation1 + $0x38] sm:$0xff pattern:$0x73625140] }
  0x20   : > { %354 = vmatpush.bf16.msrb.mxu3 %v246_v11  ;;  %321 = vmatpush.bf16.msrb.mxu2 %v244_v17  ;;  %v254_v38 = vsel %vm239_vm0, %v219_v37, 0 }
  0x21   : > { %1629 = vmatmul.msk.bf16.vlgmr.msra.gmra.mxu3 %vm223_vm1, %v1782_v12  ;;  %1627 = vmatmul.msk.bf16.vlgmr.msra.gmra.mxu2 %vm223_vm1, %v1794_v18 }
  0x23   : > { %420 = vmatpush.bf16.msra.mxu1 %v250_v21 }
  0x24   : > { %453 = vmatpush.bf16.msra.mxu2 %v252_v25  ;;  %486 = vmatpush.bf16.msra.mxu3 %v254_v38  ;;  %v222_v0 = vld.sshfl [vmem:[#allocation1] sm:$0xff pattern:$0x73625140] }
  0x25   : > { %v256_v1 = vsel %vm239_vm0, %v222_v0, 0 }
  0x26   : > { %512 = vmatpush.bf16.msra.mxu0 %v256_v1 }
  0x2e   : > { %1630 = vmatmul.msk.bf16.vlgmr.msrb.gmra.mxu1 %vm223_vm1, %v1773_v4  ;;  %1645 = vmatmul.msk.bf16.vlgmr.msrb.gmra.mxu0 %vm223_vm1, %v1773_v4 }
  0x31   : > { %1640 = vmatmul.msk.bf16.vlgmr.msrb.gmra.mxu3 %vm223_vm1, %v1773_v4  ;;  %1628 = vmatmul.msk.bf16.gmra.mxu2 %vm223_vm1, %v1807_v19 }
  0x3e   : > { %1631 = vmatmul.msk.bf16.gmra.mxu1 %vm223_vm1, %v1779_v9  ;;  %1646 = vmatmul.msk.bf16.gmra.mxu0 %vm223_vm1, %v1779_v9 }
  0x41   : > { %1641 = vmatmul.msk.bf16.gmra.mxu3 %vm223_vm1, %v1779_v9  ;;  %1635 = vmatmul.msk.bf16.vlgmr.msrb.gmra.mxu2 %vm223_vm1, %v1773_v4 }
  0x4e   : > { %1647 = vmatmul.msk.bf16.gmra.mxu0 %vm223_vm1, %v1794_v18  ;;  %1632 = vmatmul.msk.bf16.gmra.mxu1 %vm223_vm1, %v1794_v18 }
  0x51   : > { %1642 = vmatmul.msk.bf16.gmra.mxu3 %vm223_vm1, %v1794_v18  ;;  %1636 = vmatmul.msk.bf16.gmra.mxu2 %vm223_vm1, %v1779_v9 }
  0x5e   : > { %1633 = vmatmul.msk.bf16.gmra.mxu1 %vm223_vm1, %v1807_v19  ;;  %1648 = vmatmul.msk.bf16.gmra.mxu0 %vm223_vm1, %v1807_v19 }
  0x61   : > { %1643 = vmatmul.msk.bf16.gmra.mxu3 %vm223_vm1, %v1807_v19  ;;  %1637 = vmatmul.msk.bf16.gmra.mxu2 %vm223_vm1, %v1794_v18 }
  0x6e   : > { %1634 = vmatmul.msk.bf16.gmra.mxu1 %vm223_vm1, %v1782_v12  ;;  %1649 = vmatmul.msk.bf16.gmra.mxu0 %vm223_vm1, %v1782_v12 }
  0x71   : > { %1644 = vmatmul.msk.bf16.gmra.mxu3 %vm223_vm1, %v1782_v12  ;;  %1638 = vmatmul.msk.bf16.gmra.mxu2 %vm223_vm1, %v1807_v19 }
  0x7e   : > { %1650 = vmatmul.msk.bf16.vlgmr.msra.gmra.mxu1 %vm223_vm1, %v1773_v4  ;;  %1665 = vmatmul.msk.bf16.vlgmr.msra.gmra.mxu0 %vm223_vm1, %v1773_v4 }
  0x81   : > { %1639 = vmatmul.msk.bf16.gmra.mxu2 %vm223_vm1, %v1782_v12  ;;  %1660 = vmatmul.msk.bf16.vlgmr.msra.gmra.mxu3 %vm223_vm1, %v1773_v4 }
  0x8e   : > { %1651 = vmatmul.msk.bf16.gmra.mxu1 %vm223_vm1, %v1779_v9  ;;  %1666 = vmatmul.msk.bf16.gmra.mxu0 %vm223_vm1, %v1779_v9 }
  0x91   : > { %1655 = vmatmul.msk.bf16.vlgmr.msra.gmra.mxu2 %vm223_vm1, %v1773_v4  ;;  %1661 = vmatmul.msk.bf16.gmra.mxu3 %vm223_vm1, %v1779_v9 }
  0x9b   : > { %v267_v23 = vpop.f32.mrf.mxu0  ;;  %v270_v24 = vpop.f32.mrf.mxu1 }
  0x9e   : > { %1652 = vmatmul.msk.bf16.gmra.mxu1 %vm223_vm1, %v1794_v18  ;;  %1667 = vmatmul.msk.bf16.gmra.mxu0 %vm223_vm1, %v1794_v18 }
  0xa1   : > { %1656 = vmatmul.msk.bf16.gmra.mxu2 %vm223_vm1, %v1779_v9  ;;  %1662 = vmatmul.msk.bf16.gmra.mxu3 %vm223_vm1, %v1794_v18 }
  0xa3   : > { %v268_v27 = vpop.f32.mrf.mxu0  ;;  %v271_v28 = vpop.f32.mrf.mxu1 }
  0xa4   : > { %v281_v26 = vpop.f32.mrf.mxu3  ;;  %v273_v29 = vpop.f32.mrf.mxu2 }
  0xab   : > { %v1857_v31 = vpop.f32.mrf.mxu1  ;;  %v1859_v32 = vpop.f32.mrf.mxu0 }
  0xac   : > { %v282_v30 = vpop.f32.mrf.mxu3  ;;  %v570_v33 = vrot.slane %v1857_v31, 4  ;;  %v540_v34 = vrot.slane %v1857_v31, 2  ;;  %v543_v35 = vrot.slane %v1859_v32, 2  ;;  %v274_v36 = vpop.f32.mrf.mxu2  ;;  %v603_v42 = vrot.slane %v1859_v32, 6 }
  0xad   : > { %v573_v43 = vrot.slane %v1859_v32, 4 }
  0xae   : > { %575 = vrot.lane.b32.xlu2 %v570_v33, %s1716_s28  ;;  %545 = vrot.lane.b32.xlu0 %v540_v34, %s1717_s29 }
  0xaf   : > { %551 = vrot.lane.b32.xlu1 %v543_v35, %s1717_s29  ;;  %1653 = vmatmul.msk.bf16.gmra.mxu1 %vm223_vm1, %v1807_v19 }
  0xb0   : > { %1668 = vmatmul.msk.bf16.gmra.mxu0 %vm223_vm1, %v1807_v19 }
  0xb1   : > { %1657 = vmatmul.msk.bf16.gmra.mxu2 %vm223_vm1, %v1794_v18  ;;  %1663 = vmatmul.msk.bf16.gmra.mxu3 %vm223_vm1, %v1807_v19 }
  0xb3   : > { %v295_v40 = vpop.f32.mrf.mxu1  ;;  %v391_v44 = vpop.f32.mrf.mxu0 }
  0xb4   : > { %v1870_v39 = vpop.f32.mrf.mxu3  ;;  %v693_v47 = vrot.slane %v391_v44, 4  ;;  %v1889_v49 = vpop.f32.mrf.mxu2  ;;  %v663_v53 = vrot.slane %v391_v44, 2  ;;  %v723_v56 = vrot.slane %v391_v44, 6 }
  0xb5   : > { %v542_v41 = vrot.slane %v1870_v39, 2  ;;  %v602_v46 = vrot.slane %v1870_v39, 6  ;;  %v572_v48 = vrot.slane %v1870_v39, 4 }
  0xb6   : > { %610 = vrot.lane.b32.xlu0 %v603_v42, %s1718_s30  ;;  %581 = vrot.lane.b32.xlu2 %v573_v43, %s1716_s28 }
  0xb7   : > { %549 = vrot.lane.b32.xlu1 %v542_v41, %s1717_s29 }
  0xbb   : > { %v1882_v45 = vpop.f32.mrf.mxu1  ;;  %v1911_v60 = vpop.f32.mrf.mxu0 }
  0xbc   : > { %v358_v50 = vpop.f32.mrf.mxu3  ;;  %v278_v54 = vpop.f32.mrf.mxu2  ;;  %v816_v57 = vrot.slane %v1882_v45, 4  ;;  %2762 = vst [vmem:[#allocation2_spill] sm:$0xff] %v1911_v60  ;;  %v819_v61 = vrot.slane %v1911_v60, 4  ;;  %v787_v3 = vrot.slane %v1882_v45, 2  ;;  %v790_v10 = vrot.slane %v1911_v60, 2 }
  0xbd   : > { %v662_v52 = vrot.slane %v358_v50, 2  ;;  %v1228_v55 = vrot.slane %v278_v54, 2  ;;  %v692_v58 = vrot.slane %v358_v50, 4  ;;  %v722_v59 = vrot.slane %v358_v50, 6 }
  0xbe   : > { %608 = vrot.lane.b32.xlu2 %v602_v46, %s1718_s30  ;;  %700 = vrot.lane.b32.xlu0 %v693_v47, %s1719_s4  ;;  %v1255_v62 = vrot.slane %v278_v54, 4 }
  0xbf   : > { %579 = vrot.lane.b32.xlu1 %v572_v48, %s1716_s28  ;;  %1654 = vmatmul.msk.bf16.gmra.mxu1 %vm223_vm1, %v1782_v12 }
  0xc0   : > { %1669 = vmatmul.msk.bf16.gmra.mxu0 %vm223_vm1, %v1782_v12 }
  0xc1   : > { %1658 = vmatmul.msk.bf16.gmra.mxu2 %vm223_vm1, %v1807_v19  ;;  %1664 = vmatmul.msk.bf16.gmra.mxu3 %vm223_vm1, %v1782_v12 }
  0xc3   : > { %v299_v51 = vpop.f32.mrf.mxu1  ;;  %v1933_v5 = vpop.f32.mrf.mxu0 }
  0xc4   : > { %v1918_v63 = vpop.f32.mrf.mxu3  ;;  %2763 = vst [vmem:[#allocation3_spill] sm:$0xff] %v1933_v5  ;;  %v1935_v6 = vpop.f32.mrf.mxu2  ;;  %v906_v8 = vrot.slane %v1933_v5, 2  ;;  %v853_v9 = vrot.slane %v1933_v5, 6 }
  0xc5   : > { %v818_v2 = vrot.slane %v1918_v63, 4  ;;  %v541_v7 = vrot.slane %v1935_v6, 2  ;;  %v571_v4 = vrot.slane %v1935_v6, 4  ;;  %v601_v13 = vrot.slane %v1935_v6, 6 }
  0xc6   : > { %640 = vrot.lane.b32.xlu2 %v391_v44, %s1720_s5  ;;  %668 = vrot.lane.b32.xlu0 %v662_v52, %s1721_s6  ;;  %v789_v15 = vrot.slane %v1918_v63, 2 }
  0xc7   : > { %670 = vrot.lane.b32.xlu1 %v663_v53, %s1721_s6 }
  0xcb   : > { %v1980_v24 = vpop.f32.mrf.mxu0  ;;  %v1983_v26 = vpop.f32.mrf.mxu1 }
  0xcc   : > { %v1948_v11 = vpop.f32.mrf.mxu3  ;;  %v325_v14 = vpop.f32.mrf.mxu2  ;;  %2765 = vst [vmem:[#allocation5_spill] sm:$0xff] %v1980_v24  ;;  %v956_v27 = vrot.slane %v1980_v24, 6 }
  0xcd   : > { %v661_v16 = vrot.slane %v325_v14, 2  ;;  %v691_v20 = vrot.slane %v325_v14, 4  ;;  %v905_v23 = vrot.slane %v1948_v11, 2  ;;  %v721_v28 = vrot.slane %v325_v14, 6 }
  0xce   : > { %730 = vrot.lane.b32.xlu2 %v723_v56, %s1722_s7  ;;  %1233 = vrot.lane.b32.xlu0 %v1228_v55, %s1723_s8  ;;  %v852_v34 = vrot.slane %v1948_v11, 6  ;;  %v1016_v56 = vrot.slane %v1980_v24, 2 }
  0xcf   : > { %638 = vrot.lane.b32.xlu1 %v358_v50, %s1720_s5 }
  0xd1   : > { %1659 = vmatmul.msk.bf16.gmra.mxu2 %vm223_vm1, %v1782_v12  ;;  %v1013_v12 = vrot.slane %v1983_v26, 2  ;;  %vm1490_vm1 = vcmask 1043456  }
  0xd3   : > { %v303_v35 = vpop.f32.mrf.mxu1  ;;  %v2020_v44 = vpop.f32.mrf.mxu0 }
  0xd4   : > { %v1960_v17 = vpop.f32.mrf.mxu2  ;;  %v1971_v22 = vpop.f32.mrf.mxu3  ;;  %v1047_v38 = vrot.slane %v303_v35, 4  ;;  %2767 = vst [vmem:[#allocation7_spill] sm:$0xff] %v2020_v44  ;;  %v1050_v48 = vrot.slane %v2020_v44, 4 }
  0xd5   : > { %2764 = vst [vmem:[#allocation4_spill] sm:$0xff] %v1971_v22  ;;  %v788_v25 = vrot.slane %v1960_v17, 2  ;;  %v1015_v30 = vrot.slane %v1971_v22, 2  ;;  %v817_v33 = vrot.slane %v1960_v17, 4 }
  0xd6   : > { %698 = vrot.lane.b32.xlu2 %v692_v58, %s1719_s4  ;;  %821 = vrot.lane.b32.xlu0 %v816_v57, %s1724_s9  ;;  %v1119_v57 = vrot.slane %v2020_v44, 2 }
  0xd7   : > { %728 = vrot.lane.b32.xlu1 %v722_v59, %s1722_s7 }
  0xdb   : > { %v2005_v40 = vpop.f32.mrf.mxu1 }
  0xdc   : > { %v2009_v41 = vpop.f32.mrf.mxu2  ;;  %v2025_v47 = vpop.f32.mrf.mxu3 }
  0xdd   : > { %v1049_v51 = vrot.slane %v2025_v47, 4  ;;  %v1118_v59 = vrot.slane %v2025_v47, 2 }
  0xde   : > { %1260 = vrot.lane.b32.xlu2 %v1255_v62, %s1725_s10  ;;  %827 = vrot.lane.b32.xlu0 %v819_v61, %s1724_s9 }
  0xdf   : > { %760 = vrot.lane.b32.xlu1 %v1911_v60, %s1726_s11 }
  0xe3   : > { %v2028_v50 = vpop.f32.mrf.mxu1 }
  0xe4   : > { %v2031_v52 = vpop.f32.mrf.mxu2 }
  0xe6   : > { %825 = vrot.lane.b32.xlu2 %v818_v2, %s1724_s9  ;;  %758 = vrot.lane.b32.xlu0 %v1918_v63, %s1726_s11 }
  0xe7   : > { %792 = vrot.lane.b32.xlu1 %v787_v3, %s1716_s28 }
  0xeb   : > { %v311_v58 = vpop.f32.mrf.mxu1 }
  0xec   : > { %v2048_v61 = vpop.f32.mrf.mxu2  ;;  %v2106_v58 = vpop.f32.mrf.mxu0 }
  0xee   : > { %547 = vrot.lane.b32.xlu0 %v541_v7, %s1717_s29  ;;  %913 = vrot.lane.b32.xlu2 %v906_v8, %s1727_s14  ;;  %v955_v8 = vrot.slane %v1971_v22, 6 }
  0xef   : > { %798 = vrot.lane.b32.xlu1 %v790_v10, %s1716_s28 }
  0xf3   : > { %v312_v10 = vpop.f32.mrf.mxu1 }
  0xf6   : > { %577 = vrot.lane.b32.xlu0 %v571_v4, %s1716_s28  ;;  %882 = vrot.lane.b32.xlu2 %v1948_v11, %s1726_s11 }
  0xf7   : > { %606 = vrot.lane.b32.xlu1 %v601_v13, %s1718_s30  ;;  %v2067_v13 = vpop.f32.mrf.mxu2 }
  0xfe   : > { %796 = vrot.lane.b32.xlu0 %v789_v15, %s1716_s28  ;;  %666 = vrot.lane.b32.xlu2 %v661_v16, %s1721_s6 }
  0xff   : > { %860 = vrot.lane.b32.xlu1 %v853_v9, %s1719_s4 }
 0x106   : > { %884 = vrot.lane.b32.xlu0 %v1933_v5, %s1726_s11  ;;  %756 = vrot.lane.b32.xlu2 %v1960_v17, %s1726_s11 }
 0x107   : > { %696 = vrot.lane.b32.xlu1 %v691_v20, %s1719_s4 }
 0x108   : > { %v1969_v21 = vpop.permute.xlu2 %575 }
 0x10e   : > { %636 = vrot.lane.b32.xlu0 %v325_v14, %s1720_s5  ;;  %985 = vrot.lane.b32.xlu2 %v1971_v22, %s1724_s9 }
 0x10f   : > { %911 = vrot.lane.b32.xlu1 %v905_v23, %s1727_s14 }
 0x110   : > { %v1978_v18 = vpop.permute.xlu2 %581 }
 0x116   : > { %726 = vrot.lane.b32.xlu0 %v721_v28, %s1722_s7  ;;  %794 = vrot.lane.b32.xlu2 %v788_v25, %s1716_s28 }
 0x117   : > { %963 = vrot.lane.b32.xlu1 %v956_v27, %s1716_s28  ;;  %v851_v27 = vrot.slane %v2009_v41, 6 }
 0x118   : > { %v1991_v29 = vpop.permute.xlu2 %608 }
 0x11e   : > { %858 = vrot.lane.b32.xlu0 %v852_v34, %s1719_s4  ;;  %1022 = vrot.lane.b32.xlu2 %v1015_v30, %s1724_s9  ;;  %v2084_v30 = vpop.f32.mrf.mxu3 }
 0x11f   : > { %823 = vrot.lane.b32.xlu1 %v817_v33, %s1724_s9 }
 0x120   : > { %v1999_v19 = vpop.permute.xlu0 %545  ;;  %v2001_v36 = vpop.permute.xlu2 %640 }
 0x121   : > { %v2003_v37 = vpop.permute.xlu1 %551 }
 0x126   : > { %1052 = vrot.lane.b32.xlu2 %v1047_v38, %s1723_s8  ;;  %987 = vrot.lane.b32.xlu0 %v1980_v24, %s1724_s9 }
 0x127   : > { %880 = vrot.lane.b32.xlu1 %v2009_v41, %s1726_s11 }
 0x128   : > { %v2016_v42 = vpop.permute.xlu0 %610  ;;  %v2018_v43 = vpop.permute.xlu2 %730 }
 0x129   : > { %2766 = vst [vmem:[#allocation6_spill] sm:$0xff] %v2018_v43  ;;  %v2022_v46 = vpop.permute.xlu1 %549 }
 0x12a   : > { %v558_v62 = vsel %vm555_vm2, %v2022_v46, %v2003_v37 }
 0x12b   : > { %v567_v7 = vadd.f32 %v558_v62, %v1870_v39  ;;  %v618_v39 = vsel %vm616_vm4, %v1991_v29, %v2016_v42 }
 0x12e   : > { %1018 = vrot.lane.b32.xlu0 %v1013_v12, %s1724_s9  ;;  %1058 = vrot.lane.b32.xlu2 %v1050_v48, %s1723_s8 }
 0x12f   : > { %1056 = vrot.lane.b32.xlu1 %v1049_v51, %s1723_s8  ;;  %v2103_v51 = vpop.f32.mrf.mxu2 }
 0x130   : > { %v2036_v53 = vpop.permute.xlu2 %698  ;;  %v2038_v54 = vpop.permute.xlu0 %700  ;;  %2771 = vst [vmem:[#allocation11_spill] sm:$0xff] %v2103_v51 }
 0x131   : > { %2768 = vst [vmem:[#allocation8_spill] sm:$0xff] %v2038_v54  ;;  %v2040_v55 = vpop.permute.xlu1 %579  ;;  %v708_v33 = vsel %vm706_vm7, %v2036_v53, %v2038_v54 }
 0x132   : > { %v588_v3 = vsel %vm585_vm3, %v2040_v55, %v1978_v18 }
 0x133   : > { %v597_v4 = vadd.f32 %v588_v3, %v567_v7 }
 0x135   : > { %v628_v16 = vadd.f32 %v618_v39, %v597_v4  ;;  %v954_v4 = vrot.slane %v2031_v52, 6  ;;  %v1229_v39 = vrot.slane %v2028_v50, 2 }
 0x136   : > { %1024 = vrot.lane.b32.xlu0 %v1016_v56, %s1724_s9  ;;  %1126 = vrot.lane.b32.xlu2 %v1119_v57, %s1723_s8  ;;  %v904_v57 = vrot.slane %v2009_v41, 2 }
 0x137   : > { %1124 = vrot.lane.b32.xlu1 %v1118_v59, %s1723_s8  ;;  %v1014_v59 = vrot.slane %v2031_v52, 2  ;;  %v2120_v10 = vpop.f32.mrf.mxu2 }
 0x138   : > { %v2053_v0 = vpop.permute.xlu2 %1260  ;;  %v669_v1 = vpop.permute.xlu0 %668 }
 0x139   : > { %v2055_v2 = vpop.permute.xlu1 %670 }
 0x13a   : > { %2769 = vst [vmem:[#allocation9_spill] sm:$0xff] %v2055_v2  ;;  %v678_v25 = vsel %vm676_vm6, %v669_v1, %v2055_v2 }
 0x13e   : > { %961 = vrot.lane.b32.xlu0 %v955_v8, %s1716_s28  ;;  %1095 = vrot.lane.b32.xlu2 %v2025_v47, %s1724_s9  ;;  %v1167_v8 = vrot.slane %v2106_v58, 6 }
 0x13f   : > { %983 = vrot.lane.b32.xlu1 %v2031_v52, %s1724_s9 }
 0x140   : > { %v2072_v14 = vpop.permute.xlu2 %825  ;;  %v2074_v15 = vpop.permute.xlu0 %1233 }
 0x141   : > { %v2076_v9 = vpop.permute.xlu1 %638 }
 0x142   : > { %v648_v20 = vsel %vm646_vm5, %v2076_v9, %v2001_v36 }
 0x143   : > { %v658_v23 = vadd.f32 %v648_v20, %v628_v16 }
 0x145   : > { %v688_v28 = vadd.f32 %v678_v25, %v658_v23 }
 0x146   : > { %1097 = vrot.lane.b32.xlu0 %v2020_v44, %s1724_s9  ;;  %856 = vrot.lane.b32.xlu2 %v851_v27, %s1719_s4 }
 0x147   : > { %1195 = vrot.lane.b32.xlu1 %v2084_v30, %s1723_s8  ;;  %v718_v38 = vadd.f32 %v708_v33, %v688_v28  ;;  %v2135_v28 = vpop.f32.mrf.mxu0 }
 0x148   : > { %v2094_v34 = vpop.permute.xlu0 %821  ;;  %v2096_v35 = vpop.permute.xlu2 %913 }
 0x149   : > { %2770 = vst [vmem:[#allocation10_spill] sm:$0xff] %v2096_v35  ;;  %v2098_v12 = vpop.permute.xlu1 %728 }
 0x14a   : > { %v738_v48 = vsel %vm736_vm8, %v2098_v12, %v2018_v43 }
 0x14b   : > { %v748_v56 = vadd.f32 %v738_v48, %v718_v38  ;;  %v345_v38 = vpop.f32.mrf.mxu2  ;;  %v2139_v48 = vpop.f32.mrf.mxu3 }
 0x14e   : > { %909 = vrot.lane.b32.xlu0 %v904_v57, %s1727_s14  ;;  %1197 = vrot.lane.b32.xlu2 %v2106_v58, %s1723_s8  ;;  %v1256_v57 = vrot.slane %v2028_v50, 4  ;;  %v1258_v50 = vrot.slane %v2139_v48, 4 }
 0x14f   : > { %1020 = vrot.lane.b32.xlu1 %v1014_v59, %s1724_s9  ;;  %v1166_v59 = vrot.slane %v2084_v30, 6 }
 0x150   : > { %v2113_v62 = vpop.permute.xlu0 %827  ;;  %v2115_v3 = vpop.permute.xlu2 %882 }
 0x151   : > { %2772 = vst [vmem:[#allocation12_spill] sm:$0xff] %v2113_v62  ;;  %v2117_v7 = vpop.permute.xlu1 %760 }
 0x152   : > { %2773 = vst [vmem:[#allocation13_spill] sm:$0xff] %v2117_v7 }
 0x153   : > { %v2157_v38 = vpop.f32.mrf.mxu3 }
 0x156   : > { %959 = vrot.lane.b32.xlu2 %v954_v4, %s1716_s28  ;;  %1173 = vrot.lane.b32.xlu0 %v1167_v8, %s1724_s9  ;;  %v1232_v8 = vrot.slane %v2135_v28, 2 }
 0x157   : > { %1235 = vrot.lane.b32.xlu1 %v1229_v39, %s1723_s8 }
 0x158   : > { %v759_v16 = vpop.permute.xlu0 %758  ;;  %v2127_v20 = vpop.permute.xlu2 %666 }
 0x159   : > { %v793_v23 = vpop.permute.xlu1 %792  ;;  %v768_v25 = vsel %vm766_vm9, %v759_v16, %v2117_v7  ;;  %v2133_v27 = vsel %vm676_vm6, %v2127_v20, %v669_v1 }
 0x15a   : > { %v2137_v33 = vadd.f32 %v768_v25, %v748_v56  ;;  %v1048_v25 = vrot.slane %v2048_v61, 4 }
 0x15c   : > { %2774 = vst [vmem:[#allocation14_spill] sm:$0xff] %v2137_v33 }
 0x15e   : > { %1171 = vrot.lane.b32.xlu2 %v1166_v59, %s1724_s9  ;;  %1262 = vrot.lane.b32.xlu0 %v1256_v57, %s1725_s10 }
 0x15f   : > { %1241 = vrot.lane.b32.xlu1 %v1232_v8, %s1723_s8 }
 0x160   : > { %v548_v1 = vpop.permute.xlu0 %547  ;;  %v2147_v4 = vpop.permute.xlu2 %756 }
 0x161   : > { %v2149_v56 = vpop.permute.xlu1 %798  ;;  %v2153_v39 = vsel %vm766_vm9, %v2147_v4, %v759_v16  ;;  %v556_v57 = vsel %vm555_vm2, %v1999_v19, %v548_v1  ;;  %v557_v59 = vsel %vm555_vm2, %v548_v1, %v2022_v46 }
 0x162   : > { %2775 = vst [vmem:[#allocation15_spill] sm:$0xff] %v2149_v56  ;;  %v565_v16 = vadd.f32 %v556_v57, %v1857_v31  ;;  %v566_v8 = vadd.f32 %v557_v59, %v1935_v6  ;;  %v1230_v31 = vrot.slane %v2103_v51, 2  ;;  %v1117_v6 = vrot.slane %v2048_v61, 2  ;;  %v378_v57 = vpop.f32.mrf.mxu3  ;;  %v2179_v59 = vpop.f32.mrf.mxu1 }
 0x163   : > { %v574_v57 = vrot.slane %v2179_v59, 4 }
 0x166   : > { %1266 = vrot.lane.b32.xlu2 %v1258_v50, %s1725_s10  ;;  %1054 = vrot.lane.b32.xlu0 %v1048_v25, %s1723_s8 }
 0x167   : > { %1093 = vrot.lane.b32.xlu1 %v2048_v61, %s1724_s9 }
 0x168   : > { %v578_v33 = vpop.permute.xlu0 %577  ;;  %v2169_v24 = vpop.permute.xlu2 %985 }
 0x169   : > { %v586_v19 = vsel %vm585_vm3, %v1969_v21, %v578_v33  ;;  %v587_v46 = vsel %vm585_vm3, %v578_v33, %v2040_v55  ;;  %v607_v1 = vpop.permute.xlu1 %606  ;;  %v1257_v21 = vrot.slane %v2103_v51, 4 }
 0x16a   : > { %v595_v50 = vadd.f32 %v586_v19, %v565_v16  ;;  %v596_v60 = vadd.f32 %v587_v46, %v566_v8  ;;  %v617_v25 = vsel %vm616_vm4, %v607_v1, %v1991_v29  ;;  %v544_v8 = vrot.slane %v2179_v59, 2 }
 0x16b   : > { %v604_v19 = vrot.slane %v2179_v59, 6  ;;  %v1231_v46 = vrot.slane %v2139_v48, 2 }
 0x16c   : > { %v626_v44 = vadd.f32 %v607_v1, %v595_v50  ;;  %v627_v22 = vadd.f32 %v617_v25, %v596_v60  ;;  %v488_v1 = vpop.f32.mrf.mxu3  ;;  %v424_v50 = vpop.f32.mrf.mxu1 }
 0x16e   : > { %1237 = vrot.lane.b32.xlu2 %v1230_v31, %s1723_s8  ;;  %1122 = vrot.lane.b32.xlu0 %v1117_v6, %s1723_s8  ;;  %v664_v6 = vrot.slane %v424_v50, 2 }
 0x16f   : > { %1264 = vrot.lane.b32.xlu1 %v1257_v21, %s1725_s10 }
 0x170   : > { %v797_v55 = vpop.permute.xlu0 %796  ;;  %v795_v33 = vpop.permute.xlu2 %794 }
 0x171   : > { %v802_v29 = vsel %vm585_vm3, %v793_v23, %v795_v33  ;;  %v803_v60 = vsel %vm585_vm3, %v795_v33, %v797_v55  ;;  %v2187_v16 = vpop.permute.xlu1 %860  ;;  %v694_v33 = vrot.slane %v424_v50, 4 }
 0x172   : > { %2776 = vst [vmem:[#allocation16_spill] sm:$0xff] %v2187_v16 }
 0x174   : > { %v489_v21 = vpop.f32.mrf.mxu3  ;;  %v2209_v7 = vpop.f32.mrf.mxu1 }
 0x175   : > { %2778 = vst [vmem:[#allocation18_spill] sm:$0xff] %v2209_v7 }
 0x176   : > { %553 = vrot.lane.b32.xlu2 %v544_v8, %s1717_s29  ;;  %1239 = vrot.lane.b32.xlu0 %v1231_v46, %s1723_s8 }
 0x177   : > { %612 = vrot.lane.b32.xlu1 %v604_v19, %s1718_s30 }
 0x178   : > { %v2195_v25 = vpop.permute.xlu0 %884  ;;  %v2197_v23 = vpop.permute.xlu2 %1022 }
 0x179   : > { %2777 = vst [vmem:[#allocation17_spill] sm:$0xff] %v2195_v25  ;;  %v697_v31 = vpop.permute.xlu1 %696 }
 0x17c   : > { %v491_v54 = vpop.f32.mrf.mxu3 }
 0x17e   : > { %672 = vrot.lane.b32.xlu2 %v664_v6, %s1721_s6  ;;  %583 = vrot.lane.b32.xlu0 %v574_v57, %s1716_s28  ;;  %v820_v6 = vrot.slane %v2209_v7, 4 }
 0x17f   : > { %702 = vrot.lane.b32.xlu1 %v694_v33, %s1719_s4  ;;  %v707_v33 = vsel %vm706_vm7, %v697_v31, %v2036_v53 }
 0x180   : > { %v637_v8 = vpop.permute.xlu0 %636  ;;  %v2203_v46 = vpop.permute.xlu2 %1052 }
 0x181   : > { %v647_v19 = vsel %vm646_vm5, %v637_v8, %v2076_v9  ;;  %v656_v1 = vadd.f32 %v637_v8, %v626_v44  ;;  %v2207_v5 = vpop.permute.xlu1 %911  ;;  %v455_v9 = vpop.f32.mrf.mxu2 }
 0x182   : > { %v657_v43 = vadd.f32 %v647_v19, %v627_v22 }
 0x183   : > { %v686_v21 = vadd.f32 %v2127_v20, %v656_v1 }
 0x184   : > { %v687_v57 = vadd.f32 %v2133_v27, %v657_v43  ;;  %v804_v43 = vsel %vm585_vm3, %v797_v55, %v2149_v56  ;;  %v492_v55 = vpop.f32.mrf.mxu3 }
 0x185   : > { %v716_v2 = vadd.f32 %v697_v31, %v686_v21  ;;  %v813_v19 = vadd.f32 %v804_v43, %v1918_v63  ;;  %v791_v21 = vrot.slane %v2209_v7, 2 }
 0x186   : > { %762 = vrot.lane.b32.xlu2 %v2209_v7, %s1726_s11  ;;  %642 = vrot.lane.b32.xlu0 %v424_v50, %s1720_s5  ;;  %v717_v44 = vadd.f32 %v707_v33, %v687_v57  ;;  %v2236_v57 = vpop.f32.mrf.mxu1 }
 0x187   : > { %829 = vrot.lane.b32.xlu1 %v820_v6, %s1724_s9  ;;  %v724_v6 = vrot.slane %v424_v50, 6  ;;  %2782 = vst [vmem:[#allocation22_spill] sm:$0xff] %v2236_v57  ;;  %v812_v50 = vadd.f32 %v803_v60, %v1960_v17  ;;  %v605_v60 = vrot.slane %v455_v9, 6 }
 0x188   : > { %v727_v22 = vpop.permute.xlu0 %726  ;;  %v2220_v20 = vpop.permute.xlu2 %1058 }
 0x189   : > { %2779 = vst [vmem:[#allocation19_spill] sm:$0xff] %v2220_v20  ;;  %v737_v54 = vsel %vm736_vm8, %v727_v22, %v2098_v12  ;;  %v746_v53 = vadd.f32 %v727_v22, %v716_v2  ;;  %v2226_v27 = vpop.permute.xlu1 %963  ;;  %v834_v2 = vsel %vm831_vm10, %v2072_v14, %v2113_v62  ;;  %v457_v22 = vpop.f32.mrf.mxu2 }
 0x18a   : > { %v747_v31 = vadd.f32 %v737_v54, %v717_v44  ;;  %v843_v63 = vadd.f32 %v834_v2, %v813_v19 }
 0x18b   : > { %v2229_v8 = vadd.f32 %v2147_v4, %v746_v53 }
 0x18c   : > { %v2233_v1 = vadd.f32 %v2153_v39, %v747_v31  ;;  %v811_v39 = vadd.f32 %v802_v29, %v1882_v45  ;;  %v2255_v31 = vpop.f32.mrf.mxu0  ;;  %v891_v45 = vsel %vm766_vm9, %v2115_v3, %v2195_v25 }
 0x18d   : > { %2780 = vst [vmem:[#allocation20_spill] sm:$0xff] %v2229_v8 }
 0x18e   : > { %2781 = vst [vmem:[#allocation21_spill] sm:$0xff] %v2233_v1  ;;  %800 = vrot.lane.b32.xlu2 %v791_v21, %s1716_s28  ;;  %732 = vrot.lane.b32.xlu0 %v724_v6, %s1722_s7  ;;  %v907_v21 = vrot.slane %v2236_v57, 2  ;;  %v494_v6 = vpop.f32.mrf.mxu3 }
 0x18f   : > { %886 = vrot.lane.b32.xlu1 %v2236_v57, %s1726_s11 }
 0x190   : > { %v859_v12 = vpop.permute.xlu0 %858  ;;  %v2245_v4 = vpop.permute.xlu2 %1126 }
 0x191   : > { %v867_v33 = vsel %vm706_vm7, %v859_v12, %v2187_v16  ;;  %v824_v44 = vpop.permute.xlu1 %823 }
 0x192   : > { %v877_v43 = vadd.f32 %v867_v33, %v843_v63  ;;  %v832_v54 = vsel %vm831_vm10, %v2094_v34, %v824_v44  ;;  %v833_v53 = vsel %vm831_vm10, %v824_v44, %v2072_v14  ;;  %v921_v34 = vsel %vm919_vm11, %v2207_v5, %v2096_v35  ;;  %v460_v63 = vpop.f32.mrf.mxu2 }
 0x193   : > { %v841_v17 = vadd.f32 %v832_v54, %v811_v39  ;;  %v842_v29 = vadd.f32 %v833_v53, %v812_v50  ;;  %v854_v50 = vrot.slane %v2236_v57, 6  ;;  %v665_v33 = vrot.slane %v457_v22, 2  ;;  %v2276_v54 = vpop.f32.mrf.mxu1 }
 0x194   : > { %v901_v19 = vadd.f32 %v891_v45, %v877_v43  ;;  %v411_v39 = vpop.f32.mrf.mxu0  ;;  %v725_v43 = vrot.slane %v457_v22, 6  ;;  %2785 = vst [vmem:[#allocation25_spill] sm:$0xff] %v2276_v54 }
 0x196   : > { %614 = vrot.lane.b32.xlu2 %v605_v60, %s1718_s30  ;;  %915 = vrot.lane.b32.xlu0 %v907_v21, %s1727_s14  ;;  %v2266_v14 = vadd.f32 %v921_v34, %v901_v19  ;;  %v495_v44 = vpop.f32.mrf.mxu3 }
 0x197   : > { %644 = vrot.lane.b32.xlu1 %v457_v22, %s1720_s5 }
 0x198   : > { %2783 = vst [vmem:[#allocation23_spill] sm:$0xff] %v2266_v14  ;;  %v2269_v55 = vpop.permute.xlu0 %987  ;;  %v2271_v2 = vpop.permute.xlu2 %1095 }
 0x199   : > { %2784 = vst [vmem:[#allocation24_spill] sm:$0xff] %v2269_v55  ;;  %v881_v9 = vpop.permute.xlu1 %880 }
 0x19a   : > { %v890_v39 = vsel %vm766_vm9, %v881_v9, %v2115_v3  ;;  %v2284_v1 = vpop.f32.mrf.mxu2 }
 0x19b   : > { %2786 = vst [vmem:[#allocation26_spill] sm:$0xff] %v2284_v1 }
 0x19c   : > { %v514_v34 = vpop.f32.mrf.mxu0 }
 0x19e   : > { %862 = vrot.lane.b32.xlu2 %v854_v50, %s1719_s4  ;;  %674 = vrot.lane.b32.xlu0 %v665_v33, %s1721_s6  ;;  %v695_v50 = vrot.slane %v457_v22, 4  ;;  %v2286_v8 = vpop.f32.mrf.mxu3 }
 0x19f   : > { %734 = vrot.lane.b32.xlu1 %v725_v43, %s1722_s7 }
 0x1a0   : > { %v1019_v53 = vpop.permute.xlu0 %1018  ;;  %v857_v45 = vpop.permute.xlu2 %856 }
 0x1a1   : > { %v2279_v60 = vpop.permute.xlu1 %1056  ;;  %v866_v19 = vsel %vm706_vm7, %v857_v45, %v859_v12  ;;  %v875_v21 = vadd.f32 %v857_v45, %v841_v17 }
 0x1a2   : > { %v876_v6 = vadd.f32 %v866_v19, %v842_v29  ;;  %v2296_v29 = vpop.f32.mrf.mxu1  ;;  %v465_v45 = vpop.f32.mrf.mxu2  ;;  %v1017_v19 = vrot.slane %v2276_v54, 2 }
 0x1a3   : > { %v899_v44 = vadd.f32 %v881_v9, %v875_v21  ;;  %2788 = vst [vmem:[#allocation28_spill] sm:$0xff] %v2296_v29  ;;  %v957_v9 = vrot.slane %v2276_v54, 6  ;;  %v1051_v43 = vrot.slane %v2296_v29, 4 }
 0x1a4   : > { %v900_v33 = vadd.f32 %v890_v39, %v876_v6  ;;  %v515_v22 = vpop.f32.mrf.mxu0 }
 0x1a5   : > { %v1120_v22 = vrot.slane %v2296_v29, 2 }
 0x1a6   : > { %704 = vrot.lane.b32.xlu2 %v695_v50, %s1719_s4  ;;  %764 = vrot.lane.b32.xlu0 %v460_v63, %s1726_s11  ;;  %v499_v63 = vpop.f32.mrf.mxu3 }
 0x1a7   : > { %989 = vrot.lane.b32.xlu1 %v2276_v54, %s1724_s9  ;;  %v908_v54 = vrot.slane %v2284_v1, 2 }
 0x1a8   : > { %v2292_v12 = vpop.permute.xlu0 %1024  ;;  %v2294_v17 = vpop.permute.xlu2 %1197 }
 0x1a9   : > { %2787 = vst [vmem:[#allocation27_spill] sm:$0xff] %v2292_v12  ;;  %v2298_v3 = vpop.permute.xlu1 %1124 }
 0x1aa   : > { %v2308_v57 = vpop.f32.mrf.mxu2 }
 0x1ac   : > { %v517_v50 = vpop.f32.mrf.mxu0 }
 0x1ae   : > { %965 = vrot.lane.b32.xlu2 %v957_v9, %s1716_s28  ;;  %1060 = vrot.lane.b32.xlu0 %v1051_v43, %s1723_s8 }
 0x1af   : > { %1026 = vrot.lane.b32.xlu1 %v1017_v19, %s1724_s9 }
 0x1b0   : > { %v962_v21 = vpop.permute.xlu0 %961  ;;  %v960_v6 = vpop.permute.xlu2 %959 }
 0x1b1   : > { %v984_v34 = vpop.permute.xlu1 %983  ;;  %v969_v39 = vsel %vm585_vm3, %v960_v6, %v962_v21  ;;  %v855_v6 = vrot.slane %v2284_v1, 6  ;;  %v970_v55 = vsel %vm585_vm3, %v962_v21, %v2226_v27 }
 0x1b2   : > { %v2322_v50 = vpop.f32.mrf.mxu2 }
 0x1b4   : > { %v518_v63 = vpop.f32.mrf.mxu0 }
 0x1b5   : > { %v934_v63 = vrot.slane %v2009_v41, 4 }
 0x1b6   : > { %888 = vrot.lane.b32.xlu2 %v2284_v1, %s1726_s11  ;;  %1128 = vrot.lane.b32.xlu0 %v1120_v22, %s1723_s8  ;;  %v2327_v22 = vpop.f32.mrf.mxu1  ;;  %v935_v1 = vrot.slane %v1948_v11, 4 }
 0x1b7   : > { %1099 = vrot.lane.b32.xlu1 %v2296_v29, %s1724_s9  ;;  %v1168_v20 = vrot.slane %v2327_v22, 6 }
 0x1b8   : > { %v2315_v9 = vpop.permute.xlu0 %1097  ;;  %v2317_v43 = vpop.permute.xlu2 %1171 }
 0x1b9   : > { %v2319_v19 = vpop.permute.xlu1 %1195 }
 0x1ba   : > { %v2338_v14 = vpop.f32.mrf.mxu2 }
 0x1be   : > { %991 = vrot.lane.b32.xlu2 %v465_v45, %s1724_s9  ;;  %864 = vrot.lane.b32.xlu0 %v855_v6, %s1719_s4  ;;  %v520_v6 = vpop.f32.mrf.mxu0 }
 0x1bf   : > { %917 = vrot.lane.b32.xlu1 %v908_v54, %s1727_s14 }
 0x1c0   : > { %v910_v29 = vpop.permute.xlu0 %909  ;;  %v2330_v35 = vpop.permute.xlu2 %1266 }
 0x1c1   : > { %v1021_v25 = vpop.permute.xlu1 %1020  ;;  %v920_v16 = vsel %vm919_vm11, %v910_v29, %v2207_v5  ;;  %v929_v62 = vadd.f32 %v910_v29, %v899_v44  ;;  %v993_v5 = vsel %vm831_vm10, %v984_v34, %v2169_v24  ;;  %v2357_v44 = vpop.f32.mrf.mxu1 }
 0x1c2   : > { %v1028_v7 = vsel %vm831_vm10, %v1019_v53, %v1021_v25  ;;  %v930_v56 = vadd.f32 %v920_v16, %v900_v33  ;;  %v958_v53 = vrot.slane %v465_v45, 6  ;;  %v2361_v29 = vpop.f32.mrf.mxu2 }
 0x1c3   : > { %v944_v12 = vadd.f32 %v934_v63, %v929_v62 }
 0x1c4   : > { %v945_v54 = vadd.f32 %v935_v1, %v930_v56 }
 0x1c5   : > { %v978_v41 = vadd.f32 %v969_v39, %v944_v12 }
 0x1c6   : > { %1203 = vrot.lane.b32.xlu2 %v2286_v8, %s1723_s8  ;;  %1199 = vrot.lane.b32.xlu0 %v2327_v22, %s1723_s8  ;;  %v2348_v11 = vadd.f32 %v970_v55, %v945_v54  ;;  %v521_v12 = vpop.f32.mrf.mxu0 }
 0x1c7   : > { %1175 = vrot.lane.b32.xlu1 %v1168_v20, %s1724_s9  ;;  %v2351_v62 = vadd.f32 %v993_v5, %v978_v41  ;;  %v1029_v5 = vsel %vm831_vm10, %v1021_v25, %v2197_v23 }
 0x1c8   : > { %v2353_v56 = vpop.permute.xlu2 %1237  ;;  %v2355_v16 = vpop.permute.xlu0 %1173 }
 0x1c9   : > { %v1236_v1 = vpop.permute.xlu1 %1235  ;;  %v2380_v6 = vpop.f32.mrf.mxu1 }
 0x1ca   : > { %v1244_v33 = vsel %vm1062_vm12, %v1236_v1, %v2353_v56  ;;  %v1243_v20 = vsel %vm1062_vm12, %v2074_v15, %v1236_v1  ;;  %v1170_v15 = vrot.slane %v2286_v8, 6  ;;  %v477_v41 = vpop.f32.mrf.mxu2 }
 0x1cb   : > { %v1251_v55 = vadd.f32 %v1243_v20, %v1889_v49  ;;  %v1037_v49 = vadd.f32 %v1028_v7, %v1983_v26 }
 0x1ce   : > { %1299 = vrot.lane.b32.xlu2 %v2139_v48, %s1723_s8  ;;  %967 = vrot.lane.b32.xlu0 %v958_v53, %s1716_s28  ;;  %v523_v54 = vpop.f32.mrf.mxu0 }
 0x1cf   : > { %1297 = vrot.lane.b32.xlu1 %v2103_v51, %s1723_s8  ;;  %v2401_v51 = vpop.f32.mrf.mxu3 }
 0x1d0   : > { %v2371_v45 = vpop.permute.xlu2 %553  ;;  %v1263_v21 = vpop.permute.xlu0 %1262 }
 0x1d1   : > { %v1271_v34 = vsel %vm1270_vm13, %v2053_v0, %v1263_v21  ;;  %v2375_v39 = vpop.permute.xlu1 %1241  ;;  %v1038_v0 = vadd.f32 %v1029_v5, %v2031_v52  ;;  %v444_v41 = vpop.f32.mrf.mxu1  ;;  %v1259_v5 = vrot.slane %v2135_v28, 4 }
 0x1d2   : > { %v2378_v63 = vadd.f32 %v1271_v34, %v1251_v55  ;;  %v1079_v55 = vrot.slane %v2025_v47, 6  ;;  %v1078_v34 = vrot.slane %v2048_v61, 6  ;;  %v1121_v47 = vrot.slane %v2308_v57, 2 }
 0x1d4   : > { %2789 = vst [vmem:[#allocation29_spill] sm:$0xff] %v2378_v63  ;;  %v1326_v63 = vrot.slane %v2255_v31, 2 }
 0x1d6   : > { %1101 = vrot.lane.b32.xlu2 %v2308_v57, %s1724_s9  ;;  %1179 = vrot.lane.b32.xlu0 %v1170_v15, %s1724_s9  ;;  %v524_v26 = vpop.f32.mrf.mxu0 }
 0x1d7   : > { %1303 = vrot.lane.b32.xlu1 %v2357_v44, %s1723_s8 }
 0x1d8   : > { %v2391_v1 = vpop.permute.xlu2 %672  ;;  %v1055_v53 = vpop.permute.xlu0 %1054 }
 0x1d9   : > { %v1063_v12 = vsel %vm1062_vm12, %v2203_v46, %v1055_v53  ;;  %v1064_v25 = vsel %vm1062_vm12, %v1055_v53, %v2279_v60  ;;  %v1094_v20 = vpop.permute.xlu1 %1093  ;;  %v1104_v46 = vsel %vm831_vm10, %v2271_v2, %v2315_v9  ;;  %v1133_v53 = vsel %vm1062_vm12, %v2298_v3, %v2245_v4 }
 0x1da   : > { %v1072_v15 = vadd.f32 %v1063_v12, %v1037_v49  ;;  %v1073_v54 = vadd.f32 %v1064_v25, %v1038_v0  ;;  %v1103_v61 = vsel %vm831_vm10, %v1094_v20, %v2271_v2  ;;  %v1152_v12 = vrot.slane %v2106_v58, 4 }
 0x1db   : > { %v1151_v2 = vrot.slane %v2084_v30, 4  ;;  %v1252_v20 = vadd.f32 %v1244_v33, %v2005_v40  ;;  %v1181_v40 = vsel %vm831_vm10, %v2317_v43, %v2355_v16  ;;  %v1205_v33 = vsel %vm1062_vm12, %v2319_v19, %v2294_v17 }
 0x1dc   : > { %v1089_v7 = vadd.f32 %v1079_v55, %v1073_v54  ;;  %v1088_v52 = vadd.f32 %v1078_v34, %v1072_v15  ;;  %v1169_v54 = vrot.slane %v2322_v50, 6 }
 0x1de   : > { %v1113_v49 = vadd.f32 %v1104_v46, %v1089_v7  ;;  %v1112_v0 = vadd.f32 %v1103_v61, %v1088_v52  ;;  %1268 = vrot.lane.b32.xlu0 %v1259_v5, %s1725_s10  ;;  %1333 = vrot.lane.b32.xlu2 %v1326_v63, %s1725_s10  ;;  %v2428_v5 = vpop.f32.mrf.mxu0  ;;  %v503_v46 = vpop.f32.mrf.mxu3 }
 0x1df   : > { %1130 = vrot.lane.b32.xlu1 %v1121_v47, %s1723_s8 }
 0x1e0   : > { %v2416_v25 = vpop.permute.xlu2 %762  ;;  %v1123_v55 = vpop.permute.xlu0 %1122  ;;  %v1142_v34 = vadd.f32 %v1133_v53, %v1113_v49 }
 0x1e1   : > { %v1132_v15 = vsel %vm1062_vm12, %v1123_v55, %v2298_v3  ;;  %v1265_v63 = vpop.permute.xlu1 %1264 }
 0x1e2   : > { %v1141_v41 = vadd.f32 %v1132_v15, %v1112_v0  ;;  %v1272_v26 = vsel %vm1270_vm13, %v1263_v21, %v1265_v63  ;;  %v2424_v7 = vadd.f32 %v1152_v12, %v1142_v34  ;;  %v1273_v19 = vsel %vm1270_vm13, %v1265_v63, %v2330_v35 }
 0x1e3   : > { %v2426_v58 = vadd.f32 %v1272_v26, %v1252_v20  ;;  %v1324_v12 = vrot.slane %v2120_v10, 2 }
 0x1e4   : > { %v1161_v52 = vadd.f32 %v1151_v2, %v1141_v41  ;;  %v1325_v2 = vrot.slane %v2157_v38, 2  ;;  %v1327_v41 = vrot.slane %v2380_v6, 2 }
 0x1e6   : > { %1301 = vrot.lane.b32.xlu0 %v2135_v28, %s1723_s8  ;;  %1177 = vrot.lane.b32.xlu2 %v1169_v54, %s1724_s9  ;;  %v1190_v3 = vadd.f32 %v1181_v40, %v1161_v52  ;;  %v528_v34 = vpop.f32.mrf.mxu0 }
 0x1e7   : > { %1201 = vrot.lane.b32.xlu1 %v2322_v50, %s1723_s8 }
 0x1e8   : > { %v2441_v21 = vpop.permute.xlu2 %800  ;;  %v1240_v47 = vpop.permute.xlu0 %1239  ;;  %v2443_v61 = vadd.f32 %v1205_v33, %v1190_v3  ;;  %v1368_v3 = vrot.slane %v2401_v51, 6  ;;  %v2790_v33 = vld [vmem:[#allocation9_spill] sm:$0xff] }
 0x1e9   : > { %v1245_v43 = vsel %vm1062_vm12, %v2353_v56, %v1240_v47  ;;  %v2449_v49 = vsel %vm1062_vm12, %v1240_v47, %v2375_v39  ;;  %v613_v0 = vpop.permute.xlu1 %612  ;;  %v559_v56 = vsel %vm555_vm2, %v2003_v37, %v2371_v45  ;;  %v679_v47 = vsel %vm676_vm6, %v2790_v33, %v2391_v1 }
 0x1ea   : > { %v1253_v53 = vadd.f32 %v1245_v43, %v2067_v13  ;;  %v569_v13 = vadd.f32 %v2371_v45, %v2179_v59  ;;  %v568_v10 = vadd.f32 %v559_v56, %v1859_v32  ;;  %v1328_v45 = vrot.slane %v2361_v29, 2 }
 0x1eb   : > { %v1365_v32 = vrot.slane %v2255_v31, 6  ;;  %vm1476_vm2 = vcmask 842752  }
 0x1ec   : > { %v2455_v55 = vadd.f32 %v1273_v19, %v1253_v53  ;;  %v2791_v53 = vld [vmem:[#allocation8_spill] sm:$0xff] }
 0x1ee   : > { %1329 = vrot.lane.b32.xlu0 %v1324_v12, %s1725_s10  ;;  %1305 = vrot.lane.b32.xlu2 %v2338_v14, %s1723_s8  ;;  %v619_v14 = vsel %vm616_vm4, %v2016_v42, %v613_v0  ;;  %v1367_v12 = vrot.slane %v2361_v29, 6 }
 0x1ef   : > { %1331 = vrot.lane.b32.xlu1 %v1325_v2, %s1725_s10 }
 0x1f0   : > { %v615_v39 = vpop.permute.xlu2 %614  ;;  %v584_v20 = vpop.permute.xlu0 %583 }
 0x1f1   : > { %v620_v38 = vsel %vm616_vm4, %v613_v0, %v615_v39  ;;  %v589_v15 = vsel %vm585_vm3, %v1978_v18, %v584_v20  ;;  %v599_v37 = vadd.f32 %v584_v20, %v569_v13  ;;  %v703_v63 = vpop.permute.xlu1 %702  ;;  %v1366_v0 = vrot.slane %v2380_v6, 6  ;;  %v2792_v13 = vld [vmem:[#allocation6_spill] sm:$0xff] }
 0x1f2   : > { %v598_v54 = vadd.f32 %v589_v15, %v568_v10  ;;  %v709_v19 = vsel %vm706_vm7, %v2791_v53, %v703_v63  ;;  %v2793_v15 = vld [vmem:[#allocation13_spill] sm:$0xff] }
 0x1f3   : > { %v630_v59 = vadd.f32 %v620_v38, %v599_v37  ;;  %v1369_v38 = vrot.slane %v2428_v5, 6  ;;  %v769_v37 = vsel %vm766_vm9, %v2793_v15, %v2416_v25 }
 0x1f4   : > { %v629_v26 = vadd.f32 %v619_v14, %v598_v54 }
 0x1f6   : > { %1335 = vrot.lane.b32.xlu0 %v1327_v41, %s1725_s10  ;;  %1370 = vrot.lane.b32.xlu2 %v1365_v32, %s1723_s8 }
 0x1f7   : > { %1337 = vrot.lane.b32.xlu1 %v1328_v45, %s1725_s10 }
 0x1f8   : > { %v2479_v18 = vpop.permute.xlu2 %862  ;;  %v643_v52 = vpop.permute.xlu0 %642 }
 0x1f9   : > { %v649_v46 = vsel %vm646_vm5, %v2001_v36, %v643_v52  ;;  %v2483_v40 = vpop.permute.xlu1 %829 }
 0x1fa   : > { %v659_v42 = vadd.f32 %v649_v46, %v629_v26 }
 0x1fc   : > { %v689_v43 = vadd.f32 %v679_v47, %v659_v42 }
 0x1fe   : > { %1372 = vrot.lane.b32.xlu0 %v1366_v0, %s1723_s8  ;;  %1376 = vrot.lane.b32.xlu2 %v1368_v3, %s1723_s8  ;;  %v719_v36 = vadd.f32 %v709_v19, %v689_v43  ;;  %v2795_v0 = vld [vmem:[#allocation3_spill] sm:$0xff] }
 0x1ff   : > { %1374 = vrot.lane.b32.xlu1 %v1367_v12, %s1723_s8  ;;  %v936_v53 = vrot.slane %v2795_v0, 4  ;;  %v2801_v0 = vld [vmem:[#allocation15_spill] sm:$0xff] }
 0x200   : > { %v705_v34 = vpop.permute.xlu2 %704  ;;  %v733_v2 = vpop.permute.xlu0 %732 }
 0x201   : > { %v710_v56 = vsel %vm706_vm7, %v703_v63, %v705_v34  ;;  %v739_v10 = vsel %vm736_vm8, %v2792_v13, %v733_v2  ;;  %v2499_v39 = vpop.permute.xlu1 %886  ;;  %v2797_v13 = vld [vmem:[#allocation27_spill] sm:$0xff] }
 0x202   : > { %v749_v20 = vadd.f32 %v739_v10, %v719_v36  ;;  %v1030_v10 = vsel %vm831_vm10, %v2197_v23, %v2797_v13 }
 0x204   : > { %v2505_v54 = vadd.f32 %v769_v37, %v749_v20 }
 0x206   : > { %1394 = vrot.lane.b32.xlu2 %v2380_v6, %s1725_s10  ;;  %1378 = vrot.lane.b32.xlu0 %v1369_v38, %s1723_s8 }
 0x207   : > { %1392 = vrot.lane.b32.xlu1 %v2255_v31, %s1725_s10 }
 0x208   : > { %v2512_v63 = vpop.permute.xlu2 %965  ;;  %v2514_v41 = vpop.permute.xlu0 %915 }
 0x209   : > { %v645_v14 = vpop.permute.xlu1 %644 }
 0x20a   : > { %v650_v45 = vsel %vm646_vm5, %v643_v52, %v645_v14  ;;  %v2794_v52 = vld [vmem:[#allocation24_spill] sm:$0xff]  ;;  %v2799_v14 = vld [vmem:[#allocation19_spill] sm:$0xff] }
 0x20b   : > { %v660_v32 = vadd.f32 %v650_v45, %v630_v59  ;;  %v994_v59 = vsel %vm831_vm10, %v2169_v24, %v2794_v52  ;;  %v2796_v24 = vld [vmem:[#allocation23_spill] sm:$0xff]  ;;  %v1065_v45 = vsel %vm1062_vm12, %v2279_v60, %v2799_v14  ;;  %v1153_v60 = vrot.slane %v2327_v22, 4 }
 0x20c   : > { %v1003_v43 = vadd.f32 %v994_v59, %v2348_v11  ;;  %v946_v12 = vadd.f32 %v936_v53, %v2796_v24  ;;  %v805_v53 = vsel %vm585_vm3, %v2801_v0, %v2441_v21 }
 0x20e   : > { %1400 = vrot.lane.b32.xlu2 %v2428_v5, %s1725_s10  ;;  %1396 = vrot.lane.b32.xlu0 %v2361_v29, %s1725_s10 }
 0x20f   : > { %1398 = vrot.lane.b32.xlu1 %v2401_v51, %s1725_s10 }
 0x210   : > { %v889_v26 = vpop.permute.xlu2 %888  ;;  %v675_v46 = vpop.permute.xlu0 %674 }
 0x211   : > { %v680_v42 = vsel %vm676_vm6, %v2391_v1, %v675_v46  ;;  %v735_v3 = vpop.permute.xlu1 %734  ;;  %v971_v1 = vsel %vm585_vm3, %v2226_v27, %v2512_v63  ;;  %v2800_v46 = vld [vmem:[#allocation7_spill] sm:$0xff] }
 0x212   : > { %v690_v33 = vadd.f32 %v680_v42, %v660_v32  ;;  %v740_v47 = vsel %vm736_vm8, %v733_v2, %v735_v3  ;;  %v1080_v42 = vrot.slane %v2800_v46, 6 }
 0x214   : > { %v720_v5 = vadd.f32 %v710_v56, %v690_v33 }
 0x216   : > { %v750_v19 = vadd.f32 %v740_v47, %v720_v5  ;;  %1444 = vrot.lane.b32.xlu2 %v2443_v61, %s1728_s15  ;;  %1419 = vrot.lane.b32.xlu0 %v2351_v62, %s1729_s16  ;;  %v980_v61 = vadd.f32 %v971_v1, %v946_v12 }
 0x217   : > { %1421 = vrot.lane.b32.xlu1 %v1003_v43, %s1729_s16 }
 0x218   : > { %v2540_v11 = vpop.permute.xlu2 %991  ;;  %v765_v36 = vpop.permute.xlu0 %764 }
 0x219   : > { %v770_v34 = vsel %vm766_vm9, %v2416_v25, %v765_v36  ;;  %v2544_v2 = vpop.permute.xlu1 %989  ;;  %v2798_v25 = vld [vmem:[#allocation4_spill] sm:$0xff] }
 0x21a   : > { %v2546_v56 = vadd.f32 %v770_v34, %v750_v19  ;;  %v995_v62 = vsel %vm831_vm10, %v2794_v52, %v2544_v2  ;;  %v1039_v15 = vadd.f32 %v1030_v10, %v2798_v25  ;;  %v2802_v19 = vld [vmem:[#allocation18_spill] sm:$0xff] }
 0x21b   : > { %v1004_v27 = vadd.f32 %v995_v62, %v980_v61  ;;  %v815_v1 = vadd.f32 %v2441_v21, %v2802_v19  ;;  %v2804_v62 = vld [vmem:[#allocation2_spill] sm:$0xff]  ;;  %v893_v21 = vsel %vm766_vm9, %v2499_v39, %v889_v26 }
 0x21c   : > { %v1074_v32 = vadd.f32 %v1065_v45, %v1039_v15  ;;  %v2805_v15 = vld [vmem:[#allocation16_spill] sm:$0xff] }
 0x21d   : > { %v845_v61 = vadd.f32 %v2483_v40, %v815_v1  ;;  %v868_v45 = vsel %vm706_vm7, %v2805_v15, %v2479_v18 }
 0x21e   : > { %1423 = vrot.lane.b32.xlu2 %v1004_v27, %s1729_s16  ;;  %v1090_v23 = vadd.f32 %v1080_v42, %v1074_v32  ;;  %v814_v27 = vadd.f32 %v805_v53, %v2804_v62  ;;  %v2806_v32 = vld [vmem:[#allocation17_spill] sm:$0xff] }
 0x21f   : > { %v892_v46 = vsel %vm766_vm9, %v2806_v32, %v2499_v39 }
 0x220   : > { %v2555_v20 = vpop.permute.xlu2 %1203  ;;  %v2557_v38 = vpop.permute.xlu0 %1060 }
 0x221   : > { %v1027_v37 = vpop.permute.xlu1 %1026 }
 0x228   : > { %v2564_v3 = vpop.permute.xlu2 %1299  ;;  %v2566_v33 = vpop.permute.xlu0 %1128 }
 0x229   : > { %v2568_v47 = vpop.permute.xlu1 %1099  ;;  %v1134_v5 = vsel %vm1062_vm12, %v2245_v4, %v2566_v33 }
 0x22a   : > { %v1105_v52 = vsel %vm831_vm10, %v2315_v9, %v2568_v47  ;;  %v2803_v9 = vld [vmem:[#allocation12_spill] sm:$0xff] }
 0x22b   : > { %v1114_v59 = vadd.f32 %v1105_v52, %v1090_v23  ;;  %v835_v34 = vsel %vm831_vm10, %v2803_v9, %v2483_v40 }
 0x22c   : > { %v844_v25 = vadd.f32 %v835_v34, %v814_v27  ;;  %v2809_v34 = vld [vmem:[#allocation22_spill] sm:$0xff] }
 0x22d   : > { %v1143_v43 = vadd.f32 %v1134_v5, %v1114_v59  ;;  %v2807_v59 = vld [vmem:[#allocation10_spill] sm:$0xff] }
 0x22e   : > { %v878_v42 = vadd.f32 %v868_v45, %v844_v25  ;;  %v922_v5 = vsel %vm919_vm11, %v2807_v59, %v2514_v41  ;;  %v1031_v45 = vsel %vm831_vm10, %v2797_v13, %v1027_v37  ;;  %v1082_v13 = vrot.slane %v2308_v57, 6 }
 0x22f   : > { %v1163_v24 = vadd.f32 %v1153_v60, %v1143_v43  ;;  %v1155_v57 = vrot.slane %v2286_v8, 4 }
 0x230   : > { %v1102_v12 = vpop.permute.xlu2 %1101  ;;  %v865_v36 = vpop.permute.xlu0 %864  ;;  %v902_v26 = vadd.f32 %v892_v46, %v878_v42 }
 0x231   : > { %v869_v4 = vsel %vm706_vm7, %v2479_v18, %v865_v36  ;;  %v918_v22 = vpop.permute.xlu1 %917  ;;  %v2808_v36 = vld [vmem:[#allocation26_spill] sm:$0xff] }
 0x232   : > { %v879_v10 = vadd.f32 %v869_v4, %v845_v61  ;;  %v923_v43 = vsel %vm919_vm11, %v2514_v41, %v918_v22  ;;  %v932_v53 = vadd.f32 %v922_v5, %v902_v26  ;;  %v938_v9 = vrot.slane %v2808_v36, 4 }
 0x233   : > { %v937_v61 = vrot.slane %v2809_v34, 4  ;;  %v1154_v34 = vrot.slane %v2322_v50, 4 }
 0x234   : > { %v903_v40 = vadd.f32 %v893_v21, %v879_v10  ;;  %v996_v21 = vsel %vm831_vm10, %v2544_v2, %v2540_v11  ;;  %v1066_v2 = vsel %vm1062_vm12, %v2799_v14, %v2557_v38 }
 0x235   : > { %v947_v22 = vadd.f32 %v937_v61, %v932_v53 }
 0x236   : > { %v933_v0 = vadd.f32 %v923_v43, %v903_v40  ;;  %v2811_v40 = vld [vmem:[#allocation5_spill] sm:$0xff] }
 0x237   : > { %v1040_v42 = vadd.f32 %v1031_v45, %v2811_v40 }
 0x238   : > { %v2597_v23 = vpop.permute.xlu0 %1199  ;;  %v2599_v52 = vpop.permute.xlu2 %1333  ;;  %v948_v4 = vadd.f32 %v938_v9, %v933_v0  ;;  %v1254_v0 = vadd.f32 %v2449_v49, %v2084_v30 }
 0x239   : > { %v1176_v60 = vpop.permute.xlu1 %1175  ;;  %v1206_v19 = vsel %vm1062_vm12, %v2294_v17, %v2597_v23  ;;  %v1075_v5 = vadd.f32 %v1066_v2, %v1040_v42 }
 0x23a   : > { %v1182_v18 = vsel %vm831_vm10, %v2355_v16, %v1176_v60 }
 0x23b   : > { %v1191_v39 = vadd.f32 %v1182_v18, %v2424_v7 }
 0x23d   : > { %v1215_v1 = vadd.f32 %v1206_v19, %v1191_v39  ;;  %v1287_v19 = vrot.slane %v2357_v44, 6 }
 0x23f   : > { %1446 = vrot.lane.b32.xlu0 %v1215_v1, %s1728_s15 }
 0x240   : > { %v968_v41 = vpop.permute.xlu0 %967  ;;  %v1178_v62 = vpop.permute.xlu2 %1177 }
 0x241   : > { %v972_v16 = vsel %vm585_vm3, %v2512_v63, %v968_v41  ;;  %v982_v7 = vadd.f32 %v968_v41, %v948_v4  ;;  %v2617_v27 = vpop.permute.xlu1 %1297  ;;  %v1183_v10 = vsel %vm831_vm10, %v1176_v60, %v1178_v62  ;;  %v2810_v63 = vld [vmem:[#allocation25_spill] sm:$0xff]  ;;  %v2812_v60 = vld [vmem:[#allocation28_spill] sm:$0xff]  ;;  %vm1496_vm3 = vcmask 1045504  }
 0x242   : > { %v981_v17 = vadd.f32 %v972_v16, %v947_v22  ;;  %v1192_v25 = vadd.f32 %v1183_v10, %v1163_v24  ;;  %v1041_v46 = vadd.f32 %v1027_v37, %v2810_v63  ;;  %v1081_v26 = vrot.slane %v2812_v60, 6 }
 0x243   : > { %v1006_v15 = vadd.f32 %v2540_v11, %v982_v7  ;;  %v1106_v37 = vsel %vm831_vm10, %v2568_v47, %v1102_v12 }
 0x244   : > { %v1005_v32 = vadd.f32 %v996_v21, %v981_v17  ;;  %v1076_v11 = vadd.f32 %v2557_v38, %v1041_v46  ;;  %v1091_v18 = vadd.f32 %v1081_v26, %v1075_v5  ;;  %v1285_v17 = vrot.slane %v2139_v48, 6  ;;  %v2813_v5 = vld [vmem:[#allocation11_spill] sm:$0xff] }
 0x245   : > { %1427 = vrot.lane.b32.xlu1 %v1006_v15, %s1729_s16  ;;  %v1730_v26 = vmov 0  }
 0x246   : > { %v1092_v43 = vadd.f32 %v1082_v13, %v1076_v11  ;;  %v1115_v14 = vadd.f32 %v1106_v37, %v1091_v18  ;;  %v1293_v21 = vadd.f32 %v1285_v17, %v2426_v58  ;;  %v1355_v58 = vrot.slane %v2401_v51, 4  ;;  %1706 = vset.pattern.permute.xlu2 %v1730_v26  ;;  %1707 = vset.pattern.permute.xlu0 %v1730_v26 }
 0x247   : > { %1425 = vrot.lane.b32.xlu0 %v1005_v32, %s1729_s16  ;;  %v1353_v32 = vrot.slane %v2380_v6, 4  ;;  %v1284_v13 = vrot.slane %v2813_v5, 6  ;;  %v1307_v6 = vsel %vm1062_vm12, %v2617_v27, %v2564_v3 }
 0x248   : > { %v1180_v59 = vpop.permute.xlu0 %1179  ;;  %v1116_v39 = vadd.f32 %v1102_v12, %v1092_v43  ;;  %v1306_v50 = vpop.permute.xlu2 %1305  ;;  %v2814_v43 = vld [vmem:[#allocation29_spill] sm:$0xff] }
 0x249   : > { %v2630_v24 = vpop.permute.xlu1 %1303  ;;  %v1184_v44 = vsel %vm831_vm10, %v1178_v62, %v1180_v59  ;;  %v1292_v37 = vadd.f32 %v1284_v13, %v2814_v43 }
 0x24a   : > { %v1310_v48 = vsel %vm1062_vm12, %v2630_v24, %v1306_v50 }
 0x250   : > { %v1269_v53 = vpop.permute.xlu0 %1268  ;;  %v1371_v63 = vpop.permute.xlu2 %1370 }
 0x251   : > { %v1274_v38 = vsel %vm1270_vm13, %v2330_v35, %v1269_v53  ;;  %v1131_v1 = vpop.permute.xlu1 %1130  ;;  %v1315_v53 = vadd.f32 %v1307_v6, %v1292_v37 }
 0x252   : > { %v1282_v36 = vadd.f32 %v1274_v38, %v1254_v0  ;;  %v1135_v9 = vsel %vm1062_vm12, %v2566_v33, %v1131_v1  ;;  %v1145_v47 = vadd.f32 %v1131_v1, %v1116_v39  ;;  %v1352_v38 = vrot.slane %v2255_v31, 4 }
 0x253   : > { %v1144_v61 = vadd.f32 %v1135_v9, %v1115_v14  ;;  %v1286_v14 = vrot.slane %v2135_v28, 6 }
 0x254   : > { %v1295_v30 = vadd.f32 %v1287_v19, %v1282_v36  ;;  %v1165_v49 = vadd.f32 %v1155_v57, %v1145_v47 }
 0x255   : > { %v1164_v12 = vadd.f32 %v1154_v34, %v1144_v61  ;;  %v1294_v27 = vadd.f32 %v1286_v14, %v2455_v55 }
 0x256   : > { %v1194_v4 = vadd.f32 %v1180_v59, %v1165_v49  ;;  %v1318_v59 = vadd.f32 %v1310_v48, %v1295_v30 }
 0x257   : > { %v1193_v16 = vadd.f32 %v1184_v44, %v1164_v12  ;;  %v1354_v12 = vrot.slane %v2361_v29, 4 }
 0x258   : > { %v1302_v41 = vpop.permute.xlu0 %1301  ;;  %v1218_v35 = vadd.f32 %v2555_v20, %v1194_v4  ;;  %v1377_v18 = vpop.permute.xlu2 %1376 }
 0x259   : > { %v1202_v22 = vpop.permute.xlu1 %1201  ;;  %v1308_v62 = vsel %vm1062_vm12, %v2564_v3, %v1302_v41  ;;  %v1309_v1 = vsel %vm1062_vm12, %v1302_v41, %v2630_v24 }
 0x25a   : > { %v1207_v8 = vsel %vm1062_vm12, %v2597_v23, %v1202_v22  ;;  %v1208_v33 = vsel %vm1062_vm12, %v1202_v22, %v2555_v20  ;;  %1452 = vrot.lane.b32.xlu0 %v1218_v35, %s1728_s15  ;;  %v1316_v23 = vadd.f32 %v1308_v62, %v1293_v21  ;;  %v1317_v47 = vadd.f32 %v1309_v1, %v1294_v27  ;;  %v1502_v62 = vld [vmem:[%s2737_s2] sm:$0xff] }
 0x25b   : > { %v2656_v7 = vadd.f32 %v1207_v8, %v1192_v25  ;;  %v1217_v10 = vadd.f32 %v1208_v33, %v1193_v16 }
 0x25d   : > { %1450 = vrot.lane.b32.xlu2 %v1217_v10, %s1728_s15 }
 0x260   : > { %v1330_v15 = vpop.permute.xlu0 %1329  ;;  %v1395_v34 = vpop.permute.xlu2 %1394 }
 0x261   : > { %v1332_v45 = vpop.permute.xlu1 %1331 }
 0x262   : > { %v1340_v20 = vsel %vm1270_vm13, %v1332_v45, %v2599_v52  ;;  %v1339_v0 = vsel %vm1270_vm13, %v1330_v15, %v1332_v45 }
 0x263   : > { %v1348_v25 = vadd.f32 %v1340_v20, %v1316_v23  ;;  %v1347_v51 = vadd.f32 %v1339_v0, %v1315_v53 }
 0x265   : > { %v1361_v46 = vadd.f32 %v1353_v32, %v1348_v25  ;;  %v1360_v57 = vadd.f32 %v1352_v38, %v1347_v51  ;;  %v2817_v38 = vld [vmem:[#allocation14_spill] sm:$0xff] }
 0x268   : > { %v1336_v40 = vpop.permute.xlu0 %1335  ;;  %v1401_v50 = vpop.permute.xlu2 %1400 }
 0x269   : > { %v1338_v42 = vpop.permute.xlu1 %1337  ;;  %v1341_v36 = vsel %vm1270_vm13, %v2599_v52, %v1336_v40 }
 0x26a   : > { %v1342_v2 = vsel %vm1270_vm13, %v1336_v40, %v1338_v42  ;;  %v1349_v49 = vadd.f32 %v1341_v36, %v1317_v47  ;;  %v2815_v40 = vld [vmem:[#allocation20_spill] sm:$0xff] }
 0x26b   : > { %v1350_v11 = vadd.f32 %v1342_v2, %v1318_v59 }
 0x26c   : > { %v1362_v4 = vadd.f32 %v1354_v12, %v1349_v49 }
 0x26d   : > { %v1363_v60 = vadd.f32 %v1355_v58, %v1350_v11  ;;  %v2816_v58 = vld [vmem:[#allocation21_spill] sm:$0xff] }
 0x270   : > { %v1373_v39 = vpop.permute.xlu0 %1372  ;;  %v1445_v15 = vpop.permute.xlu2 %1444 }
 0x271   : > { %v1375_v19 = vpop.permute.xlu1 %1374  ;;  %v1380_v3 = vsel %vm1062_vm12, %v1371_v63, %v1373_v39 }
 0x272   : > { %v1388_v61 = vadd.f32 %v1380_v3, %v1360_v57  ;;  %v1381_v24 = vsel %vm1062_vm12, %v1373_v39, %v1375_v19  ;;  %v1382_v55 = vsel %vm1062_vm12, %v1375_v19, %v1377_v18 }
 0x273   : > { %v1389_v44 = vadd.f32 %v1381_v24, %v1361_v46  ;;  %v1390_v41 = vadd.f32 %v1382_v55, %v1362_v4 }
 0x278   : > { %v1379_v9 = vpop.permute.xlu0 %1378  ;;  %v1424_v45 = vpop.permute.xlu2 %1423 }
 0x279   : > { %v1393_v30 = vpop.permute.xlu1 %1392  ;;  %v1383_v29 = vsel %vm1062_vm12, %v1377_v18, %v1379_v9 }
 0x27a   : > { %v1402_v28 = vsel %vm1270_vm13, %v1393_v30, %v1395_v34  ;;  %v1391_v17 = vadd.f32 %v1383_v29, %v1363_v60 }
 0x27b   : > { %v1410_v31 = vadd.f32 %v1402_v28, %v1388_v61 }
 0x27d   : > { %1468 = vrot.lane.b32.xlu1 %v1410_v31, %s1731_s17 }
 0x280   : > { %v1397_v52 = vpop.permute.xlu0 %1396 }
 0x281   : > { %v1399_v35 = vpop.permute.xlu1 %1398  ;;  %v1403_v22 = vsel %vm1270_vm13, %v1395_v34, %v1397_v52 }
 0x282   : > { %v1404_v16 = vsel %vm1270_vm13, %v1397_v52, %v1399_v35  ;;  %v1411_v8 = vadd.f32 %v1403_v22, %v1389_v44  ;;  %v1405_v10 = vsel %vm1270_vm13, %v1399_v35, %v1401_v50 }
 0x283   : > { %v1412_v33 = vadd.f32 %v1404_v16, %v1390_v41  ;;  %v1413_v21 = vadd.f32 %v1405_v10, %v1391_v17 }
 0x284   : > { %1470 = vrot.lane.b32.xlu2 %v1411_v8, %s1731_s17 }
 0x285   : > { %1448 = vrot.lane.b32.xlu1 %v2656_v7, %s1728_s15  ;;  %1472 = vrot.lane.b32.xlu0 %v1412_v33, %s1731_s17 }
 0x288   : > { %v1420_v23 = vpop.permute.xlu0 %1419 }
 0x289   : > { %v1422_v7 = vpop.permute.xlu1 %1421  ;;  %v1485_v42 = vsel %vm239_vm0, %v2815_v40, %v1420_v23 }
 0x28a   : > { %v1430_v48 = vsel %vm1429_vm14, %v1420_v23, %v1422_v7  ;;  %v1491_v60 = vsel %vm1490_vm1, %v1485_v42, %v1445_v15  ;;  %v1431_v19 = vsel %vm1429_vm14, %v1422_v7, %v1424_v45 }
 0x28b   : > { %v1486_v11 = vsel %vm239_vm0, %v2816_v58, %v1430_v48  ;;  %v1487_v1 = vsel %vm239_vm0, %v2817_v38, %v1431_v19 }
 0x28c   : > { %1505 = vperm.xlu2 %1706, %v1502_v62  }
 0x28d   : > { %1474 = vrot.lane.b32.xlu1 %v1413_v21, %s1731_s17 }
 0x2b1   : > { %v1447_v20 = vpop.permute.xlu0 %1446 }
 0x2b2   : > { %v1455_v59 = vsel %vm1454_vm15, %v1445_v15, %v1447_v20 }
 0x2b3   : > { %v1492_v6 = vsel %vm1490_vm1, %v1486_v11, %v1455_v59 }
 0x2b7   : > { %v1451_v32 = vpop.permute.xlu2 %1450  ;;  %v1428_v63 = vpop.permute.xlu1 %1427 }
 0x2b9   : > { %v1426_v46 = vpop.permute.xlu0 %1425 }
 0x2ba   : > { %v1433_v9 = vsel %vm1429_vm14, %v1426_v46, %v1428_v63  ;;  %v1432_v34 = vsel %vm1429_vm14, %v1424_v45, %v1426_v46 }
 0x2bb   : > { %v1489_v49 = vsel %vm239_vm0, %v2546_v56, %v1433_v9  ;;  %v1488_v31 = vsel %vm239_vm0, %v2505_v54, %v1432_v34  ;;  %vm1533_vm0 = vcmask 203776  }
 0x2cc   : > { %v1453_v5 = vpop.permute.xlu0 %1452 }
 0x2cd   : > { %v1458_v61 = vsel %vm1454_vm15, %v1451_v32, %v1453_v5 }
 0x2ce   : > { %v1495_v24 = vsel %vm1490_vm1, %v1489_v49, %v1458_v61 }
 0x2de   : > { %v1471_v25 = vpop.permute.xlu2 %1470 }
 0x2e6   : > { %v1506_v2 = vpop.permute.xlu2 %1505 }
 0x2ef   : > { %v1469_v13 = vpop.permute.xlu1 %1468 }
 0x2f0   : > { %v1477_v26 = vsel %vm1476_vm2, %v1469_v13, %v1471_v25  ;;  %v1497_v43 = vsel %vm1496_vm3, %v1491_v60, %v1469_v13 }
 0x2f1   : > { %v1498_v37 = vsel %vm1496_vm3, %v1492_v6, %v1477_v26  ;;  %v1508_v18 = vadd.f32 %v1506_v2, %v1497_v43 }
 0x2f2   : > { %v1509_v0 = vadd.f32 %v1506_v2, %v1498_v37 }
 0x2f3   : > { %v1513_v39 = vmax.f32 %v1508_v18, 0.0 }
 0x2f4   : > { %v1514_v53 = vmax.f32 %v1509_v0, 0.0 }
 0x2f5   : > { %1523 = vrot.lane.b32.xlu0 %v1513_v39, %s1732_s20 }
 0x2f6   : > { %1525 = vrot.lane.b32.xlu1 %v1514_v53, %s1732_s20 }
 0x2f7   : > { %v1449_v51 = vpop.permute.xlu1 %1448  ;;  %v1473_v14 = vpop.permute.xlu0 %1472 }
 0x2f8   : > { %v1456_v3 = vsel %vm1454_vm15, %v1447_v20, %v1449_v51  ;;  %v1478_v27 = vsel %vm1476_vm2, %v1471_v25, %v1473_v14  ;;  %v1457_v30 = vsel %vm1454_vm15, %v1449_v51, %v1451_v32 }
 0x2f9   : > { %v1493_v57 = vsel %vm1490_vm1, %v1487_v1, %v1456_v3  ;;  %v1494_v55 = vsel %vm1490_vm1, %v1488_v31, %v1457_v30 }
 0x2fa   : > { %v1499_v36 = vsel %vm1496_vm3, %v1493_v57, %v1478_v27 }
 0x2fb   : > { %v1510_v47 = vadd.f32 %v1506_v2, %v1499_v36 }
 0x2fd   : > { %v1515_v28 = vmax.f32 %v1510_v47, 0.0 }
 0x2ff   : > { %v1475_v12 = vpop.permute.xlu1 %1474  ;;  %1527 = vrot.lane.b32.xlu2 %v1515_v28, %s1732_s20 }
 0x300   : > { %v1479_v4 = vsel %vm1476_vm2, %v1473_v14, %v1475_v12  ;;  %v1501_v44 = vsel %vm1496_vm3, %v1495_v24, %v1475_v12 }
 0x301   : > { %v1500_v52 = vsel %vm1496_vm3, %v1494_v55, %v1479_v4  ;;  %v1512_v41 = vadd.f32 %v1506_v2, %v1501_v44 }
 0x302   : > { %v1511_v35 = vadd.f32 %v1506_v2, %v1500_v52 }
 0x303   : > { %v1517_v22 = vmax.f32 %v1512_v41, 0.0 }
 0x304   : > { %v1516_v16 = vmax.f32 %v1511_v35, 0.0 }
 0x305   : > { %1531 = vrot.lane.b32.xlu1 %v1517_v22, %s1732_s20 }
 0x306   : > { %1529 = vrot.lane.b32.xlu0 %v1516_v16, %s1732_s20 }
 0x359   : > { %v1528_v56 = vpop.permute.xlu2 %1527 }
 0x367   : > { %v1524_v54 = vpop.permute.xlu0 %1523 }
 0x368   : > { %v1526_v8 = vpop.permute.xlu1 %1525 }
 0x369   : > { %v1534_v33 = vsel %vm1533_vm0, %v1524_v54, %v1526_v8  ;;  %v1535_v29 = vsel %vm1533_vm0, %v1526_v8, %v1528_v56 }
 0x36a   : > { %1542 = vst [vmem:[%s170_s24] sm:$0xff] %v1534_v33 }
 0x36b   : > { %1543 = vst [vmem:[%s170_s24 + $0x8] sm:$0xff] %v1535_v29 }
 0x377   : > { %v1532_v50 = vpop.permute.xlu1 %1531 }
 0x378   : > { %v1530_v10 = vpop.permute.xlu0 %1529 }
 0x379   : > { %v1536_v17 = vsel %vm1533_vm0, %v1528_v56, %v1530_v10  ;;  %v1537_v62 = vsel %vm1533_vm0, %v1530_v10, %v1532_v50 }
 0x37a   : > { %1544 = vst [vmem:[%s170_s24 + $0x10] sm:$0xff] %v1536_v17 }
 0x37b   : > { %1545 = vst [vmem:[%s170_s24 + $0x18] sm:$0xff] %v1537_v62 }
 0x37c PF: > { %s13_s12 = sadd.s32 1, %s1714_s12  }
 0x37d   : > { %p10_p4 = scmp.ge.s32.totalorder %s13_s12, 4  }
 0x37f   :  { %12 = sbr.rel (!%p10_p4) target bundleno = 1 (0x1), region = 63 }

</bundles_post_ra>
